<compile_context>
chip_gen: v7x
topology: tpu7x:2x2x1
jax: 0.10.0
libtpu: 0.0.40
codegen_flags: <defaults>
</compile_context>

<pallas_src>
import functools
import math

import jax
import jax.numpy as jnp
from jax.experimental import pallas as pl
from jax.experimental.pallas import tpu as pltpu

# ---------------- model config (small, deterministic) ----------------
VOCAB = 64
HIDDEN = 128
HEADS = 4
HEAD_DIM = HIDDEN // HEADS
FFN = 256
LAYERS = 2
MAX_POS = 16
LN_EPS = 1e-5

# dot_general dimension numbers for A @ B.T (contract last dims of both operands)
_TRANS_B = (((1,), (1,)), ((), ()))


# ---------------- in-kernel helpers (pure jnp, traced inside the kernel) ----------
def _layernorm(x, g, b):
    mu = jnp.mean(x, axis=-1, keepdims=True)
    var = jnp.mean((x - mu) * (x - mu), axis=-1, keepdims=True)
    return (x - mu) * jax.lax.rsqrt(var + LN_EPS) * g + b


def _bf16_dot(x, w_bf16, bias):
    # bf16 MXU matmul with f32 accumulation; bias add in f32 on the VPU.
    y = jnp.dot(x.astype(jnp.bfloat16), w_bf16, preferred_element_type=jnp.float32)
    return y + bias


# ---------------- fused forward kernel ----------------
def encoder_kernel(ids_ref,                 # SMEM (B, S) int32  (scalar prefetch)
                   mask_ref,                # VMEM (1, 1, S) f32 (this batch row)
                   emb_ref, pos_ref,        # (VOCAB, D) f32, (S, D) f32
                   eg_ref, eb_ref,          # (1, D) f32 embedding LayerNorm
                   wqkv_ref, bqkv_ref,      # (L, D, 3D) bf16, (L, 1, 3D) f32
                   wo_ref, bo_ref,          # (L, D, D)  bf16, (L, 1, D)  f32
                   ln1g_ref, ln1b_ref,      # (L, 1, D) f32
                   w1_ref, b1_ref,          # (L, D, FFN) bf16, (L, 1, FFN) f32
                   w2_ref, b2_ref,          # (L, FFN, D) bf16, (L, 1, D)  f32
                   ln2g_ref, ln2b_ref,      # (L, 1, D) f32
                   out_ref,                 # (1, 1, D) f32
                   *, seq_len):
    b = pl.program_id(0)
    s = seq_len
    d = HIDDEN

    # ---- embedding row-gather (ids from SMEM) + position + LayerNorm ----
    rows = [emb_ref[pl.ds(ids_ref[b, i], 1), :] for i in range(s)]
    tok = jnp.concatenate(rows, axis=0)                       # (S, D)
    x = _layernorm(tok + pos_ref[...], eg_ref[...], eb_ref[...])

    mask = mask_ref[0]                                        # (1, S) f32 {0,1}
    attn_bias = (mask - 1.0) * 1e9                            # 0 keep / -1e9 pad keys
    scale = 1.0 / math.sqrt(HEAD_DIM)

    # ---- encoder layers: weights resident in VMEM, static unroll ----
    for li in range(LAYERS):
        qkv = _bf16_dot(x, wqkv_ref[li], bqkv_ref[li])        # (S, 3D) f32
        q = qkv[:, 0 * d:1 * d]                               # (S, D) lane-dense
        k = qkv[:, 1 * d:2 * d]
        v = qkv[:, 2 * d:3 * d]

        head_outs = []
        for hi in range(HEADS):
            lo = hi * HEAD_DIM
            qh = q[:, lo:lo + HEAD_DIM].astype(jnp.bfloat16)  # (S, Dh)
            kh = k[:, lo:lo + HEAD_DIM].astype(jnp.bfloat16)
            vh = v[:, lo:lo + HEAD_DIM].astype(jnp.bfloat16)
            sc = jax.lax.dot_general(qh, kh, _TRANS_B,
                                     preferred_element_type=jnp.float32)
            sc = sc * scale + attn_bias                       # mask keys
            sc = sc - jnp.max(sc, axis=-1, keepdims=True)
            p = jnp.exp(sc)
            p = p * pl.reciprocal(jnp.sum(p, axis=-1, keepdims=True), approx=True)
            head_outs.append(jnp.dot(p.astype(jnp.bfloat16), vh,
                                     preferred_element_type=jnp.float32))
        attn = jnp.concatenate(head_outs, axis=-1)            # (S, D)

        a = _bf16_dot(attn, wo_ref[li], bo_ref[li])
        x = _layernorm(a + x, ln1g_ref[li], ln1b_ref[li])

        ff = _bf16_dot(x, w1_ref[li], b1_ref[li])
        # TODO(synk): HF MPNet uses exact erf GELU; tanh approximation used here.
        ff = jax.nn.gelu(ff, approximate=True)
        ff = _bf16_dot(ff, w2_ref[li], b2_ref[li])
        x = _layernorm(ff + x, ln2g_ref[li], ln2b_ref[li])

    # ---- masked mean pooling (clamp min=1e-9) + F.normalize(p=2, dim=1) ----
    summed = jnp.dot(mask, x, preferred_element_type=jnp.float32)   # (1, D)
    count = jnp.maximum(jnp.sum(mask), 1e-9)
    emb = summed / count
    norm = jnp.sqrt(jnp.sum(emb * emb))
    out_ref[0] = emb / jnp.maximum(norm, 1e-12)               # exact divide: unit norm


# ---------------- wrapper: one pallas_call for the whole forward ----------------
def sentence_transformer_forward(params, input_ids, attention_mask):
    b, s = input_ids.shape
    mask3 = attention_mask.astype(jnp.float32).reshape(b, 1, s)

    def const(shape):
        # same block every grid step -> weight stays resident in VMEM
        return pl.BlockSpec(shape, lambda bi, ids: (0,) * len(shape))

    grid_spec = pltpu.PrefetchScalarGridSpec(
        num_scalar_prefetch=1,           # input_ids -> SMEM
        grid=(b,),
        in_specs=[
            pl.BlockSpec((1, 1, s), lambda bi, ids: (bi, 0, 0)),   # mask (this batch)
            const((VOCAB, HIDDEN)),                                # embedding table
            pl.BlockSpec((s, HIDDEN), lambda bi, ids: (0, 0)),     # pos[:s]
            const((1, HIDDEN)), const((1, HIDDEN)),                # embedding LN
            const((LAYERS, HIDDEN, 3 * HIDDEN)), const((LAYERS, 1, 3 * HIDDEN)),
            const((LAYERS, HIDDEN, HIDDEN)), const((LAYERS, 1, HIDDEN)),
            const((LAYERS, 1, HIDDEN)), const((LAYERS, 1, HIDDEN)),
            const((LAYERS, HIDDEN, FFN)), const((LAYERS, 1, FFN)),
            const((LAYERS, FFN, HIDDEN)), const((LAYERS, 1, HIDDEN)),
            const((LAYERS, 1, HIDDEN)), const((LAYERS, 1, HIDDEN)),
        ],
        out_specs=pl.BlockSpec((1, 1, HIDDEN), lambda bi, ids: (bi, 0, 0)),
    )

    out = pl.pallas_call(
        functools.partial(encoder_kernel, seq_len=s),
        out_shape=jax.ShapeDtypeStruct((b, 1, HIDDEN), jnp.float32),
        grid_spec=grid_spec,
        compiler_params=pltpu.CompilerParams(
            dimension_semantics=("parallel",)),   # batch axis can shard across TCs
    )(input_ids, mask3,
      params["emb"], params["pos"],
      params["emb_ln_g"], params["emb_ln_b"],
      params["wqkv"], params["bqkv"],
      params["wo"], params["bo"],
      params["ln1_g"], params["ln1_b"],
      params["w1"], params["b1"],
      params["w2"], params["b2"],
      params["ln2_g"], params["ln2_b"])
    return out.reshape(b, HIDDEN)


# ---------------- parameters (deterministic synthetic init, stacked per layer) ----
def init_params(key):
    def nrm(k, shape, scale=0.02, dtype=jnp.float32):
        return (scale * jax.random.normal(k, shape, dtype=jnp.float32)).astype(dtype)

    keys = jax.random.split(key, 6)
    return {
        "emb": nrm(keys[0], (VOCAB, HIDDEN)),
        "pos": nrm(keys[1], (MAX_POS, HIDDEN)),
        "emb_ln_g": jnp.ones((1, HIDDEN), jnp.float32),
        "emb_ln_b": jnp.zeros((1, HIDDEN), jnp.float32),
        # matmul weights in bf16 (MXU inputs); biases / LN params stay f32.
        "wqkv": nrm(keys[2], (LAYERS, HIDDEN, 3 * HIDDEN), dtype=jnp.bfloat16),
        "bqkv": jnp.zeros((LAYERS, 1, 3 * HIDDEN), jnp.float32),
        "wo": nrm(keys[3], (LAYERS, HIDDEN, HIDDEN), dtype=jnp.bfloat16),
        "bo": jnp.zeros((LAYERS, 1, HIDDEN), jnp.float32),
        "ln1_g": jnp.ones((LAYERS, 1, HIDDEN), jnp.float32),
        "ln1_b": jnp.zeros((LAYERS, 1, HIDDEN), jnp.float32),
        "w1": nrm(keys[4], (LAYERS, HIDDEN, FFN), dtype=jnp.bfloat16),
        "b1": jnp.zeros((LAYERS, 1, FFN), jnp.float32),
        "w2": nrm(keys[5], (LAYERS, FFN, HIDDEN), dtype=jnp.bfloat16),
        "b2": jnp.zeros((LAYERS, 1, HIDDEN), jnp.float32),
        "ln2_g": jnp.ones((LAYERS, 1, HIDDEN), jnp.float32),
        "ln2_b": jnp.zeros((LAYERS, 1, HIDDEN), jnp.float32),
    }


if __name__ == "__main__":
    B, S = 2, 8

    key = jax.random.PRNGKey(0)
    k_ids, k_params = jax.random.split(key)
    input_ids = jax.random.randint(k_ids, (B, S), 0, VOCAB, dtype=jnp.int32)
    lengths = jnp.array([S, 5], jnp.int32)
    attention_mask = (jnp.arange(S)[None, :] < lengths[:, None]).astype(jnp.int32)

    params = init_params(k_params)

    fwd = jax.jit(sentence_transformer_forward)
    emb = jax.block_until_ready(fwd(params, input_ids, attention_mask))

    assert emb.shape == (B, HIDDEN)
    assert bool(jnp.all(jnp.isfinite(emb)))
    # unit-norm check (F.normalize semantics)
    norms = jnp.sqrt(jnp.sum(emb * emb, axis=1))
    assert bool(jnp.all(jnp.abs(norms - 1.0) < 1e-4))

    print("KERNEL_OK")
</pallas_src>

<mosaic_0001>
module attributes {stable_mosaic.version = 11 : i64} {
  func.func @encoder_kernel(%arg0: i32, %arg1: memref<2x8xi32, #tpu.memory_space<smem>>, %arg2: memref<1x1x8xf32, #tpu.memory_space<vmem>>, %arg3: memref<64x128xf32, #tpu.memory_space<vmem>>, %arg4: memref<8x128xf32, #tpu.memory_space<vmem>>, %arg5: memref<1x128xf32, #tpu.memory_space<vmem>>, %arg6: memref<1x128xf32, #tpu.memory_space<vmem>>, %arg7: memref<2x128x384xbf16, #tpu.memory_space<vmem>>, %arg8: memref<2x1x384xf32, #tpu.memory_space<vmem>>, %arg9: memref<2x128x128xbf16, #tpu.memory_space<vmem>>, %arg10: memref<2x1x128xf32, #tpu.memory_space<vmem>>, %arg11: memref<2x1x128xf32, #tpu.memory_space<vmem>>, %arg12: memref<2x1x128xf32, #tpu.memory_space<vmem>>, %arg13: memref<2x128x256xbf16, #tpu.memory_space<vmem>>, %arg14: memref<2x1x256xf32, #tpu.memory_space<vmem>>, %arg15: memref<2x256x128xbf16, #tpu.memory_space<vmem>>, %arg16: memref<2x1x128xf32, #tpu.memory_space<vmem>>, %arg17: memref<2x1x128xf32, #tpu.memory_space<vmem>>, %arg18: memref<2x1x128xf32, #tpu.memory_space<vmem>>, %arg19: memref<1x1x128xf32, #tpu.memory_space<vmem>>) attributes {dimension_semantics = [#tpu.dimension_semantics<parallel>], iteration_bounds = array<i64: 2>, scalar_prefetch = 1 : i64, scratch_operands = 0 : i64, tpu.core_type = #tpu.core_type<tc>, window_params = [{transform_indices = @transform_0, window_bounds = array<i64: 1, 1, 8>}, {pipeline_mode = #tpu.pipeline_mode<synchronous>, transform_indices = @transform_1, window_bounds = array<i64: 64, 128>}, {transform_indices = @transform_2, window_bounds = array<i64: 8, 128>}, {pipeline_mode = #tpu.pipeline_mode<synchronous>, transform_indices = @transform_3, window_bounds = array<i64: 1, 128>}, {pipeline_mode = #tpu.pipeline_mode<synchronous>, transform_indices = @transform_4, window_bounds = array<i64: 1, 128>}, {pipeline_mode = #tpu.pipeline_mode<synchronous>, transform_indices = @transform_5, window_bounds = array<i64: 2, 128, 384>}, {pipeline_mode = #tpu.pipeline_mode<synchronous>, transform_indices = @transform_6, window_bounds = array<i64: 2, 1, 384>}, {pipeline_mode = #tpu.pipeline_mode<synchronous>, transform_indices = @transform_7, window_bounds = array<i64: 2, 128, 128>}, {pipeline_mode = #tpu.pipeline_mode<synchronous>, transform_indices = @transform_8, window_bounds = array<i64: 2, 1, 128>}, {pipeline_mode = #tpu.pipeline_mode<synchronous>, transform_indices = @transform_9, window_bounds = array<i64: 2, 1, 128>}, {pipeline_mode = #tpu.pipeline_mode<synchronous>, transform_indices = @transform_10, window_bounds = array<i64: 2, 1, 128>}, {pipeline_mode = #tpu.pipeline_mode<synchronous>, transform_indices = @transform_11, window_bounds = array<i64: 2, 128, 256>}, {pipeline_mode = #tpu.pipeline_mode<synchronous>, transform_indices = @transform_12, window_bounds = array<i64: 2, 1, 256>}, {pipeline_mode = #tpu.pipeline_mode<synchronous>, transform_indices = @transform_13, window_bounds = array<i64: 2, 256, 128>}, {pipeline_mode = #tpu.pipeline_mode<synchronous>, transform_indices = @transform_14, window_bounds = array<i64: 2, 1, 128>}, {pipeline_mode = #tpu.pipeline_mode<synchronous>, transform_indices = @transform_15, window_bounds = array<i64: 2, 1, 128>}, {pipeline_mode = #tpu.pipeline_mode<synchronous>, transform_indices = @transform_16, window_bounds = array<i64: 2, 1, 128>}, {transform_indices = @transform_17, window_bounds = array<i64: 1, 1, 128>}]} {
    %0 = arith.index_cast %arg0 : i32 to index
    %c0 = arith.constant 0 : index
    %1 = memref.load %arg1[%0, %c0] : memref<2x8xi32, #tpu.memory_space<smem>>
    %2 = arith.index_cast %1 : i32 to index
    %c0_0 = arith.constant 0 : index
    %3 = vector.load %arg3[%2, %c0_0] : memref<64x128xf32, #tpu.memory_space<vmem>>, vector<1x128xf32>
    %4 = arith.index_cast %arg0 : i32 to index
    %c1 = arith.constant 1 : index
    %5 = memref.load %arg1[%4, %c1] : memref<2x8xi32, #tpu.memory_space<smem>>
    %6 = arith.index_cast %5 : i32 to index
    %c0_1 = arith.constant 0 : index
    %7 = vector.load %arg3[%6, %c0_1] : memref<64x128xf32, #tpu.memory_space<vmem>>, vector<1x128xf32>
    %8 = arith.index_cast %arg0 : i32 to index
    %c2 = arith.constant 2 : index
    %9 = memref.load %arg1[%8, %c2] : memref<2x8xi32, #tpu.memory_space<smem>>
    %10 = arith.index_cast %9 : i32 to index
    %c0_2 = arith.constant 0 : index
    %11 = vector.load %arg3[%10, %c0_2] : memref<64x128xf32, #tpu.memory_space<vmem>>, vector<1x128xf32>
    %12 = arith.index_cast %arg0 : i32 to index
    %c3 = arith.constant 3 : index
    %13 = memref.load %arg1[%12, %c3] : memref<2x8xi32, #tpu.memory_space<smem>>
    %14 = arith.index_cast %13 : i32 to index
    %c0_3 = arith.constant 0 : index
    %15 = vector.load %arg3[%14, %c0_3] : memref<64x128xf32, #tpu.memory_space<vmem>>, vector<1x128xf32>
    %16 = arith.index_cast %arg0 : i32 to index
    %c4 = arith.constant 4 : index
    %17 = memref.load %arg1[%16, %c4] : memref<2x8xi32, #tpu.memory_space<smem>>
    %18 = arith.index_cast %17 : i32 to index
    %c0_4 = arith.constant 0 : index
    %19 = vector.load %arg3[%18, %c0_4] : memref<64x128xf32, #tpu.memory_space<vmem>>, vector<1x128xf32>
    %20 = arith.index_cast %arg0 : i32 to index
    %c5 = arith.constant 5 : index
    %21 = memref.load %arg1[%20, %c5] : memref<2x8xi32, #tpu.memory_space<smem>>
    %22 = arith.index_cast %21 : i32 to index
    %c0_5 = arith.constant 0 : index
    %23 = vector.load %arg3[%22, %c0_5] : memref<64x128xf32, #tpu.memory_space<vmem>>, vector<1x128xf32>
    %24 = arith.index_cast %arg0 : i32 to index
    %c6 = arith.constant 6 : index
    %25 = memref.load %arg1[%24, %c6] : memref<2x8xi32, #tpu.memory_space<smem>>
    %26 = arith.index_cast %25 : i32 to index
    %c0_6 = arith.constant 0 : index
    %27 = vector.load %arg3[%26, %c0_6] : memref<64x128xf32, #tpu.memory_space<vmem>>, vector<1x128xf32>
    %28 = arith.index_cast %arg0 : i32 to index
    %c7 = arith.constant 7 : index
    %29 = memref.load %arg1[%28, %c7] : memref<2x8xi32, #tpu.memory_space<smem>>
    %30 = arith.index_cast %29 : i32 to index
    %c0_7 = arith.constant 0 : index
    %31 = vector.load %arg3[%30, %c0_7] : memref<64x128xf32, #tpu.memory_space<vmem>>, vector<1x128xf32>
    %32 = tpu.concatenate %3, %7, %11, %15, %19, %23, %27, %31 in 0 : vector<1x128xf32>, vector<1x128xf32>, vector<1x128xf32>, vector<1x128xf32>, vector<1x128xf32>, vector<1x128xf32>, vector<1x128xf32>, vector<1x128xf32> -> vector<8x128xf32>
    %c0_8 = arith.constant 0 : index
    %c0_9 = arith.constant 0 : index
    %33 = vector.load %arg4[%c0_8, %c0_9] : memref<8x128xf32, #tpu.memory_space<vmem>>, vector<8x128xf32>
    %34 = arith.addf %32, %33 : vector<8x128xf32>
    %c0_10 = arith.constant 0 : index
    %c0_11 = arith.constant 0 : index
    %35 = vector.load %arg5[%c0_10, %c0_11] : memref<1x128xf32, #tpu.memory_space<vmem>>, vector<1x128xf32>
    %c0_12 = arith.constant 0 : index
    %c0_13 = arith.constant 0 : index
    %36 = vector.load %arg6[%c0_12, %c0_13] : memref<1x128xf32, #tpu.memory_space<vmem>>, vector<1x128xf32>
    %cst = arith.constant dense<0.000000e+00> : vector<8xf32>
    %37 = vector.multi_reduction <add>, %34, %cst [1] : vector<8x128xf32> to vector<8xf32>
    %38 = vector.shape_cast %37 : vector<8xf32> to vector<8x1xf32>
    %cst_14 = arith.constant 1.280000e+02 : f32
    %39 = vector.broadcast %cst_14 : f32 to vector<8x1xf32>
    %40 = arith.divf %38, %39 : vector<8x1xf32>
    %41 = vector.broadcast %40 : vector<8x1xf32> to vector<8x128xf32>
    %42 = arith.subf %34, %41 : vector<8x128xf32>
    %43 = vector.broadcast %40 : vector<8x1xf32> to vector<8x128xf32>
    %44 = arith.subf %34, %43 : vector<8x128xf32>
    %45 = arith.mulf %42, %44 : vector<8x128xf32>
    %cst_15 = arith.constant dense<0.000000e+00> : vector<8xf32>
    %46 = vector.multi_reduction <add>, %45, %cst_15 [1] : vector<8x128xf32> to vector<8xf32>
    %47 = vector.shape_cast %46 : vector<8xf32> to vector<8x1xf32>
    %cst_16 = arith.constant 1.280000e+02 : f32
    %48 = vector.broadcast %cst_16 : f32 to vector<8x1xf32>
    %49 = arith.divf %47, %48 : vector<8x1xf32>
    %50 = vector.broadcast %40 : vector<8x1xf32> to vector<8x128xf32>
    %51 = arith.subf %34, %50 : vector<8x128xf32>
    %cst_17 = arith.constant 9.99999974E-6 : f32
    %52 = vector.broadcast %cst_17 : f32 to vector<8x1xf32>
    %53 = arith.addf %49, %52 : vector<8x1xf32>
    %54 = math.rsqrt %53 : vector<8x1xf32>
    %55 = vector.broadcast %54 : vector<8x1xf32> to vector<8x128xf32>
    %56 = arith.mulf %51, %55 : vector<8x128xf32>
    %57 = vector.broadcast %35 : vector<1x128xf32> to vector<8x128xf32>
    %58 = arith.mulf %56, %57 : vector<8x128xf32>
    %59 = vector.broadcast %36 : vector<1x128xf32> to vector<8x128xf32>
    %60 = arith.addf %58, %59 : vector<8x128xf32>
    %c0_18 = arith.constant 0 : index
    %c0_19 = arith.constant 0 : index
    %c0_20 = arith.constant 0 : index
    %61 = vector.load %arg2[%c0_18, %c0_19, %c0_20] : memref<1x1x8xf32, #tpu.memory_space<vmem>>, vector<1x1x8xf32>
    %62 = vector.shape_cast %61 : vector<1x1x8xf32> to vector<1x8xf32>
    %cst_21 = arith.constant 1.000000e+00 : f32
    %63 = vector.broadcast %cst_21 : f32 to vector<1x8xf32>
    %64 = arith.subf %62, %63 : vector<1x8xf32>
    %cst_22 = arith.constant 1.000000e+09 : f32
    %65 = vector.broadcast %cst_22 : f32 to vector<1x8xf32>
    %66 = arith.mulf %64, %65 : vector<1x8xf32>
    %c0_23 = arith.constant 0 : index
    %c0_24 = arith.constant 0 : index
    %c0_25 = arith.constant 0 : index
    %67 = vector.load %arg7[%c0_23, %c0_24, %c0_25] : memref<2x128x384xbf16, #tpu.memory_space<vmem>>, vector<1x128x384xbf16>
    %68 = vector.shape_cast %67 : vector<1x128x384xbf16> to vector<128x384xbf16>
    %c0_26 = arith.constant 0 : index
    %c0_27 = arith.constant 0 : index
    %c0_28 = arith.constant 0 : index
    %69 = vector.load %arg8[%c0_26, %c0_27, %c0_28] : memref<2x1x384xf32, #tpu.memory_space<vmem>>, vector<1x1x384xf32>
    %70 = vector.shape_cast %69 : vector<1x1x384xf32> to vector<1x384xf32>
    %71 = arith.truncf %60 : vector<8x128xf32> to vector<8x128xbf16>
    %cst_29 = arith.constant dense<0.000000e+00> : vector<8x384xf32>
    %72 = tpu.matmul %71, %68, %cst_29 {dimension_numbers = #tpu.dot_dimension_numbers<[1], [0], [0], [1], [0, 0, 1, 1], [], []>} : vector<8x128xbf16>, vector<128x384xbf16>, vector<8x384xf32> -> vector<8x384xf32>
    %73 = vector.broadcast %70 : vector<1x384xf32> to vector<8x384xf32>
    %74 = arith.addf %72, %73 : vector<8x384xf32>
    %75 = vector.extract_strided_slice %74 {offsets = [0, 0], sizes = [8, 128], strides = [1, 1]} : vector<8x384xf32> to vector<8x128xf32>
    %76 = vector.extract_strided_slice %74 {offsets = [0, 128], sizes = [8, 128], strides = [1, 1]} : vector<8x384xf32> to vector<8x128xf32>
    %77 = vector.extract_strided_slice %74 {offsets = [0, 256], sizes = [8, 128], strides = [1, 1]} : vector<8x384xf32> to vector<8x128xf32>
    %78 = vector.extract_strided_slice %75 {offsets = [0, 0], sizes = [8, 32], strides = [1, 1]} : vector<8x128xf32> to vector<8x32xf32>
    %79 = arith.truncf %78 : vector<8x32xf32> to vector<8x32xbf16>
    %80 = vector.extract_strided_slice %76 {offsets = [0, 0], sizes = [8, 32], strides = [1, 1]} : vector<8x128xf32> to vector<8x32xf32>
    %81 = arith.truncf %80 : vector<8x32xf32> to vector<8x32xbf16>
    %82 = vector.extract_strided_slice %77 {offsets = [0, 0], sizes = [8, 32], strides = [1, 1]} : vector<8x128xf32> to vector<8x32xf32>
    %83 = arith.truncf %82 : vector<8x32xf32> to vector<8x32xbf16>
    %cst_30 = arith.constant dense<0.000000e+00> : vector<8x8xf32>
    %84 = tpu.matmul %79, %81, %cst_30 {dimension_numbers = #tpu.dot_dimension_numbers<[1], [1], [0], [0], [0, 0, 1, 0], [], []>} : vector<8x32xbf16>, vector<8x32xbf16>, vector<8x8xf32> -> vector<8x8xf32>
    %cst_31 = arith.constant 0.176776692 : f32
    %85 = vector.broadcast %cst_31 : f32 to vector<8x8xf32>
    %86 = arith.mulf %84, %85 : vector<8x8xf32>
    %87 = vector.broadcast %66 : vector<1x8xf32> to vector<8x8xf32>
    %88 = arith.addf %86, %87 : vector<8x8xf32>
    %cst_32 = arith.constant dense<0xFF800000> : vector<8xf32>
    %89 = vector.multi_reduction <maximumf>, %88, %cst_32 [1] : vector<8x8xf32> to vector<8xf32>
    %90 = vector.shape_cast %89 : vector<8xf32> to vector<8x1xf32>
    %91 = vector.broadcast %90 : vector<8x1xf32> to vector<8x8xf32>
    %92 = arith.subf %88, %91 : vector<8x8xf32>
    %93 = math.exp %92 : vector<8x8xf32>
    %cst_33 = arith.constant dense<0.000000e+00> : vector<8xf32>
    %94 = vector.multi_reduction <add>, %93, %cst_33 [1] : vector<8x8xf32> to vector<8xf32>
    %95 = vector.shape_cast %94 : vector<8xf32> to vector<8x1xf32>
    %96 = tpu.reciprocal %95 {approx = true} : vector<8x1xf32> -> vector<8x1xf32>
    %97 = vector.broadcast %96 : vector<8x1xf32> to vector<8x8xf32>
    %98 = arith.mulf %93, %97 : vector<8x8xf32>
    %99 = arith.truncf %98 : vector<8x8xf32> to vector<8x8xbf16>
    %cst_34 = arith.constant dense<0.000000e+00> : vector<8x32xf32>
    %100 = tpu.matmul %99, %83, %cst_34 {dimension_numbers = #tpu.dot_dimension_numbers<[1], [0], [0], [1], [0, 0, 1, 1], [], []>} : vector<8x8xbf16>, vector<8x32xbf16>, vector<8x32xf32> -> vector<8x32xf32>
    %101 = vector.extract_strided_slice %75 {offsets = [0, 32], sizes = [8, 32], strides = [1, 1]} : vector<8x128xf32> to vector<8x32xf32>
    %102 = arith.truncf %101 : vector<8x32xf32> to vector<8x32xbf16>
    %103 = vector.extract_strided_slice %76 {offsets = [0, 32], sizes = [8, 32], strides = [1, 1]} : vector<8x128xf32> to vector<8x32xf32>
    %104 = arith.truncf %103 : vector<8x32xf32> to vector<8x32xbf16>
    %105 = vector.extract_strided_slice %77 {offsets = [0, 32], sizes = [8, 32], strides = [1, 1]} : vector<8x128xf32> to vector<8x32xf32>
    %106 = arith.truncf %105 : vector<8x32xf32> to vector<8x32xbf16>
    %cst_35 = arith.constant dense<0.000000e+00> : vector<8x8xf32>
    %107 = tpu.matmul %102, %104, %cst_35 {dimension_numbers = #tpu.dot_dimension_numbers<[1], [1], [0], [0], [0, 0, 1, 0], [], []>} : vector<8x32xbf16>, vector<8x32xbf16>, vector<8x8xf32> -> vector<8x8xf32>
    %cst_36 = arith.constant 0.176776692 : f32
    %108 = vector.broadcast %cst_36 : f32 to vector<8x8xf32>
    %109 = arith.mulf %107, %108 : vector<8x8xf32>
    %110 = vector.broadcast %66 : vector<1x8xf32> to vector<8x8xf32>
    %111 = arith.addf %109, %110 : vector<8x8xf32>
    %cst_37 = arith.constant dense<0xFF800000> : vector<8xf32>
    %112 = vector.multi_reduction <maximumf>, %111, %cst_37 [1] : vector<8x8xf32> to vector<8xf32>
    %113 = vector.shape_cast %112 : vector<8xf32> to vector<8x1xf32>
    %114 = vector.broadcast %113 : vector<8x1xf32> to vector<8x8xf32>
    %115 = arith.subf %111, %114 : vector<8x8xf32>
    %116 = math.exp %115 : vector<8x8xf32>
    %cst_38 = arith.constant dense<0.000000e+00> : vector<8xf32>
    %117 = vector.multi_reduction <add>, %116, %cst_38 [1] : vector<8x8xf32> to vector<8xf32>
    %118 = vector.shape_cast %117 : vector<8xf32> to vector<8x1xf32>
    %119 = tpu.reciprocal %118 {approx = true} : vector<8x1xf32> -> vector<8x1xf32>
    %120 = vector.broadcast %119 : vector<8x1xf32> to vector<8x8xf32>
    %121 = arith.mulf %116, %120 : vector<8x8xf32>
    %122 = arith.truncf %121 : vector<8x8xf32> to vector<8x8xbf16>
    %cst_39 = arith.constant dense<0.000000e+00> : vector<8x32xf32>
    %123 = tpu.matmul %122, %106, %cst_39 {dimension_numbers = #tpu.dot_dimension_numbers<[1], [0], [0], [1], [0, 0, 1, 1], [], []>} : vector<8x8xbf16>, vector<8x32xbf16>, vector<8x32xf32> -> vector<8x32xf32>
    %124 = vector.extract_strided_slice %75 {offsets = [0, 64], sizes = [8, 32], strides = [1, 1]} : vector<8x128xf32> to vector<8x32xf32>
    %125 = arith.truncf %124 : vector<8x32xf32> to vector<8x32xbf16>
    %126 = vector.extract_strided_slice %76 {offsets = [0, 64], sizes = [8, 32], strides = [1, 1]} : vector<8x128xf32> to vector<8x32xf32>
    %127 = arith.truncf %126 : vector<8x32xf32> to vector<8x32xbf16>
    %128 = vector.extract_strided_slice %77 {offsets = [0, 64], sizes = [8, 32], strides = [1, 1]} : vector<8x128xf32> to vector<8x32xf32>
    %129 = arith.truncf %128 : vector<8x32xf32> to vector<8x32xbf16>
    %cst_40 = arith.constant dense<0.000000e+00> : vector<8x8xf32>
    %130 = tpu.matmul %125, %127, %cst_40 {dimension_numbers = #tpu.dot_dimension_numbers<[1], [1], [0], [0], [0, 0, 1, 0], [], []>} : vector<8x32xbf16>, vector<8x32xbf16>, vector<8x8xf32> -> vector<8x8xf32>
    %cst_41 = arith.constant 0.176776692 : f32
    %131 = vector.broadcast %cst_41 : f32 to vector<8x8xf32>
    %132 = arith.mulf %130, %131 : vector<8x8xf32>
    %133 = vector.broadcast %66 : vector<1x8xf32> to vector<8x8xf32>
    %134 = arith.addf %132, %133 : vector<8x8xf32>
    %cst_42 = arith.constant dense<0xFF800000> : vector<8xf32>
    %135 = vector.multi_reduction <maximumf>, %134, %cst_42 [1] : vector<8x8xf32> to vector<8xf32>
    %136 = vector.shape_cast %135 : vector<8xf32> to vector<8x1xf32>
    %137 = vector.broadcast %136 : vector<8x1xf32> to vector<8x8xf32>
    %138 = arith.subf %134, %137 : vector<8x8xf32>
    %139 = math.exp %138 : vector<8x8xf32>
    %cst_43 = arith.constant dense<0.000000e+00> : vector<8xf32>
    %140 = vector.multi_reduction <add>, %139, %cst_43 [1] : vector<8x8xf32> to vector<8xf32>
    %141 = vector.shape_cast %140 : vector<8xf32> to vector<8x1xf32>
    %142 = tpu.reciprocal %141 {approx = true} : vector<8x1xf32> -> vector<8x1xf32>
    %143 = vector.broadcast %142 : vector<8x1xf32> to vector<8x8xf32>
    %144 = arith.mulf %139, %143 : vector<8x8xf32>
    %145 = arith.truncf %144 : vector<8x8xf32> to vector<8x8xbf16>
    %cst_44 = arith.constant dense<0.000000e+00> : vector<8x32xf32>
    %146 = tpu.matmul %145, %129, %cst_44 {dimension_numbers = #tpu.dot_dimension_numbers<[1], [0], [0], [1], [0, 0, 1, 1], [], []>} : vector<8x8xbf16>, vector<8x32xbf16>, vector<8x32xf32> -> vector<8x32xf32>
    %147 = vector.extract_strided_slice %75 {offsets = [0, 96], sizes = [8, 32], strides = [1, 1]} : vector<8x128xf32> to vector<8x32xf32>
    %148 = arith.truncf %147 : vector<8x32xf32> to vector<8x32xbf16>
    %149 = vector.extract_strided_slice %76 {offsets = [0, 96], sizes = [8, 32], strides = [1, 1]} : vector<8x128xf32> to vector<8x32xf32>
    %150 = arith.truncf %149 : vector<8x32xf32> to vector<8x32xbf16>
    %151 = vector.extract_strided_slice %77 {offsets = [0, 96], sizes = [8, 32], strides = [1, 1]} : vector<8x128xf32> to vector<8x32xf32>
    %152 = arith.truncf %151 : vector<8x32xf32> to vector<8x32xbf16>
    %cst_45 = arith.constant dense<0.000000e+00> : vector<8x8xf32>
    %153 = tpu.matmul %148, %150, %cst_45 {dimension_numbers = #tpu.dot_dimension_numbers<[1], [1], [0], [0], [0, 0, 1, 0], [], []>} : vector<8x32xbf16>, vector<8x32xbf16>, vector<8x8xf32> -> vector<8x8xf32>
    %cst_46 = arith.constant 0.176776692 : f32
    %154 = vector.broadcast %cst_46 : f32 to vector<8x8xf32>
    %155 = arith.mulf %153, %154 : vector<8x8xf32>
    %156 = vector.broadcast %66 : vector<1x8xf32> to vector<8x8xf32>
    %157 = arith.addf %155, %156 : vector<8x8xf32>
    %cst_47 = arith.constant dense<0xFF800000> : vector<8xf32>
    %158 = vector.multi_reduction <maximumf>, %157, %cst_47 [1] : vector<8x8xf32> to vector<8xf32>
    %159 = vector.shape_cast %158 : vector<8xf32> to vector<8x1xf32>
    %160 = vector.broadcast %159 : vector<8x1xf32> to vector<8x8xf32>
    %161 = arith.subf %157, %160 : vector<8x8xf32>
    %162 = math.exp %161 : vector<8x8xf32>
    %cst_48 = arith.constant dense<0.000000e+00> : vector<8xf32>
    %163 = vector.multi_reduction <add>, %162, %cst_48 [1] : vector<8x8xf32> to vector<8xf32>
    %164 = vector.shape_cast %163 : vector<8xf32> to vector<8x1xf32>
    %165 = tpu.reciprocal %164 {approx = true} : vector<8x1xf32> -> vector<8x1xf32>
    %166 = vector.broadcast %165 : vector<8x1xf32> to vector<8x8xf32>
    %167 = arith.mulf %162, %166 : vector<8x8xf32>
    %168 = arith.truncf %167 : vector<8x8xf32> to vector<8x8xbf16>
    %cst_49 = arith.constant dense<0.000000e+00> : vector<8x32xf32>
    %169 = tpu.matmul %168, %152, %cst_49 {dimension_numbers = #tpu.dot_dimension_numbers<[1], [0], [0], [1], [0, 0, 1, 1], [], []>} : vector<8x8xbf16>, vector<8x32xbf16>, vector<8x32xf32> -> vector<8x32xf32>
    %170 = tpu.concatenate %100, %123, %146, %169 in 1 : vector<8x32xf32>, vector<8x32xf32>, vector<8x32xf32>, vector<8x32xf32> -> vector<8x128xf32>
    %c0_50 = arith.constant 0 : index
    %c0_51 = arith.constant 0 : index
    %c0_52 = arith.constant 0 : index
    %171 = vector.load %arg9[%c0_50, %c0_51, %c0_52] : memref<2x128x128xbf16, #tpu.memory_space<vmem>>, vector<1x128x128xbf16>
    %172 = vector.shape_cast %171 : vector<1x128x128xbf16> to vector<128x128xbf16>
    %c0_53 = arith.constant 0 : index
    %c0_54 = arith.constant 0 : index
    %c0_55 = arith.constant 0 : index
    %173 = vector.load %arg10[%c0_53, %c0_54, %c0_55] : memref<2x1x128xf32, #tpu.memory_space<vmem>>, vector<1x1x128xf32>
    %174 = vector.shape_cast %173 : vector<1x1x128xf32> to vector<1x128xf32>
    %175 = arith.truncf %170 : vector<8x128xf32> to vector<8x128xbf16>
    %cst_56 = arith.constant dense<0.000000e+00> : vector<8x128xf32>
    %176 = tpu.matmul %175, %172, %cst_56 {dimension_numbers = #tpu.dot_dimension_numbers<[1], [0], [0], [1], [0, 0, 1, 1], [], []>} : vector<8x128xbf16>, vector<128x128xbf16>, vector<8x128xf32> -> vector<8x128xf32>
    %177 = vector.broadcast %174 : vector<1x128xf32> to vector<8x128xf32>
    %178 = arith.addf %176, %177 : vector<8x128xf32>
    %179 = arith.addf %178, %60 : vector<8x128xf32>
    %c0_57 = arith.constant 0 : index
    %c0_58 = arith.constant 0 : index
    %c0_59 = arith.constant 0 : index
    %180 = vector.load %arg11[%c0_57, %c0_58, %c0_59] : memref<2x1x128xf32, #tpu.memory_space<vmem>>, vector<1x1x128xf32>
    %181 = vector.shape_cast %180 : vector<1x1x128xf32> to vector<1x128xf32>
    %c0_60 = arith.constant 0 : index
    %c0_61 = arith.constant 0 : index
    %c0_62 = arith.constant 0 : index
    %182 = vector.load %arg12[%c0_60, %c0_61, %c0_62] : memref<2x1x128xf32, #tpu.memory_space<vmem>>, vector<1x1x128xf32>
    %183 = vector.shape_cast %182 : vector<1x1x128xf32> to vector<1x128xf32>
    %cst_63 = arith.constant dense<0.000000e+00> : vector<8xf32>
    %184 = vector.multi_reduction <add>, %179, %cst_63 [1] : vector<8x128xf32> to vector<8xf32>
    %185 = vector.shape_cast %184 : vector<8xf32> to vector<8x1xf32>
    %cst_64 = arith.constant 1.280000e+02 : f32
    %186 = vector.broadcast %cst_64 : f32 to vector<8x1xf32>
    %187 = arith.divf %185, %186 : vector<8x1xf32>
    %188 = vector.broadcast %187 : vector<8x1xf32> to vector<8x128xf32>
    %189 = arith.subf %179, %188 : vector<8x128xf32>
    %190 = vector.broadcast %187 : vector<8x1xf32> to vector<8x128xf32>
    %191 = arith.subf %179, %190 : vector<8x128xf32>
    %192 = arith.mulf %189, %191 : vector<8x128xf32>
    %cst_65 = arith.constant dense<0.000000e+00> : vector<8xf32>
    %193 = vector.multi_reduction <add>, %192, %cst_65 [1] : vector<8x128xf32> to vector<8xf32>
    %194 = vector.shape_cast %193 : vector<8xf32> to vector<8x1xf32>
    %cst_66 = arith.constant 1.280000e+02 : f32
    %195 = vector.broadcast %cst_66 : f32 to vector<8x1xf32>
    %196 = arith.divf %194, %195 : vector<8x1xf32>
    %197 = vector.broadcast %187 : vector<8x1xf32> to vector<8x128xf32>
    %198 = arith.subf %179, %197 : vector<8x128xf32>
    %cst_67 = arith.constant 9.99999974E-6 : f32
    %199 = vector.broadcast %cst_67 : f32 to vector<8x1xf32>
    %200 = arith.addf %196, %199 : vector<8x1xf32>
    %201 = math.rsqrt %200 : vector<8x1xf32>
    %202 = vector.broadcast %201 : vector<8x1xf32> to vector<8x128xf32>
    %203 = arith.mulf %198, %202 : vector<8x128xf32>
    %204 = vector.broadcast %181 : vector<1x128xf32> to vector<8x128xf32>
    %205 = arith.mulf %203, %204 : vector<8x128xf32>
    %206 = vector.broadcast %183 : vector<1x128xf32> to vector<8x128xf32>
    %207 = arith.addf %205, %206 : vector<8x128xf32>
    %c0_68 = arith.constant 0 : index
    %c0_69 = arith.constant 0 : index
    %c0_70 = arith.constant 0 : index
    %208 = vector.load %arg13[%c0_68, %c0_69, %c0_70] : memref<2x128x256xbf16, #tpu.memory_space<vmem>>, vector<1x128x256xbf16>
    %209 = vector.shape_cast %208 : vector<1x128x256xbf16> to vector<128x256xbf16>
    %c0_71 = arith.constant 0 : index
    %c0_72 = arith.constant 0 : index
    %c0_73 = arith.constant 0 : index
    %210 = vector.load %arg14[%c0_71, %c0_72, %c0_73] : memref<2x1x256xf32, #tpu.memory_space<vmem>>, vector<1x1x256xf32>
    %211 = vector.shape_cast %210 : vector<1x1x256xf32> to vector<1x256xf32>
    %212 = arith.truncf %207 : vector<8x128xf32> to vector<8x128xbf16>
    %cst_74 = arith.constant dense<0.000000e+00> : vector<8x256xf32>
    %213 = tpu.matmul %212, %209, %cst_74 {dimension_numbers = #tpu.dot_dimension_numbers<[1], [0], [0], [1], [0, 0, 1, 1], [], []>} : vector<8x128xbf16>, vector<128x256xbf16>, vector<8x256xf32> -> vector<8x256xf32>
    %214 = vector.broadcast %211 : vector<1x256xf32> to vector<8x256xf32>
    %215 = arith.addf %213, %214 : vector<8x256xf32>
    %216 = arith.mulf %215, %215 : vector<8x256xf32>
    %217 = arith.mulf %215, %216 : vector<8x256xf32>
    %cst_75 = arith.constant 4.471500e-02 : f32
    %218 = vector.broadcast %cst_75 : f32 to vector<8x256xf32>
    %219 = arith.mulf %218, %217 : vector<8x256xf32>
    %220 = arith.addf %215, %219 : vector<8x256xf32>
    %cst_76 = arith.constant 0.797884583 : f32
    %221 = vector.broadcast %cst_76 : f32 to vector<8x256xf32>
    %222 = arith.mulf %221, %220 : vector<8x256xf32>
    %223 = math.tanh %222 : vector<8x256xf32>
    %cst_77 = arith.constant 1.000000e+00 : f32
    %224 = vector.broadcast %cst_77 : f32 to vector<8x256xf32>
    %225 = arith.addf %224, %223 : vector<8x256xf32>
    %cst_78 = arith.constant 5.000000e-01 : f32
    %226 = vector.broadcast %cst_78 : f32 to vector<8x256xf32>
    %227 = arith.mulf %226, %225 : vector<8x256xf32>
    %228 = arith.mulf %215, %227 : vector<8x256xf32>
    %c0_79 = arith.constant 0 : index
    %c0_80 = arith.constant 0 : index
    %c0_81 = arith.constant 0 : index
    %229 = vector.load %arg15[%c0_79, %c0_80, %c0_81] : memref<2x256x128xbf16, #tpu.memory_space<vmem>>, vector<1x256x128xbf16>
    %230 = vector.shape_cast %229 : vector<1x256x128xbf16> to vector<256x128xbf16>
    %c0_82 = arith.constant 0 : index
    %c0_83 = arith.constant 0 : index
    %c0_84 = arith.constant 0 : index
    %231 = vector.load %arg16[%c0_82, %c0_83, %c0_84] : memref<2x1x128xf32, #tpu.memory_space<vmem>>, vector<1x1x128xf32>
    %232 = vector.shape_cast %231 : vector<1x1x128xf32> to vector<1x128xf32>
    %233 = arith.truncf %228 : vector<8x256xf32> to vector<8x256xbf16>
    %cst_85 = arith.constant dense<0.000000e+00> : vector<8x128xf32>
    %234 = tpu.matmul %233, %230, %cst_85 {dimension_numbers = #tpu.dot_dimension_numbers<[1], [0], [0], [1], [0, 0, 1, 1], [], []>} : vector<8x256xbf16>, vector<256x128xbf16>, vector<8x128xf32> -> vector<8x128xf32>
    %235 = vector.broadcast %232 : vector<1x128xf32> to vector<8x128xf32>
    %236 = arith.addf %234, %235 : vector<8x128xf32>
    %237 = arith.addf %236, %207 : vector<8x128xf32>
    %c0_86 = arith.constant 0 : index
    %c0_87 = arith.constant 0 : index
    %c0_88 = arith.constant 0 : index
    %238 = vector.load %arg17[%c0_86, %c0_87, %c0_88] : memref<2x1x128xf32, #tpu.memory_space<vmem>>, vector<1x1x128xf32>
    %239 = vector.shape_cast %238 : vector<1x1x128xf32> to vector<1x128xf32>
    %c0_89 = arith.constant 0 : index
    %c0_90 = arith.constant 0 : index
    %c0_91 = arith.constant 0 : index
    %240 = vector.load %arg18[%c0_89, %c0_90, %c0_91] : memref<2x1x128xf32, #tpu.memory_space<vmem>>, vector<1x1x128xf32>
    %241 = vector.shape_cast %240 : vector<1x1x128xf32> to vector<1x128xf32>
    %cst_92 = arith.constant dense<0.000000e+00> : vector<8xf32>
    %242 = vector.multi_reduction <add>, %237, %cst_92 [1] : vector<8x128xf32> to vector<8xf32>
    %243 = vector.shape_cast %242 : vector<8xf32> to vector<8x1xf32>
    %cst_93 = arith.constant 1.280000e+02 : f32
    %244 = vector.broadcast %cst_93 : f32 to vector<8x1xf32>
    %245 = arith.divf %243, %244 : vector<8x1xf32>
    %246 = vector.broadcast %245 : vector<8x1xf32> to vector<8x128xf32>
    %247 = arith.subf %237, %246 : vector<8x128xf32>
    %248 = vector.broadcast %245 : vector<8x1xf32> to vector<8x128xf32>
    %249 = arith.subf %237, %248 : vector<8x128xf32>
    %250 = arith.mulf %247, %249 : vector<8x128xf32>
    %cst_94 = arith.constant dense<0.000000e+00> : vector<8xf32>
    %251 = vector.multi_reduction <add>, %250, %cst_94 [1] : vector<8x128xf32> to vector<8xf32>
    %252 = vector.shape_cast %251 : vector<8xf32> to vector<8x1xf32>
    %cst_95 = arith.constant 1.280000e+02 : f32
    %253 = vector.broadcast %cst_95 : f32 to vector<8x1xf32>
    %254 = arith.divf %252, %253 : vector<8x1xf32>
    %255 = vector.broadcast %245 : vector<8x1xf32> to vector<8x128xf32>
    %256 = arith.subf %237, %255 : vector<8x128xf32>
    %cst_96 = arith.constant 9.99999974E-6 : f32
    %257 = vector.broadcast %cst_96 : f32 to vector<8x1xf32>
    %258 = arith.addf %254, %257 : vector<8x1xf32>
    %259 = math.rsqrt %258 : vector<8x1xf32>
    %260 = vector.broadcast %259 : vector<8x1xf32> to vector<8x128xf32>
    %261 = arith.mulf %256, %260 : vector<8x128xf32>
    %262 = vector.broadcast %239 : vector<1x128xf32> to vector<8x128xf32>
    %263 = arith.mulf %261, %262 : vector<8x128xf32>
    %264 = vector.broadcast %241 : vector<1x128xf32> to vector<8x128xf32>
    %265 = arith.addf %263, %264 : vector<8x128xf32>
    %c1_97 = arith.constant 1 : index
    %c0_98 = arith.constant 0 : index
    %c0_99 = arith.constant 0 : index
    %266 = vector.load %arg7[%c1_97, %c0_98, %c0_99] : memref<2x128x384xbf16, #tpu.memory_space<vmem>>, vector<1x128x384xbf16>
    %267 = vector.shape_cast %266 : vector<1x128x384xbf16> to vector<128x384xbf16>
    %c1_100 = arith.constant 1 : index
    %c0_101 = arith.constant 0 : index
    %c0_102 = arith.constant 0 : index
    %268 = vector.load %arg8[%c1_100, %c0_101, %c0_102] : memref<2x1x384xf32, #tpu.memory_space<vmem>>, vector<1x1x384xf32>
    %269 = vector.shape_cast %268 : vector<1x1x384xf32> to vector<1x384xf32>
    %270 = arith.truncf %265 : vector<8x128xf32> to vector<8x128xbf16>
    %cst_103 = arith.constant dense<0.000000e+00> : vector<8x384xf32>
    %271 = tpu.matmul %270, %267, %cst_103 {dimension_numbers = #tpu.dot_dimension_numbers<[1], [0], [0], [1], [0, 0, 1, 1], [], []>} : vector<8x128xbf16>, vector<128x384xbf16>, vector<8x384xf32> -> vector<8x384xf32>
    %272 = vector.broadcast %269 : vector<1x384xf32> to vector<8x384xf32>
    %273 = arith.addf %271, %272 : vector<8x384xf32>
    %274 = vector.extract_strided_slice %273 {offsets = [0, 0], sizes = [8, 128], strides = [1, 1]} : vector<8x384xf32> to vector<8x128xf32>
    %275 = vector.extract_strided_slice %273 {offsets = [0, 128], sizes = [8, 128], strides = [1, 1]} : vector<8x384xf32> to vector<8x128xf32>
    %276 = vector.extract_strided_slice %273 {offsets = [0, 256], sizes = [8, 128], strides = [1, 1]} : vector<8x384xf32> to vector<8x128xf32>
    %277 = vector.extract_strided_slice %274 {offsets = [0, 0], sizes = [8, 32], strides = [1, 1]} : vector<8x128xf32> to vector<8x32xf32>
    %278 = arith.truncf %277 : vector<8x32xf32> to vector<8x32xbf16>
    %279 = vector.extract_strided_slice %275 {offsets = [0, 0], sizes = [8, 32], strides = [1, 1]} : vector<8x128xf32> to vector<8x32xf32>
    %280 = arith.truncf %279 : vector<8x32xf32> to vector<8x32xbf16>
    %281 = vector.extract_strided_slice %276 {offsets = [0, 0], sizes = [8, 32], strides = [1, 1]} : vector<8x128xf32> to vector<8x32xf32>
    %282 = arith.truncf %281 : vector<8x32xf32> to vector<8x32xbf16>
    %cst_104 = arith.constant dense<0.000000e+00> : vector<8x8xf32>
    %283 = tpu.matmul %278, %280, %cst_104 {dimension_numbers = #tpu.dot_dimension_numbers<[1], [1], [0], [0], [0, 0, 1, 0], [], []>} : vector<8x32xbf16>, vector<8x32xbf16>, vector<8x8xf32> -> vector<8x8xf32>
    %cst_105 = arith.constant 0.176776692 : f32
    %284 = vector.broadcast %cst_105 : f32 to vector<8x8xf32>
    %285 = arith.mulf %283, %284 : vector<8x8xf32>
    %286 = vector.broadcast %66 : vector<1x8xf32> to vector<8x8xf32>
    %287 = arith.addf %285, %286 : vector<8x8xf32>
    %cst_106 = arith.constant dense<0xFF800000> : vector<8xf32>
    %288 = vector.multi_reduction <maximumf>, %287, %cst_106 [1] : vector<8x8xf32> to vector<8xf32>
    %289 = vector.shape_cast %288 : vector<8xf32> to vector<8x1xf32>
    %290 = vector.broadcast %289 : vector<8x1xf32> to vector<8x8xf32>
    %291 = arith.subf %287, %290 : vector<8x8xf32>
    %292 = math.exp %291 : vector<8x8xf32>
    %cst_107 = arith.constant dense<0.000000e+00> : vector<8xf32>
    %293 = vector.multi_reduction <add>, %292, %cst_107 [1] : vector<8x8xf32> to vector<8xf32>
    %294 = vector.shape_cast %293 : vector<8xf32> to vector<8x1xf32>
    %295 = tpu.reciprocal %294 {approx = true} : vector<8x1xf32> -> vector<8x1xf32>
    %296 = vector.broadcast %295 : vector<8x1xf32> to vector<8x8xf32>
    %297 = arith.mulf %292, %296 : vector<8x8xf32>
    %298 = arith.truncf %297 : vector<8x8xf32> to vector<8x8xbf16>
    %cst_108 = arith.constant dense<0.000000e+00> : vector<8x32xf32>
    %299 = tpu.matmul %298, %282, %cst_108 {dimension_numbers = #tpu.dot_dimension_numbers<[1], [0], [0], [1], [0, 0, 1, 1], [], []>} : vector<8x8xbf16>, vector<8x32xbf16>, vector<8x32xf32> -> vector<8x32xf32>
    %300 = vector.extract_strided_slice %274 {offsets = [0, 32], sizes = [8, 32], strides = [1, 1]} : vector<8x128xf32> to vector<8x32xf32>
    %301 = arith.truncf %300 : vector<8x32xf32> to vector<8x32xbf16>
    %302 = vector.extract_strided_slice %275 {offsets = [0, 32], sizes = [8, 32], strides = [1, 1]} : vector<8x128xf32> to vector<8x32xf32>
    %303 = arith.truncf %302 : vector<8x32xf32> to vector<8x32xbf16>
    %304 = vector.extract_strided_slice %276 {offsets = [0, 32], sizes = [8, 32], strides = [1, 1]} : vector<8x128xf32> to vector<8x32xf32>
    %305 = arith.truncf %304 : vector<8x32xf32> to vector<8x32xbf16>
    %cst_109 = arith.constant dense<0.000000e+00> : vector<8x8xf32>
    %306 = tpu.matmul %301, %303, %cst_109 {dimension_numbers = #tpu.dot_dimension_numbers<[1], [1], [0], [0], [0, 0, 1, 0], [], []>} : vector<8x32xbf16>, vector<8x32xbf16>, vector<8x8xf32> -> vector<8x8xf32>
    %cst_110 = arith.constant 0.176776692 : f32
    %307 = vector.broadcast %cst_110 : f32 to vector<8x8xf32>
    %308 = arith.mulf %306, %307 : vector<8x8xf32>
    %309 = vector.broadcast %66 : vector<1x8xf32> to vector<8x8xf32>
    %310 = arith.addf %308, %309 : vector<8x8xf32>
    %cst_111 = arith.constant dense<0xFF800000> : vector<8xf32>
    %311 = vector.multi_reduction <maximumf>, %310, %cst_111 [1] : vector<8x8xf32> to vector<8xf32>
    %312 = vector.shape_cast %311 : vector<8xf32> to vector<8x1xf32>
    %313 = vector.broadcast %312 : vector<8x1xf32> to vector<8x8xf32>
    %314 = arith.subf %310, %313 : vector<8x8xf32>
    %315 = math.exp %314 : vector<8x8xf32>
    %cst_112 = arith.constant dense<0.000000e+00> : vector<8xf32>
    %316 = vector.multi_reduction <add>, %315, %cst_112 [1] : vector<8x8xf32> to vector<8xf32>
    %317 = vector.shape_cast %316 : vector<8xf32> to vector<8x1xf32>
    %318 = tpu.reciprocal %317 {approx = true} : vector<8x1xf32> -> vector<8x1xf32>
    %319 = vector.broadcast %318 : vector<8x1xf32> to vector<8x8xf32>
    %320 = arith.mulf %315, %319 : vector<8x8xf32>
    %321 = arith.truncf %320 : vector<8x8xf32> to vector<8x8xbf16>
    %cst_113 = arith.constant dense<0.000000e+00> : vector<8x32xf32>
    %322 = tpu.matmul %321, %305, %cst_113 {dimension_numbers = #tpu.dot_dimension_numbers<[1], [0], [0], [1], [0, 0, 1, 1], [], []>} : vector<8x8xbf16>, vector<8x32xbf16>, vector<8x32xf32> -> vector<8x32xf32>
    %323 = vector.extract_strided_slice %274 {offsets = [0, 64], sizes = [8, 32], strides = [1, 1]} : vector<8x128xf32> to vector<8x32xf32>
    %324 = arith.truncf %323 : vector<8x32xf32> to vector<8x32xbf16>
    %325 = vector.extract_strided_slice %275 {offsets = [0, 64], sizes = [8, 32], strides = [1, 1]} : vector<8x128xf32> to vector<8x32xf32>
    %326 = arith.truncf %325 : vector<8x32xf32> to vector<8x32xbf16>
    %327 = vector.extract_strided_slice %276 {offsets = [0, 64], sizes = [8, 32], strides = [1, 1]} : vector<8x128xf32> to vector<8x32xf32>
    %328 = arith.truncf %327 : vector<8x32xf32> to vector<8x32xbf16>
    %cst_114 = arith.constant dense<0.000000e+00> : vector<8x8xf32>
    %329 = tpu.matmul %324, %326, %cst_114 {dimension_numbers = #tpu.dot_dimension_numbers<[1], [1], [0], [0], [0, 0, 1, 0], [], []>} : vector<8x32xbf16>, vector<8x32xbf16>, vector<8x8xf32> -> vector<8x8xf32>
    %cst_115 = arith.constant 0.176776692 : f32
    %330 = vector.broadcast %cst_115 : f32 to vector<8x8xf32>
    %331 = arith.mulf %329, %330 : vector<8x8xf32>
    %332 = vector.broadcast %66 : vector<1x8xf32> to vector<8x8xf32>
    %333 = arith.addf %331, %332 : vector<8x8xf32>
    %cst_116 = arith.constant dense<0xFF800000> : vector<8xf32>
    %334 = vector.multi_reduction <maximumf>, %333, %cst_116 [1] : vector<8x8xf32> to vector<8xf32>
    %335 = vector.shape_cast %334 : vector<8xf32> to vector<8x1xf32>
    %336 = vector.broadcast %335 : vector<8x1xf32> to vector<8x8xf32>
    %337 = arith.subf %333, %336 : vector<8x8xf32>
    %338 = math.exp %337 : vector<8x8xf32>
    %cst_117 = arith.constant dense<0.000000e+00> : vector<8xf32>
    %339 = vector.multi_reduction <add>, %338, %cst_117 [1] : vector<8x8xf32> to vector<8xf32>
    %340 = vector.shape_cast %339 : vector<8xf32> to vector<8x1xf32>
    %341 = tpu.reciprocal %340 {approx = true} : vector<8x1xf32> -> vector<8x1xf32>
    %342 = vector.broadcast %341 : vector<8x1xf32> to vector<8x8xf32>
    %343 = arith.mulf %338, %342 : vector<8x8xf32>
    %344 = arith.truncf %343 : vector<8x8xf32> to vector<8x8xbf16>
    %cst_118 = arith.constant dense<0.000000e+00> : vector<8x32xf32>
    %345 = tpu.matmul %344, %328, %cst_118 {dimension_numbers = #tpu.dot_dimension_numbers<[1], [0], [0], [1], [0, 0, 1, 1], [], []>} : vector<8x8xbf16>, vector<8x32xbf16>, vector<8x32xf32> -> vector<8x32xf32>
    %346 = vector.extract_strided_slice %274 {offsets = [0, 96], sizes = [8, 32], strides = [1, 1]} : vector<8x128xf32> to vector<8x32xf32>
    %347 = arith.truncf %346 : vector<8x32xf32> to vector<8x32xbf16>
    %348 = vector.extract_strided_slice %275 {offsets = [0, 96], sizes = [8, 32], strides = [1, 1]} : vector<8x128xf32> to vector<8x32xf32>
    %349 = arith.truncf %348 : vector<8x32xf32> to vector<8x32xbf16>
    %350 = vector.extract_strided_slice %276 {offsets = [0, 96], sizes = [8, 32], strides = [1, 1]} : vector<8x128xf32> to vector<8x32xf32>
    %351 = arith.truncf %350 : vector<8x32xf32> to vector<8x32xbf16>
    %cst_119 = arith.constant dense<0.000000e+00> : vector<8x8xf32>
    %352 = tpu.matmul %347, %349, %cst_119 {dimension_numbers = #tpu.dot_dimension_numbers<[1], [1], [0], [0], [0, 0, 1, 0], [], []>} : vector<8x32xbf16>, vector<8x32xbf16>, vector<8x8xf32> -> vector<8x8xf32>
    %cst_120 = arith.constant 0.176776692 : f32
    %353 = vector.broadcast %cst_120 : f32 to vector<8x8xf32>
    %354 = arith.mulf %352, %353 : vector<8x8xf32>
    %355 = vector.broadcast %66 : vector<1x8xf32> to vector<8x8xf32>
    %356 = arith.addf %354, %355 : vector<8x8xf32>
    %cst_121 = arith.constant dense<0xFF800000> : vector<8xf32>
    %357 = vector.multi_reduction <maximumf>, %356, %cst_121 [1] : vector<8x8xf32> to vector<8xf32>
    %358 = vector.shape_cast %357 : vector<8xf32> to vector<8x1xf32>
    %359 = vector.broadcast %358 : vector<8x1xf32> to vector<8x8xf32>
    %360 = arith.subf %356, %359 : vector<8x8xf32>
    %361 = math.exp %360 : vector<8x8xf32>
    %cst_122 = arith.constant dense<0.000000e+00> : vector<8xf32>
    %362 = vector.multi_reduction <add>, %361, %cst_122 [1] : vector<8x8xf32> to vector<8xf32>
    %363 = vector.shape_cast %362 : vector<8xf32> to vector<8x1xf32>
    %364 = tpu.reciprocal %363 {approx = true} : vector<8x1xf32> -> vector<8x1xf32>
    %365 = vector.broadcast %364 : vector<8x1xf32> to vector<8x8xf32>
    %366 = arith.mulf %361, %365 : vector<8x8xf32>
    %367 = arith.truncf %366 : vector<8x8xf32> to vector<8x8xbf16>
    %cst_123 = arith.constant dense<0.000000e+00> : vector<8x32xf32>
    %368 = tpu.matmul %367, %351, %cst_123 {dimension_numbers = #tpu.dot_dimension_numbers<[1], [0], [0], [1], [0, 0, 1, 1], [], []>} : vector<8x8xbf16>, vector<8x32xbf16>, vector<8x32xf32> -> vector<8x32xf32>
    %369 = tpu.concatenate %299, %322, %345, %368 in 1 : vector<8x32xf32>, vector<8x32xf32>, vector<8x32xf32>, vector<8x32xf32> -> vector<8x128xf32>
    %c1_124 = arith.constant 1 : index
    %c0_125 = arith.constant 0 : index
    %c0_126 = arith.constant 0 : index
    %370 = vector.load %arg9[%c1_124, %c0_125, %c0_126] : memref<2x128x128xbf16, #tpu.memory_space<vmem>>, vector<1x128x128xbf16>
    %371 = vector.shape_cast %370 : vector<1x128x128xbf16> to vector<128x128xbf16>
    %c1_127 = arith.constant 1 : index
    %c0_128 = arith.constant 0 : index
    %c0_129 = arith.constant 0 : index
    %372 = vector.load %arg10[%c1_127, %c0_128, %c0_129] : memref<2x1x128xf32, #tpu.memory_space<vmem>>, vector<1x1x128xf32>
    %373 = vector.shape_cast %372 : vector<1x1x128xf32> to vector<1x128xf32>
    %374 = arith.truncf %369 : vector<8x128xf32> to vector<8x128xbf16>
    %cst_130 = arith.constant dense<0.000000e+00> : vector<8x128xf32>
    %375 = tpu.matmul %374, %371, %cst_130 {dimension_numbers = #tpu.dot_dimension_numbers<[1], [0], [0], [1], [0, 0, 1, 1], [], []>} : vector<8x128xbf16>, vector<128x128xbf16>, vector<8x128xf32> -> vector<8x128xf32>
    %376 = vector.broadcast %373 : vector<1x128xf32> to vector<8x128xf32>
    %377 = arith.addf %375, %376 : vector<8x128xf32>
    %378 = arith.addf %377, %265 : vector<8x128xf32>
    %c1_131 = arith.constant 1 : index
    %c0_132 = arith.constant 0 : index
    %c0_133 = arith.constant 0 : index
    %379 = vector.load %arg11[%c1_131, %c0_132, %c0_133] : memref<2x1x128xf32, #tpu.memory_space<vmem>>, vector<1x1x128xf32>
    %380 = vector.shape_cast %379 : vector<1x1x128xf32> to vector<1x128xf32>
    %c1_134 = arith.constant 1 : index
    %c0_135 = arith.constant 0 : index
    %c0_136 = arith.constant 0 : index
    %381 = vector.load %arg12[%c1_134, %c0_135, %c0_136] : memref<2x1x128xf32, #tpu.memory_space<vmem>>, vector<1x1x128xf32>
    %382 = vector.shape_cast %381 : vector<1x1x128xf32> to vector<1x128xf32>
    %cst_137 = arith.constant dense<0.000000e+00> : vector<8xf32>
    %383 = vector.multi_reduction <add>, %378, %cst_137 [1] : vector<8x128xf32> to vector<8xf32>
    %384 = vector.shape_cast %383 : vector<8xf32> to vector<8x1xf32>
    %cst_138 = arith.constant 1.280000e+02 : f32
    %385 = vector.broadcast %cst_138 : f32 to vector<8x1xf32>
    %386 = arith.divf %384, %385 : vector<8x1xf32>
    %387 = vector.broadcast %386 : vector<8x1xf32> to vector<8x128xf32>
    %388 = arith.subf %378, %387 : vector<8x128xf32>
    %389 = vector.broadcast %386 : vector<8x1xf32> to vector<8x128xf32>
    %390 = arith.subf %378, %389 : vector<8x128xf32>
    %391 = arith.mulf %388, %390 : vector<8x128xf32>
    %cst_139 = arith.constant dense<0.000000e+00> : vector<8xf32>
    %392 = vector.multi_reduction <add>, %391, %cst_139 [1] : vector<8x128xf32> to vector<8xf32>
    %393 = vector.shape_cast %392 : vector<8xf32> to vector<8x1xf32>
    %cst_140 = arith.constant 1.280000e+02 : f32
    %394 = vector.broadcast %cst_140 : f32 to vector<8x1xf32>
    %395 = arith.divf %393, %394 : vector<8x1xf32>
    %396 = vector.broadcast %386 : vector<8x1xf32> to vector<8x128xf32>
    %397 = arith.subf %378, %396 : vector<8x128xf32>
    %cst_141 = arith.constant 9.99999974E-6 : f32
    %398 = vector.broadcast %cst_141 : f32 to vector<8x1xf32>
    %399 = arith.addf %395, %398 : vector<8x1xf32>
    %400 = math.rsqrt %399 : vector<8x1xf32>
    %401 = vector.broadcast %400 : vector<8x1xf32> to vector<8x128xf32>
    %402 = arith.mulf %397, %401 : vector<8x128xf32>
    %403 = vector.broadcast %380 : vector<1x128xf32> to vector<8x128xf32>
    %404 = arith.mulf %402, %403 : vector<8x128xf32>
    %405 = vector.broadcast %382 : vector<1x128xf32> to vector<8x128xf32>
    %406 = arith.addf %404, %405 : vector<8x128xf32>
    %c1_142 = arith.constant 1 : index
    %c0_143 = arith.constant 0 : index
    %c0_144 = arith.constant 0 : index
    %407 = vector.load %arg13[%c1_142, %c0_143, %c0_144] : memref<2x128x256xbf16, #tpu.memory_space<vmem>>, vector<1x128x256xbf16>
    %408 = vector.shape_cast %407 : vector<1x128x256xbf16> to vector<128x256xbf16>
    %c1_145 = arith.constant 1 : index
    %c0_146 = arith.constant 0 : index
    %c0_147 = arith.constant 0 : index
    %409 = vector.load %arg14[%c1_145, %c0_146, %c0_147] : memref<2x1x256xf32, #tpu.memory_space<vmem>>, vector<1x1x256xf32>
    %410 = vector.shape_cast %409 : vector<1x1x256xf32> to vector<1x256xf32>
    %411 = arith.truncf %406 : vector<8x128xf32> to vector<8x128xbf16>
    %cst_148 = arith.constant dense<0.000000e+00> : vector<8x256xf32>
    %412 = tpu.matmul %411, %408, %cst_148 {dimension_numbers = #tpu.dot_dimension_numbers<[1], [0], [0], [1], [0, 0, 1, 1], [], []>} : vector<8x128xbf16>, vector<128x256xbf16>, vector<8x256xf32> -> vector<8x256xf32>
    %413 = vector.broadcast %410 : vector<1x256xf32> to vector<8x256xf32>
    %414 = arith.addf %412, %413 : vector<8x256xf32>
    %415 = arith.mulf %414, %414 : vector<8x256xf32>
    %416 = arith.mulf %414, %415 : vector<8x256xf32>
    %cst_149 = arith.constant 4.471500e-02 : f32
    %417 = vector.broadcast %cst_149 : f32 to vector<8x256xf32>
    %418 = arith.mulf %417, %416 : vector<8x256xf32>
    %419 = arith.addf %414, %418 : vector<8x256xf32>
    %cst_150 = arith.constant 0.797884583 : f32
    %420 = vector.broadcast %cst_150 : f32 to vector<8x256xf32>
    %421 = arith.mulf %420, %419 : vector<8x256xf32>
    %422 = math.tanh %421 : vector<8x256xf32>
    %cst_151 = arith.constant 1.000000e+00 : f32
    %423 = vector.broadcast %cst_151 : f32 to vector<8x256xf32>
    %424 = arith.addf %423, %422 : vector<8x256xf32>
    %cst_152 = arith.constant 5.000000e-01 : f32
    %425 = vector.broadcast %cst_152 : f32 to vector<8x256xf32>
    %426 = arith.mulf %425, %424 : vector<8x256xf32>
    %427 = arith.mulf %414, %426 : vector<8x256xf32>
    %c1_153 = arith.constant 1 : index
    %c0_154 = arith.constant 0 : index
    %c0_155 = arith.constant 0 : index
    %428 = vector.load %arg15[%c1_153, %c0_154, %c0_155] : memref<2x256x128xbf16, #tpu.memory_space<vmem>>, vector<1x256x128xbf16>
    %429 = vector.shape_cast %428 : vector<1x256x128xbf16> to vector<256x128xbf16>
    %c1_156 = arith.constant 1 : index
    %c0_157 = arith.constant 0 : index
    %c0_158 = arith.constant 0 : index
    %430 = vector.load %arg16[%c1_156, %c0_157, %c0_158] : memref<2x1x128xf32, #tpu.memory_space<vmem>>, vector<1x1x128xf32>
    %431 = vector.shape_cast %430 : vector<1x1x128xf32> to vector<1x128xf32>
    %432 = arith.truncf %427 : vector<8x256xf32> to vector<8x256xbf16>
    %cst_159 = arith.constant dense<0.000000e+00> : vector<8x128xf32>
    %433 = tpu.matmul %432, %429, %cst_159 {dimension_numbers = #tpu.dot_dimension_numbers<[1], [0], [0], [1], [0, 0, 1, 1], [], []>} : vector<8x256xbf16>, vector<256x128xbf16>, vector<8x128xf32> -> vector<8x128xf32>
    %434 = vector.broadcast %431 : vector<1x128xf32> to vector<8x128xf32>
    %435 = arith.addf %433, %434 : vector<8x128xf32>
    %436 = arith.addf %435, %406 : vector<8x128xf32>
    %c1_160 = arith.constant 1 : index
    %c0_161 = arith.constant 0 : index
    %c0_162 = arith.constant 0 : index
    %437 = vector.load %arg17[%c1_160, %c0_161, %c0_162] : memref<2x1x128xf32, #tpu.memory_space<vmem>>, vector<1x1x128xf32>
    %438 = vector.shape_cast %437 : vector<1x1x128xf32> to vector<1x128xf32>
    %c1_163 = arith.constant 1 : index
    %c0_164 = arith.constant 0 : index
    %c0_165 = arith.constant 0 : index
    %439 = vector.load %arg18[%c1_163, %c0_164, %c0_165] : memref<2x1x128xf32, #tpu.memory_space<vmem>>, vector<1x1x128xf32>
    %440 = vector.shape_cast %439 : vector<1x1x128xf32> to vector<1x128xf32>
    %cst_166 = arith.constant dense<0.000000e+00> : vector<8xf32>
    %441 = vector.multi_reduction <add>, %436, %cst_166 [1] : vector<8x128xf32> to vector<8xf32>
    %442 = vector.shape_cast %441 : vector<8xf32> to vector<8x1xf32>
    %cst_167 = arith.constant 1.280000e+02 : f32
    %443 = vector.broadcast %cst_167 : f32 to vector<8x1xf32>
    %444 = arith.divf %442, %443 : vector<8x1xf32>
    %445 = vector.broadcast %444 : vector<8x1xf32> to vector<8x128xf32>
    %446 = arith.subf %436, %445 : vector<8x128xf32>
    %447 = vector.broadcast %444 : vector<8x1xf32> to vector<8x128xf32>
    %448 = arith.subf %436, %447 : vector<8x128xf32>
    %449 = arith.mulf %446, %448 : vector<8x128xf32>
    %cst_168 = arith.constant dense<0.000000e+00> : vector<8xf32>
    %450 = vector.multi_reduction <add>, %449, %cst_168 [1] : vector<8x128xf32> to vector<8xf32>
    %451 = vector.shape_cast %450 : vector<8xf32> to vector<8x1xf32>
    %cst_169 = arith.constant 1.280000e+02 : f32
    %452 = vector.broadcast %cst_169 : f32 to vector<8x1xf32>
    %453 = arith.divf %451, %452 : vector<8x1xf32>
    %454 = vector.broadcast %444 : vector<8x1xf32> to vector<8x128xf32>
    %455 = arith.subf %436, %454 : vector<8x128xf32>
    %cst_170 = arith.constant 9.99999974E-6 : f32
    %456 = vector.broadcast %cst_170 : f32 to vector<8x1xf32>
    %457 = arith.addf %453, %456 : vector<8x1xf32>
    %458 = math.rsqrt %457 : vector<8x1xf32>
    %459 = vector.broadcast %458 : vector<8x1xf32> to vector<8x128xf32>
    %460 = arith.mulf %455, %459 : vector<8x128xf32>
    %461 = vector.broadcast %438 : vector<1x128xf32> to vector<8x128xf32>
    %462 = arith.mulf %460, %461 : vector<8x128xf32>
    %463 = vector.broadcast %440 : vector<1x128xf32> to vector<8x128xf32>
    %464 = arith.addf %462, %463 : vector<8x128xf32>
    %cst_171 = arith.constant dense<0.000000e+00> : vector<1x128xf32>
    %465 = tpu.matmul %62, %464, %cst_171 {dimension_numbers = #tpu.dot_dimension_numbers<[1], [0], [0], [1], [0, 0, 1, 1], [], []>} : vector<1x8xf32>, vector<8x128xf32>, vector<1x128xf32> -> vector<1x128xf32>
    %466 = vector.shape_cast %62 : vector<1x8xf32> to vector<1x1x8xf32>
    %cst_172 = arith.constant dense<0.000000e+00> : vector<1xf32>
    %467 = vector.multi_reduction <add>, %466, %cst_172 [1, 2] : vector<1x1x8xf32> to vector<1xf32>
    %468 = vector.shape_cast %467 : vector<1xf32> to vector<1x1x1xf32>
    %469 = vector.extract %468[0, 0, 0] : f32 from vector<1x1x1xf32>
    %cst_173 = arith.constant 9.99999971E-10 : f32
    %470 = arith.maximumf %469, %cst_173 : f32
    %471 = vector.broadcast %470 : f32 to vector<1x128xf32>
    %472 = arith.divf %465, %471 : vector<1x128xf32>
    %473 = arith.mulf %472, %472 : vector<1x128xf32>
    %474 = vector.shape_cast %473 : vector<1x128xf32> to vector<1x1x128xf32>
    %cst_174 = arith.constant dense<0.000000e+00> : vector<1xf32>
    %475 = vector.multi_reduction <add>, %474, %cst_174 [1, 2] : vector<1x1x128xf32> to vector<1xf32>
    %476 = vector.shape_cast %475 : vector<1xf32> to vector<1x1x1xf32>
    %477 = vector.extract %476[0, 0, 0] : f32 from vector<1x1x1xf32>
    %478 = math.sqrt %477 : f32
    %cst_175 = arith.constant 9.99999996E-13 : f32
    %479 = arith.maximumf %478, %cst_175 : f32
    %480 = vector.broadcast %479 : f32 to vector<1x128xf32>
    %481 = arith.divf %472, %480 : vector<1x128xf32>
    %c0_176 = arith.constant 0 : index
    %c0_177 = arith.constant 0 : index
    %c0_178 = arith.constant 0 : index
    %482 = vector.load %arg19[%c0_176, %c0_177, %c0_178] : memref<1x1x128xf32, #tpu.memory_space<vmem>>, vector<1x1x128xf32>
    %483 = vector.shape_cast %482 : vector<1x1x128xf32> to vector<1x128xf32>
    %484 = vector.shape_cast %481 : vector<1x128xf32> to vector<1x1x128xf32>
    tpu.vector_store %arg19[%c0_176, %c0_177, %c0_178], %484 {strides = array<i32>} : memref<1x1x128xf32, #tpu.memory_space<vmem>>, vector<1x1x128xf32>,
    return
  }
  func.func @transform_0(%arg0: i32, %arg1: memref<2x8xi32, #tpu.memory_space<smem>>) -> (i32, i32, i32) {
    %c0_i32 = arith.constant 0 : i32
    %c0_i32_0 = arith.constant 0 : i32
    %c0_i32_1 = arith.constant 0 : i32
    return %arg0, %c0_i32, %c0_i32_0 : i32, i32, i32
  }
  func.func @transform_1(%arg0: i32, %arg1: memref<2x8xi32, #tpu.memory_space<smem>>) -> (i32, i32) {
    %c0_i32 = arith.constant 0 : i32
    %c0_i32_0 = arith.constant 0 : i32
    %c0_i32_1 = arith.constant 0 : i32
    return %c0_i32, %c0_i32_0 : i32, i32
  }
  func.func @transform_2(%arg0: i32, %arg1: memref<2x8xi32, #tpu.memory_space<smem>>) -> (i32, i32) {
    %c0_i32 = arith.constant 0 : i32
    %c0_i32_0 = arith.constant 0 : i32
    %c0_i32_1 = arith.constant 0 : i32
    return %c0_i32, %c0_i32_0 : i32, i32
  }
  func.func @transform_3(%arg0: i32, %arg1: memref<2x8xi32, #tpu.memory_space<smem>>) -> (i32, i32) {
    %c0_i32 = arith.constant 0 : i32
    %c0_i32_0 = arith.constant 0 : i32
    %c0_i32_1 = arith.constant 0 : i32
    return %c0_i32, %c0_i32_0 : i32, i32
  }
  func.func @transform_4(%arg0: i32, %arg1: memref<2x8xi32, #tpu.memory_space<smem>>) -> (i32, i32) {
    %c0_i32 = arith.constant 0 : i32
    %c0_i32_0 = arith.constant 0 : i32
    %c0_i32_1 = arith.constant 0 : i32
    return %c0_i32, %c0_i32_0 : i32, i32
  }
  func.func @transform_5(%arg0: i32, %arg1: memref<2x8xi32, #tpu.memory_space<smem>>) -> (i32, i32, i32) {
    %c0_i32 = arith.constant 0 : i32
    %c0_i32_0 = arith.constant 0 : i32
    %c0_i32_1 = arith.constant 0 : i32
    %c0_i32_2 = arith.constant 0 : i32
    return %c0_i32, %c0_i32_0, %c0_i32_1 : i32, i32, i32
  }
  func.func @transform_6(%arg0: i32, %arg1: memref<2x8xi32, #tpu.memory_space<smem>>) -> (i32, i32, i32) {
    %c0_i32 = arith.constant 0 : i32
    %c0_i32_0 = arith.constant 0 : i32
    %c0_i32_1 = arith.constant 0 : i32
    %c0_i32_2 = arith.constant 0 : i32
    return %c0_i32, %c0_i32_0, %c0_i32_1 : i32, i32, i32
  }
  func.func @transform_7(%arg0: i32, %arg1: memref<2x8xi32, #tpu.memory_space<smem>>) -> (i32, i32, i32) {
    %c0_i32 = arith.constant 0 : i32
    %c0_i32_0 = arith.constant 0 : i32
    %c0_i32_1 = arith.constant 0 : i32
    %c0_i32_2 = arith.constant 0 : i32
    return %c0_i32, %c0_i32_0, %c0_i32_1 : i32, i32, i32
  }
  func.func @transform_8(%arg0: i32, %arg1: memref<2x8xi32, #tpu.memory_space<smem>>) -> (i32, i32, i32) {
    %c0_i32 = arith.constant 0 : i32
    %c0_i32_0 = arith.constant 0 : i32
    %c0_i32_1 = arith.constant 0 : i32
    %c0_i32_2 = arith.constant 0 : i32
    return %c0_i32, %c0_i32_0, %c0_i32_1 : i32, i32, i32
  }
  func.func @transform_9(%arg0: i32, %arg1: memref<2x8xi32, #tpu.memory_space<smem>>) -> (i32, i32, i32) {
    %c0_i32 = arith.constant 0 : i32
    %c0_i32_0 = arith.constant 0 : i32
    %c0_i32_1 = arith.constant 0 : i32
    %c0_i32_2 = arith.constant 0 : i32
    return %c0_i32, %c0_i32_0, %c0_i32_1 : i32, i32, i32
  }
  func.func @transform_10(%arg0: i32, %arg1: memref<2x8xi32, #tpu.memory_space<smem>>) -> (i32, i32, i32) {
    %c0_i32 = arith.constant 0 : i32
    %c0_i32_0 = arith.constant 0 : i32
    %c0_i32_1 = arith.constant 0 : i32
    %c0_i32_2 = arith.constant 0 : i32
    return %c0_i32, %c0_i32_0, %c0_i32_1 : i32, i32, i32
  }
  func.func @transform_11(%arg0: i32, %arg1: memref<2x8xi32, #tpu.memory_space<smem>>) -> (i32, i32, i32) {
    %c0_i32 = arith.constant 0 : i32
    %c0_i32_0 = arith.constant 0 : i32
    %c0_i32_1 = arith.constant 0 : i32
    %c0_i32_2 = arith.constant 0 : i32
    return %c0_i32, %c0_i32_0, %c0_i32_1 : i32, i32, i32
  }
  func.func @transform_12(%arg0: i32, %arg1: memref<2x8xi32, #tpu.memory_space<smem>>) -> (i32, i32, i32) {
    %c0_i32 = arith.constant 0 : i32
    %c0_i32_0 = arith.constant 0 : i32
    %c0_i32_1 = arith.constant 0 : i32
    %c0_i32_2 = arith.constant 0 : i32
    return %c0_i32, %c0_i32_0, %c0_i32_1 : i32, i32, i32
  }
  func.func @transform_13(%arg0: i32, %arg1: memref<2x8xi32, #tpu.memory_space<smem>>) -> (i32, i32, i32) {
    %c0_i32 = arith.constant 0 : i32
    %c0_i32_0 = arith.constant 0 : i32
    %c0_i32_1 = arith.constant 0 : i32
    %c0_i32_2 = arith.constant 0 : i32
    return %c0_i32, %c0_i32_0, %c0_i32_1 : i32, i32, i32
  }
  func.func @transform_14(%arg0: i32, %arg1: memref<2x8xi32, #tpu.memory_space<smem>>) -> (i32, i32, i32) {
    %c0_i32 = arith.constant 0 : i32
    %c0_i32_0 = arith.constant 0 : i32
    %c0_i32_1 = arith.constant 0 : i32
    %c0_i32_2 = arith.constant 0 : i32
    return %c0_i32, %c0_i32_0, %c0_i32_1 : i32, i32, i32
  }
  func.func @transform_15(%arg0: i32, %arg1: memref<2x8xi32, #tpu.memory_space<smem>>) -> (i32, i32, i32) {
    %c0_i32 = arith.constant 0 : i32
    %c0_i32_0 = arith.constant 0 : i32
    %c0_i32_1 = arith.constant 0 : i32
    %c0_i32_2 = arith.constant 0 : i32
    return %c0_i32, %c0_i32_0, %c0_i32_1 : i32, i32, i32
  }
  func.func @transform_16(%arg0: i32, %arg1: memref<2x8xi32, #tpu.memory_space<smem>>) -> (i32, i32, i32) {
    %c0_i32 = arith.constant 0 : i32
    %c0_i32_0 = arith.constant 0 : i32
    %c0_i32_1 = arith.constant 0 : i32
    %c0_i32_2 = arith.constant 0 : i32
    return %c0_i32, %c0_i32_0, %c0_i32_1 : i32, i32, i32
  }
  func.func @transform_17(%arg0: i32, %arg1: memref<2x8xi32, #tpu.memory_space<smem>>) -> (i32, i32, i32) {
    %c0_i32 = arith.constant 0 : i32
    %c0_i32_0 = arith.constant 0 : i32
    %c0_i32_1 = arith.constant 0 : i32
    return %arg0, %c0_i32, %c0_i32_0 : i32, i32, i32
  }
}

</mosaic_0001>

<bundles_post_ra>
// kernel: sentence_transformer_forward.1
= control target key start
LH: loop header
LB: loop body
LE: loop exit
PB: predicated region body
PF: predicated region fallthrough
CT: control target
= control target key end

     0   :  { %s5425_s0 = inlined_call_operand.vmem [shape: s32[2,8], index: 0, kind: input, shape index: {}]   ;;  %s5426_s1 = inlined_call_operand.vmem [shape: f32[2,1,8], index: 1, kind: input, shape index: {}]   ;;  %s5427_s2 = inlined_call_operand.hbm [shape: f32[64,128], index: 2, kind: input, shape index: {}]   ;;  %s5428_s3 = inlined_call_operand.vmem [shape: f32[16,128], index: 3, kind: input, shape index: {}]   ;;  %s5429_s4 = inlined_call_operand.hbm [shape: f32[1,128], index: 4, kind: input, shape index: {}]   ;;  %s5430_s5 = inlined_call_operand.hbm [shape: f32[1,128], index: 5, kind: input, shape index: {}]   ;;  %s5431_s6 = inlined_call_operand.hbm [shape: bf16[2,128,384], index: 6, kind: input, shape index: {}]   ;;  %s5432_s7 = inlined_call_operand.vmem [shape: f32[2,1,384], index: 7, kind: input, shape index: {}]   ;;  %s5433_s8 = inlined_call_operand.hbm [shape: bf16[2,128,128], index: 8, kind: input, shape index: {}]   ;;  %s5434_s9 = inlined_call_operand.vmem [shape: f32[2,1,128], index: 9, kind: input, shape index: {}]   ;;  %s5435_s10 = inlined_call_operand.vmem [shape: f32[2,1,128], index: 10, kind: input, shape index: {}]   ;;  %s5436_s11 = inlined_call_operand.vmem [shape: f32[2,1,128], index: 11, kind: input, shape index: {}]   ;;  %s5437_s12 = inlined_call_operand.hbm [shape: bf16[2,128,256], index: 12, kind: input, shape index: {}]   ;;  %s5438_s13 = inlined_call_operand.vmem [shape: f32[2,1,256], index: 13, kind: input, shape index: {}]   ;;  %s5439_s14 = inlined_call_operand.hbm [shape: bf16[2,256,128], index: 14, kind: input, shape index: {}]   ;;  %s5440_s15 = inlined_call_operand.hbm [shape: f32[2,1,128], index: 15, kind: input, shape index: {}]   ;;  %s5441_s16 = inlined_call_operand.vmem [shape: f32[2,1,128], index: 16, kind: input, shape index: {}]   ;;  %s5442_s17 = inlined_call_operand.vmem [shape: f32[2,1,128], index: 17, kind: input, shape index: {}]   ;;  %s5443_s18 = inlined_call_operand.hbm [shape: f32[2,1,128], index: 18, kind: output, shape index: {}]  }
   0x1   :  { %5459 = sst [smem:[#allocation34_spill]] %s5425_s0 }
   0x2   :  { %5460 = sst [smem:[#allocation35_spill]] %s5426_s1  ;;  %s5466_s29 = sld [smem:[#allocation34_spill]] }
   0x3   :  { %5461 = sst [smem:[#allocation36_spill]] %s5427_s2 }
   0x4   :  { %5462 = sst [smem:[#allocation37_spill]] %s5429_s4 }
   0x5   :  { %5463 = sst [smem:[#allocation38_spill]] %s5431_s6 }
   0x6   :  { %5464 = sst [smem:[#allocation39_spill]] %s5436_s11 }
   0x7   :  { %5465 = sst [smem:[#allocation40_spill]] %s5443_s18 }
   0x8   :  { %s23_s11 = sshll.u32 %s5466_s29, 4  ;;  %s24_s11 = int_to_ptr.vmem [resolvable:$true] %s23_s11 }
   0x9   :  { %s4364_s30 = scalar_lea.vmem %s24_s11, 32  ;;  %p4369_p1 = scmp.lt.s32.totalorder %s24_s11, %s24_s11 }
   0xa   :  { %p4365_p0 = scmp.ne.s32.totalorder %s24_s11, %s4364_s30  ;;  %p4370_p2 = scmp.lt.s32.totalorder %s4364_s30, %s4364_s30 }
   0xc   :  { %p4371_p3 = por %p4370_p2, %p4369_p1 }
   0xe   :  { %p4372_p4 = pnand %p4371_p3, %p4365_p0 }
  0x10   :  { %4375 = shalt.err (!%p4372_p4)  }
  0x11   :  { %s4686_s0 = smov [#allocation3]  }
  0x12   :  { %26 = dma.vmem_to_smem %s24_s11, 32, %s4686_s0, [#allocation2] }
  0x13   :  { %4644 = dma.done.wait [#allocation2], 32 }
  0x14   :  { %4645 = vsyncadd [#allocation2], 4294967264 }
  0x15   :  { %28 = sfence }
  0x16   :  { %29 = vsyncpa [#allocation5], 0 }
  0x17   :  { %30 = vsyncpa [#allocation8], 0 }
  0x18   :  { %31 = vsyncpa [#allocation11], 0 }
  0x19   :  { %32 = vsyncpa [#allocation14], 0 }
  0x1a   :  { %33 = vsyncpa [#allocation17], 0 }
  0x1b   :  { %34 = vsyncpa [#allocation6], 0 }
  0x1c   :  { %36 = vsyncpa [#allocation6 + $0x1], 0  ;;  %s4810_s19 = smov 0   ;;  %s4812_s1 = smov 0  }
  0x1d   :  { %s4814_s20 = smov 0   ;;  %s4816_s21 = smov 0  }
  0x1e LB: > { %5467 = sst [smem:[#allocation26_spill]] %s4672_s19  ;;  %s4831_s11 = sadd.s32 4294967295, %s4684_s21   ;;  %s4684_s21 = sphi %s4816_s21, %s5504_s21   ;;  %s4680_s20 = sphi %s4814_s20, %s5507_s20   ;;  %s4676_s1 = sphi %s4812_s1, %s5506_s1   ;;  %s4672_s19 = sphi %s4810_s19, %s5505_s19  }
  0x1f   : > { %5468 = sst [smem:[#allocation27_spill]] %s4676_s1  ;;  %s3518_s22 = sadd.s32 4294967294, %s4684_s21  }
  0x20   : > { %5469 = sst [smem:[#allocation28_spill]] %s4680_s20  ;;  %s4835_s2 = sadd.s32 1, %s4684_s21  }
  0x21   : > { %5470 = sst [smem:[#allocation29_spill]] %s4684_s21  ;;  %s411_s23 = sadd.s32 1, %s4680_s20 }
  0x22   : > { %5471 = sst [smem:[#allocation30_spill]] %s4835_s2  ;;  %s408_s24 = ssub.s32 %s4684_s21, %s4835_s2 }
  0x23   : > { %p421_p5 = scmp.ne.s32.totalorder %s4680_s20, %s4676_s1  ;;  %p409_p6 = scmp.eq.s32.totalorder %s408_s24, 0 }
  0x24   : > { %p422_p7 = scmp.eq.s32.totalorder %s4831_s11, 1  ;;  %p427_p8 = scmp.ne.s32.totalorder %s4676_s1, %s4672_s19 }
  0x25   : > { %p428_p9 = scmp.eq.s32.totalorder %s3518_s22, 1  ;;  %p3519_p12 = scmp.ge.s32.totalorder %s4684_s21, 1 }
  0x26   : > { %s4846_s25 = scalar_select %p409_p6, %s4680_s20, %s411_s23  }
  0x27   : > { %p4848_p10 = por %p422_p7, %p421_p5  ;;  %p4852_p11 = por %p428_p9, %p427_p8 }
  0x28   : > { %5472 = sst [smem:[#allocation31_spill]] %s4846_s25  ;;  %p435_p13 = scmp.lt.s32.totalorder %s4684_s21, 3 }
  0x29   : > { %s5473_s26 = scalar_select %p4848_p10, 1, 0 }
  0x2a   : > { %s5475_s27 = scalar_select %p4852_p11, 1, 0 }
  0x2b   : > { %5474 = sst [smem:[#allocation32_spill]] %s5473_s26  ;;  %p5451_p0 = scmp.eq.s32.totalorder %s4831_s11, 0 }
  0x2c   : > { %5476 = sst [smem:[#allocation33_spill]] %s5475_s27  ;;  %p4859_p1 = pnand %p3519_p12, %p435_p13 }
  0x2d   : > { %s4687_s29 = smov [#allocation7]   ;;  %s4688_s0 = smov [#allocation10]  }
  0x2e   : > { %s5477_s28 = scalar_select %p4859_p1, 1, 0 }
  0x2f   : > { %s464_s30 = sshll.u32 %s4687_s29, 4  ;;  %p4044_p2 = pneg %p4859_p1  ;;  %s465_s30 = int_to_ptr.vmem [resolvable:$true] %s464_s30 }
  0x30   : > { %s485_s22 = sshll.u32 %s4688_s0, 4  ;;  %s5479_s4 = sld [smem:[#allocation37_spill]]  ;;  %s4871_s22 = int_to_ptr.vmem [resolvable:$true] %s485_s22 }
  0x31   : > { %p4867_p3 = pnand %p5451_p0, %p4044_p2 }
  0x33   : > { %p4881_p5 = pneg %p4867_p3 }
  0x36   : > { %s4376_s20 = scalar_lea.hbm %s5479_s4, 16 }
  0x37   : > { %p4377_p4 = scmp.ne.s32.totalorder %s5479_s4, %s4376_s20  ;;  %p4383_p8 = scmp.lt.u32.totalorder %s4376_s20, %s5479_s4 }
  0x39   : > { %p4379_p6 = pnand %p4881_p5, %p4377_p4 }
  0x3b   : > { %p4380_p7 = pneg %p4379_p6 }
  0x3d   : > { %p4385_p9 = pnand %p4383_p8, %p4380_p7 }
  0x3f   : > { %4388 = shalt.err (!%p4385_p9)
}
  0x40   : > { %s4389_s25 = scalar_lea.vmem %s465_s30, 16  ;;  %s4396_s2 = scalar_lea.vmem %s465_s30, 32 }
  0x41   : > { %p4390_p12 = scmp.ne.s32.totalorder %s465_s30, %s4389_s25  ;;  %p4397_p0 = scmp.lt.s32.totalorder %s465_s30, %s465_s30 }
  0x42   : > { %p4398_p11 = scmp.lt.s32.totalorder %s4396_s2, %s4389_s25 }
  0x43   : > { %p4392_p13 = pnand %p4390_p12, %p4881_p5 }
  0x44   : > { %p4399_p10 = por %p4398_p11, %p4397_p0 }
  0x45   : > { %p4393_p2 = pneg %p4392_p13 }
  0x47   : > { %p4400_p1 = pnand %p4399_p10, %p4393_p2 }
  0x49   : > { %4403 = shalt.err (!%p4400_p1)
}
  0x4a   : > { %4050 = dma.hbm_to_vmem [thread:$0]  (!%p4867_p3), %s5479_s4, 16, %s465_s30, [#allocation8]  }
  0x4b   : > { %s5481_s6 = sld [smem:[#allocation38_spill]] }
  0x51   : > { %s4404_s0 = scalar_lea.hbm %s5481_s6, 6144 }
  0x52   : > { %p4405_p4 = scmp.ne.s32.totalorder %s5481_s6, %s4404_s0  ;;  %p4411_p10 = scmp.lt.u32.totalorder %s4404_s0, %s5481_s6 }
  0x54   : > { %p4407_p6 = pnand %p4405_p4, %p4881_p5 }
  0x56   : > { %p4408_p11 = pneg %p4407_p6 }
  0x58   : > { %p4413_p0 = pnand %p4411_p10, %p4408_p11 }
  0x5a   : > { %4416 = shalt.err (!%p4413_p0)
}
  0x5b   : > { %s4417_s30 = scalar_lea.vmem %s4871_s22, 6144  ;;  %p4425_p9 = scmp.lt.s32.totalorder %s4871_s22, %s4871_s22 }
  0x5c   : > { %p4418_p1 = scmp.ne.s32.totalorder %s4871_s22, %s4417_s30  ;;  %p4426_p12 = scmp.lt.s32.totalorder %s4417_s30, %s4417_s30 }
  0x5e   : > { %p4420_p7 = pnand %p4418_p1, %p4881_p5  ;;  %p4427_p13 = por %p4426_p12, %p4425_p9 }
  0x60   : > { %p4421_p8 = pneg %p4420_p7 }
  0x62   : > { %p4428_p2 = pnand %p4427_p13, %p4421_p8 }
  0x64   : > { %4431 = shalt.err (!%p4428_p2)
}
  0x65   : > { %s4689_s18 = smov 192   ;;  %s4690_s21 = smov 12  }
  0x66   : > { %4056 = dma.hbm_to_vmem [thread:$0]  (!%p4867_p3), %s5481_s6, 6144, %s4871_s22, [#allocation11], %s4689_s18, %s4689_s18, %s4690_s21  }
  0x67   : > { %s4691_s19 = smov [#allocation13]   ;;  %s4692_s0 = smov [#allocation4]  }
  0x68   : > { %s523_s20 = sshll.u32 %s4691_s19, 4  ;;  %s447_s25 = sshll.u32 %s4692_s0, 4  ;;  %s524_s20 = int_to_ptr.vmem [resolvable:$true] %s523_s20  ;;  %s4920_s25 = int_to_ptr.vmem [resolvable:$true] %s447_s25 }
  0x69   : > { %s4432_s4 = scalar_lea.hbm %s5437_s12, 4096 }
  0x6a   : > { %p4433_p4 = scmp.ne.s32.totalorder %s5437_s12, %s4432_s4  ;;  %p4439_p10 = scmp.lt.u32.totalorder %s4432_s4, %s5437_s12 }
  0x6c   : > { %p4435_p6 = pnand %p4433_p4, %p4881_p5 }
  0x6e   : > { %p4436_p11 = pneg %p4435_p6 }
  0x70   : > { %p4441_p0 = pnand %p4439_p10, %p4436_p11 }
  0x72   : > { %4444 = shalt.err (!%p4441_p0)
}
  0x73   : > { %s4445_s18 = scalar_lea.vmem %s524_s20, 4096  ;;  %p4453_p9 = scmp.lt.s32.totalorder %s524_s20, %s524_s20 }
  0x74   : > { %p4446_p1 = scmp.ne.s32.totalorder %s524_s20, %s4445_s18  ;;  %p4454_p12 = scmp.lt.s32.totalorder %s4445_s18, %s4445_s18 }
  0x76   : > { %p4448_p7 = pnand %p4446_p1, %p4881_p5  ;;  %p4455_p13 = por %p4454_p12, %p4453_p9 }
  0x78   : > { %p4449_p8 = pneg %p4448_p7 }
  0x7a   : > { %p4456_p2 = pnand %p4455_p13, %p4449_p8 }
  0x7c   : > { %4459 = shalt.err (!%p4456_p2)
}
  0x7d   : > { %s4693_s1 = smov 128   ;;  %s4694_s26 = smov 8  }
  0x7e   : > { %4062 = dma.hbm_to_vmem [thread:$0]  (!%p4867_p3), %s5437_s12, 4096, %s524_s20, [#allocation14], %s4693_s1, %s4693_s1, %s4694_s26  }
  0x7f   : > { %s5482_s0 = sld [smem:[#allocation36_spill]] }
  0x85   : > { %s4460_s2 = scalar_lea.hbm %s5482_s0, 1024 }
  0x86   : > { %p4461_p4 = scmp.ne.s32.totalorder %s5482_s0, %s4460_s2  ;;  %p4467_p10 = scmp.lt.u32.totalorder %s4460_s2, %s5482_s0 }
  0x88   : > { %p4463_p6 = pnand %p4461_p4, %p4881_p5 }
  0x8a   : > { %p4464_p11 = pneg %p4463_p6 }
  0x8c   : > { %p4469_p0 = pnand %p4467_p10, %p4464_p11 }
  0x8e   : > { %4472 = shalt.err (!%p4469_p0)
}
  0x8f   : > { %s4473_s20 = scalar_lea.vmem %s4920_s25, 1024  ;;  %p4481_p9 = scmp.lt.s32.totalorder %s4920_s25, %s4920_s25 }
  0x90   : > { %p4474_p1 = scmp.ne.s32.totalorder %s4920_s25, %s4473_s20  ;;  %p4482_p12 = scmp.lt.s32.totalorder %s4473_s20, %s4473_s20 }
  0x92   : > { %p4476_p7 = pnand %p4474_p1, %p4881_p5  ;;  %p4483_p13 = por %p4482_p12, %p4481_p9 }
  0x94   : > { %p4477_p8 = pneg %p4476_p7 }
  0x96   : > { %p4484_p2 = pnand %p4483_p13, %p4477_p8 }
  0x98   : > { %4487 = shalt.err (!%p4484_p2)
}
  0x99   : > { %4047 = dma.hbm_to_vmem [thread:$0]  (!%p4867_p3), %s5482_s0, 1024, %s4920_s25, [#allocation5], %s4693_s1, %s4693_s1, %s4694_s26  }
  0x9a   : > { %s4695_s24 = smov [#allocation9]   ;;  %s4696_s2 = smov [#allocation12]  }
  0x9b   : > { %s475_s19 = sshll.u32 %s4695_s24, 4  ;;  %s501_s30 = sshll.u32 %s4696_s2, 4  ;;  %s476_s19 = int_to_ptr.vmem [resolvable:$true] %s475_s19  ;;  %s4963_s30 = int_to_ptr.vmem [resolvable:$true] %s501_s30 }
  0x9c   : > { %s4488_s18 = scalar_lea.hbm %s5430_s5, 16 }
  0x9d   : > { %p4489_p4 = scmp.ne.s32.totalorder %s5430_s5, %s4488_s18  ;;  %p4495_p10 = scmp.lt.u32.totalorder %s4488_s18, %s5430_s5 }
  0x9f   : > { %p4491_p6 = pnand %p4489_p4, %p4881_p5 }
  0xa1   : > { %p4492_p11 = pneg %p4491_p6 }
  0xa3   : > { %p4497_p0 = pnand %p4495_p10, %p4492_p11 }
  0xa5   : > { %4500 = shalt.err (!%p4497_p0)
}
  0xa6   : > { %s4501_s1 = scalar_lea.vmem %s476_s19, 16  ;;  %s4508_s26 = scalar_lea.vmem %s476_s19, 32 }
  0xa7   : > { %p4502_p1 = scmp.ne.s32.totalorder %s476_s19, %s4501_s1  ;;  %p4509_p9 = scmp.lt.s32.totalorder %s476_s19, %s476_s19 }
  0xa8   : > { %p4510_p12 = scmp.lt.s32.totalorder %s4508_s26, %s4501_s1 }
  0xa9   : > { %p4504_p7 = pnand %p4502_p1, %p4881_p5 }
  0xaa   : > { %p4511_p13 = por %p4510_p12, %p4509_p9 }
  0xab   : > { %p4505_p8 = pneg %p4504_p7 }
  0xad   : > { %p4512_p2 = pnand %p4511_p13, %p4505_p8 }
  0xaf   : > { %4515 = shalt.err (!%p4512_p2)
}
  0xb0   : > { %4053 = dma.hbm_to_vmem [thread:$0]  (!%p4867_p3), %s5430_s5, 16, %s476_s19, [#allocation8]  }
  0xb1   : > { %s4516_s27 = scalar_lea.hbm %s5433_s8, 2048 }
  0xb2   : > { %p4517_p4 = scmp.ne.s32.totalorder %s5433_s8, %s4516_s27  ;;  %p4523_p10 = scmp.lt.u32.totalorder %s4516_s27, %s5433_s8 }
  0xb4   : > { %p4519_p6 = pnand %p4517_p4, %p4881_p5 }
  0xb6   : > { %p4520_p11 = pneg %p4519_p6 }
  0xb8   : > { %p4525_p0 = pnand %p4523_p10, %p4520_p11 }
  0xba   : > { %4528 = shalt.err (!%p4525_p0)
}
  0xbb   : > { %s4529_s19 = scalar_lea.vmem %s4963_s30, 2048  ;;  %p4537_p9 = scmp.lt.s32.totalorder %s4963_s30, %s4963_s30 }
  0xbc   : > { %p4530_p1 = scmp.ne.s32.totalorder %s4963_s30, %s4529_s19  ;;  %p4538_p12 = scmp.lt.s32.totalorder %s4529_s19, %s4529_s19 }
  0xbe   : > { %p4532_p7 = pnand %p4530_p1, %p4881_p5  ;;  %p4539_p13 = por %p4538_p12, %p4537_p9 }
  0xc0   : > { %p4533_p8 = pneg %p4532_p7 }
  0xc2   : > { %p4540_p2 = pnand %p4539_p13, %p4533_p8 }
  0xc4   : > { %4543 = shalt.err (!%p4540_p2)
}
  0xc5   : > { %s4697_s25 = smov 64   ;;  %s4698_s1 = smov 4  }
  0xc6   : > { %4059 = dma.hbm_to_vmem [thread:$0]  (!%p4867_p3), %s5433_s8, 2048, %s4963_s30, [#allocation11], %s4697_s25, %s4697_s25, %s4698_s1  }
  0xc7   : > { %s4699_s4 = smov [#allocation15]   ;;  %s4700_s2 = smov [#allocation16]  }
  0xc8   : > { %s539_s24 = sshll.u32 %s4699_s4, 4  ;;  %s552_s27 = sshll.u32 %s4700_s2, 4  ;;  %s540_s24 = int_to_ptr.vmem [resolvable:$true] %s539_s24  ;;  %s5006_s27 = int_to_ptr.vmem [resolvable:$true] %s552_s27 }
  0xc9   : > { %s4544_s20 = scalar_lea.hbm %s5439_s14, 4096 }
  0xca   : > { %p4545_p4 = scmp.ne.s32.totalorder %s5439_s14, %s4544_s20  ;;  %p4551_p10 = scmp.lt.u32.totalorder %s4544_s20, %s5439_s14 }
  0xcc   : > { %p4547_p6 = pnand %p4545_p4, %p4881_p5 }
  0xce   : > { %p4548_p11 = pneg %p4547_p6 }
  0xd0   : > { %p4553_p0 = pnand %p4551_p10, %p4548_p11 }
  0xd2   : > { %4556 = shalt.err (!%p4553_p0)
}
  0xd3   : > { %s4557_s6 = scalar_lea.vmem %s540_s24, 4096  ;;  %p4565_p9 = scmp.lt.s32.totalorder %s540_s24, %s540_s24 }
  0xd4   : > { %p4558_p1 = scmp.ne.s32.totalorder %s540_s24, %s4557_s6  ;;  %p4566_p12 = scmp.lt.s32.totalorder %s4557_s6, %s4557_s6 }
  0xd6   : > { %p4560_p7 = pnand %p4558_p1, %p4881_p5  ;;  %p4567_p13 = por %p4566_p12, %p4565_p9 }
  0xd8   : > { %p4561_p8 = pneg %p4560_p7 }
  0xda   : > { %p4568_p2 = pnand %p4567_p13, %p4561_p8 }
  0xdc   : > { %4571 = shalt.err (!%p4568_p2)
}
  0xdd   : > { %4065 = dma.hbm_to_vmem [thread:$0]  (!%p4867_p3), %s5439_s14, 4096, %s540_s24, [#allocation14], %s4697_s25, %s4697_s25, %s4698_s1  }
  0xde   : > { %s4572_s20 = scalar_lea.hbm %s5440_s15, 32 }
  0xdf   : > { %p4573_p4 = scmp.ne.s32.totalorder %s5440_s15, %s4572_s20  ;;  %p4579_p10 = scmp.lt.u32.totalorder %s4572_s20, %s5440_s15 }
  0xe1   : > { %p4575_p6 = pnand %p4573_p4, %p4881_p5 }
  0xe3   : > { %p4576_p11 = pneg %p4575_p6 }
  0xe5   : > { %p4581_p0 = pnand %p4579_p10, %p4576_p11 }
  0xe7   : > { %4584 = shalt.err (!%p4581_p0)
}
  0xe8   : > { %s4585_s25 = scalar_lea.vmem %s5006_s27, 32  ;;  %p4593_p9 = scmp.lt.s32.totalorder %s5006_s27, %s5006_s27 }
  0xe9   : > { %p4586_p1 = scmp.ne.s32.totalorder %s5006_s27, %s4585_s25  ;;  %p4594_p12 = scmp.lt.s32.totalorder %s4585_s25, %s4585_s25 }
  0xeb   : > { %p4588_p7 = pnand %p4586_p1, %p4881_p5  ;;  %p4595_p13 = por %p4594_p12, %p4593_p9 }
  0xed   : > { %p4589_p8 = pneg %p4588_p7 }
  0xef   : > { %p4596_p2 = pnand %p4595_p13, %p4589_p8 }
  0xf1   : > { %4599 = shalt.err (!%p4596_p2)
}
  0xf2   : > { %s4701_s1 = smov 16   ;;  %s4702_s24 = smov 1  }
  0xf3   : > { %4068 = dma.hbm_to_vmem [thread:$0]  (!%p4867_p3), %s5440_s15, 32, %s5006_s27, [#allocation17], %s4701_s1, %s4701_s1, %s4702_s24  }
  0xf4   : > { %p5483_p4 = scmp.ne.s32.totalorder %s5477_s28, 0 }
  0xf5   : > { %p5484_p5 = scmp.eq.s32.totalorder (!%p5483_p4), %s4831_s11, 0 }
  0xf6   : > { %580 = sbr.rel (%p5483_p4) target bundleno = 7014 (0x1b66), region = 88 }
  0xfd   : > { %4647 = dma.done.wait (%p5484_p5), [#allocation5], 1024   ;;  %p5485_p6 = pmov %p5484_p5 }
  0xfe   : > { %p5486_p11 = pmov %p5484_p5 }
  0xff   : > { %4649 = vsyncadd (%p5485_p6), [#allocation5], 4294966272 }
 0x100   : > { %4651 = dma.done.wait (%p5486_p11), [#allocation8], 32   ;;  %p5487_p10 = pmov %p5484_p5 }
 0x101   : > { %p5488_p0 = pmov %p5484_p5 }
 0x102   : > { %4653 = vsyncadd (%p5487_p10), [#allocation8], 4294967264 }
 0x103   : > { %4655 = dma.done.wait (%p5488_p0), [#allocation11], 8192   ;;  %p5489_p3 = pmov %p5488_p0 }
 0x104   : > { %p5490_p1 = pmov %p5488_p0 }
 0x105   : > { %4657 = vsyncadd (%p5489_p3), [#allocation11], 4294959104 }
 0x106   : > { %4659 = dma.done.wait (%p5490_p1), [#allocation14], 8192   ;;  %p5491_p7 = pmov %p5488_p0 }
 0x107   : > { %p5492_p8 = pmov %p5488_p0 }
 0x108   : > { %4661 = vsyncadd (%p5491_p7), [#allocation14], 4294959104 }
 0x109   : > { %4663 = dma.done.wait (%p5492_p8), [#allocation17], 32   ;;  %p5493_p9 = pmov %p5488_p0 }
 0x10a   : > { %s3538_s28 = sshll.u32 %s4831_s11, 7  ;;  %vm714_vm0 = vcmask 1040384   ;;  %vm716_vm1 = vcmask 1041408   ;;  %vm718_vm2 = vcmask 1042432   ;;  %vm720_vm3 = vcmask 1043456   ;;  %v728_v17 = vld [vmem:[%s5428_s3] sm:$0xff] }
 0x10b   : > { %4665 = vsyncadd (%p5493_p9), [#allocation17], 4294967264  ;;  %s662_s23 = sld [smem:[#allocation3 + %s3538_s28]]  ;;  %s665_s29 = sadd.s32 1, %s3538_s28  ;;  %vm722_vm4 = vcmask 1044480   ;;  %vm724_vm5 = vcmask 1045504  }
 0x10c   : > { %s666_s27 = sld [smem:[#allocation3 + %s665_s29]]  ;;  %s669_s2 = sadd.s32 2, %s3538_s28  ;;  %vm726_vm6 = vcmask 1046528   ;;  %v4147_v24 = vld [vmem:[#allocation10 + $0x4] ss:$12 sps:$4 sm:$0xff]   ;;  %v4703_v26 = vmov 0.0  }
 0x10d   : > { %s670_s22 = sld [smem:[#allocation3 + %s669_s2]]  ;;  %s673_s18 = sadd.s32 3, %s3538_s28  ;;  %v4149_v25 = vld [vmem:[#allocation10] ss:$12 sps:$4 sm:$0xff]   ;;  %3823 = vmatprep.subr.bf16.mxu1 %v4703_v26  ;;  %v4150_v27 = vld [vmem:[#allocation10 + $0x8] ss:$12 sps:$4 sm:$0xff]   ;;  %939 = vmatprep.subr.bf16.mxu0 %v4147_v24 }
 0x10e   : > { %s674_s20 = sld [smem:[#allocation3 + %s673_s18]]  ;;  %s677_s21 = sadd.s32 4, %s3538_s28  ;;  %v4151_v28 = vld [vmem:[#allocation10 + $0x1c] ss:$12 sps:$4 sm:$0xff]   ;;  %v4153_v29 = vld [vmem:[#allocation10 + $0x18] ss:$12 sps:$4 sm:$0xff]   ;;  %940 = vmatpush1.bf16.msra.mxu0 %v4149_v25  ;;  %3824 = vmatpush3.bf16.msra.mxu1 %v4150_v27 }
 0x10f   : > { %s678_s19 = sld [smem:[#allocation3 + %s677_s21]]  ;;  %s681_s26 = sadd.s32 5, %s3538_s28  ;;  %v4154_v30 = vld [vmem:[#allocation10 + $0x20] ss:$12 sps:$4 sm:$0xff]   ;;  %941 = vmatprep.subr.bf16.mxu0 %v4151_v28  ;;  %3825 = vmatprep.subr.bf16.mxu1 %v4703_v26  ;;  %v4157_v36 = vld [vmem:[#allocation10 + $0x30] ss:$12 sps:$4 sm:$0xff]  }
 0x110   : > { %s682_s30 = sld [smem:[#allocation3 + %s681_s26]]  ;;  %s685_s25 = sadd.s32 6, %s3538_s28  ;;  %v4155_v31 = vld [vmem:[#allocation10 + $0x34] ss:$12 sps:$4 sm:$0xff]   ;;  %v4158_v37 = vld [vmem:[#allocation10 + $0x38] ss:$12 sps:$4 sm:$0xff]  }
 0x111   : > { %s686_s1 = sld [smem:[#allocation3 + %s685_s25]]  ;;  %s663_s24 = scalar_lea.vmem [#allocation4], %s662_s23  ;;  %v4159_v38 = vld [vmem:[#allocation10 + $0x4c] ss:$12 sps:$4 sm:$0xff]   ;;  %v4161_v39 = vld [vmem:[#allocation10 + $0x48] ss:$12 sps:$4 sm:$0xff]  }
 0x112   : > { %v664_v0 = vld [vmem:[%s663_s24] sm:$0x1]  ;;  %s689_s6 = sadd.s32 7, %s3538_s28  ;;  %s667_s4 = scalar_lea.vmem [#allocation4], %s666_s27  ;;  %942 = vmatpush1.bf16.msra.mxu0 %v4153_v29  ;;  %3826 = vmatpush3.bf16.msra.mxu1 %v4154_v30  ;;  %v4163_v41 = vld [vmem:[#allocation10 + $0x64] ss:$12 sps:$4 sm:$0xff]  }
 0x113   : > { %v668_v1 = vld [vmem:[%s667_s4] sm:$0x1]  ;;  %s690_s29 = sld [smem:[#allocation3 + %s689_s6]]  ;;  %s671_s2 = scalar_lea.vmem [#allocation4], %s670_s22  ;;  %943 = vmatprep.subr.bf16.mxu0 %v4155_v31  ;;  %3827 = vmatprep.subr.bf16.mxu1 %v4703_v26  ;;  %v4165_v42 = vld [vmem:[#allocation10 + $0x60] ss:$12 sps:$4 sm:$0xff]  }
 0x114   : > { %v672_v2 = vld [vmem:[%s671_s2] sm:$0x1]  ;;  %v694_v3 = vrot.slane %v668_v1, 7  ;;  %s675_s18 = scalar_lea.vmem [#allocation4], %s674_s20  ;;  %v4166_v43 = vld [vmem:[#allocation10 + $0x68] ss:$12 sps:$4 sm:$0xff]  }
 0x115   : > { %v676_v4 = vld [vmem:[%s675_s18] sm:$0x1]  ;;  %v697_v5 = vrot.slane %v672_v2, 6  ;;  %s679_s21 = scalar_lea.vmem [#allocation4], %s678_s19  ;;  %v4169_v45 = vld [vmem:[#allocation10 + $0x78] ss:$12 sps:$4 sm:$0xff]  }
 0x116   : > { %v680_v6 = vld [vmem:[%s679_s21] sm:$0x1]  ;;  %v700_v7 = vrot.slane %v676_v4, 5  ;;  %v715_v8 = vsel %vm714_vm0, %v664_v0, %v694_v3  ;;  %s683_s26 = scalar_lea.vmem [#allocation4], %s682_s30  ;;  %944 = vmatpush1.bf16.msra.mxu0 %v4157_v36  ;;  %3828 = vmatpush3.bf16.msra.mxu1 %v4158_v37  ;;  %v4170_v46 = vld [vmem:[#allocation10 + $0x80] ss:$12 sps:$4 sm:$0xff]   ;;  %v796_v0 = vlaneseq }
 0x117   : > { %v684_v9 = vld [vmem:[%s683_s26] sm:$0x1]  ;;  %v703_v10 = vrot.slane %v680_v6, 4  ;;  %v717_v11 = vsel %vm716_vm1, %v715_v8, %v697_v5  ;;  %s687_s28 = scalar_lea.vmem [#allocation4], %s686_s1  ;;  %3829 = vmatprep.subr.bf16.mxu1 %v4703_v26  ;;  %945 = vmatprep.subr.bf16.mxu0 %v4159_v38  ;;  %v4171_v47 = vld [vmem:[#allocation10 + $0x94] ss:$12 sps:$4 sm:$0xff]  }
 0x118   : > { %v688_v12 = vld [vmem:[%s687_s28] sm:$0x1]  ;;  %v706_v13 = vrot.slane %v684_v9, 3  ;;  %v719_v14 = vsel %vm718_vm2, %v717_v11, %v700_v7  ;;  %v4704_v48 = vmov 0   ;;  %vm4705_vm7 = vmmov 0   ;;  %s4706_s30 = smov 96  }
 0x119   : > { %v709_v15 = vrot.slane %v688_v12, 2  ;;  %v721_v16 = vsel %vm720_vm3, %v719_v14, %v703_v10  ;;  %s691_s22 = scalar_lea.vmem [#allocation4], %s690_s29  ;;  %v4162_v40 = vld [vmem:[#allocation10 + $0x50] ss:$12 sps:$4 sm:$0xff]   ;;  %971 = vmatprep.mubr.bf16.mxu0 %v4704_v48  ;;  %3839 = vmatprep.mubr.msk.bf16.mxu1 %vm4705_vm7, %v4703_v26  ;;  %v4174_v50 = vld [vmem:[#allocation10 + $0x98] ss:$12 sps:$4 sm:$0xff]  }
 0x11a   : > { %v692_v18 = vld [vmem:[%s691_s22] sm:$0x1]  ;;  %v723_v19 = vsel %vm722_vm4, %v721_v16, %v706_v13  ;;  %946 = vmatpush1.bf16.msra.mxu0 %v4161_v39  ;;  %3830 = vmatpush3.bf16.msra.mxu1 %v4162_v40  ;;  %v4175_v51 = vld [vmem:[#allocation10 + $0xac] ss:$12 sps:$4 sm:$0xff]   ;;  %v4177_v52 = vld [vmem:[#allocation10 + $0xa8] ss:$12 sps:$4 sm:$0xff]  }
 0x11b   : > { %v712_v20 = vrot.slane %v692_v18, 1  ;;  %v725_v21 = vsel %vm724_vm5, %v723_v19, %v709_v15  ;;  %3831 = vmatprep.subr.bf16.mxu1 %v4703_v26  ;;  %v4167_v44 = vld [vmem:[#allocation10 + $0x7c] ss:$12 sps:$4 sm:$0xff]   ;;  %947 = vmatprep.subr.bf16.mxu0 %v4163_v41  ;;  %v5103_v1 = vshrl.u32 %v796_v0, 7  ;;  %vm1023_vm8 = vcmask 261120   ;;  %s4707_s25 = smov 32  }
 0x11c   : > { %v4173_v49 = vld [vmem:[#allocation10 + $0x90] ss:$12 sps:$4 sm:$0xff]   ;;  %p657_p12 = scmp.lt.s32.totalorder %s4831_s11, 1  ;;  %s5494_s4 = sld [smem:[#allocation35_spill]]  ;;  %vm1078_vm9 = vcmask 64512   ;;  %vm1489_vm10 = vcmask 523264  }
 0x11d   : > { %v727_v22 = vsel %vm726_vm6, %v725_v21, %v712_v20  ;;  %v4178_v53 = vld [vmem:[#allocation10 + $0xb0] ss:$12 sps:$4 sm:$0xff]   ;;  %v5106_v2 = vsub.s32 1, %v5103_v1  ;;  %v806_v4 = vsub.s32 2, %v5103_v1  ;;  %v5114_v6 = vsub.s32 0, %v5103_v1  ;;  %s4708_s2 = smov 64  }
 0x11e   : > { %v729_v23 = vadd.f32 %v728_v17, %v727_v22  ;;  %948 = vmatpush1.bf16.msra.mxu0 %v4165_v42  ;;  %3832 = vmatpush3.bf16.msra.mxu1 %v4166_v43  ;;  %v3539_v58 = vld [vmem:[#allocation7] ss:$0 sm:$0xff]  ;;  %v3540_v60 = vld [vmem:[#allocation9] ss:$0 sm:$0xff]  ;;  %s658_s1 = scalar_select %p657_p12, %s4831_s11, 1  ;;  %vm1491_vm11 = vcmask 785408  }
 0x11f   : > { %949 = vmatprep.subr.bf16.mxu0 %v4167_v44  ;;  %3833 = vmatprep.subr.bf16.mxu1 %v4703_v26  ;;  %v793_v3 = vld [vmem:[%s5432_s7] sm:$0x7]  ;;  %s5495_s22 = sld [smem:[#allocation39_spill]]  ;;  %vm3326_vm12 = vcmask 57344   ;;  %s3706_s27 = sshll.u32 %s4831_s11, 4 }
 0x120   : > { %732 = vadd.xlane.f32.xlu0 %v729_v23  ;;  %v803_v5 = vrot.slane %v793_v3, %v5106_v2  ;;  %v807_v11 = vrot.slane %v793_v3, %v806_v4  ;;  %v799_v17 = vrot.slane %v793_v3, %v5114_v6  ;;  %s5497_s26 = sld [smem:[#allocation32_spill]]  ;;  %s5498_s6 = sld [smem:[#allocation40_spill]] }
 0x121   : > { %s4711_s11 = smov [#allocation18]  }
 0x122   : > { %950 = vmatpush1.bf16.msra.mxu0 %v4169_v45  ;;  %3834 = vmatpush3.bf16.msra.mxu1 %v4170_v46  ;;  %s5136_s29 = scalar_lea.vmem %s5494_s4, %s658_s1  ;;  %s4709_s4 = smov 1e-09  }
 0x123   : > { %951 = vmatprep.subr.bf16.mxu0 %v4171_v47  ;;  %3835 = vmatprep.subr.bf16.mxu1 %v4703_v26  ;;  %v758_v25 = vld [vmem:[%s5136_s29] sm:$0x1] }
 0x124   : > { %v3541_v27 = vadd.f32 -1.0, %v758_v25 }
 0x126   : > { %952 = vmatpush1.bf16.msra.mxu0 %v4173_v49  ;;  %3836 = vmatpush3.bf16.msra.mxu1 %v4174_v50  ;;  %v760_v28 = vmul.f32 1e+09, %v3541_v27  ;;  %p5499_p2 = scmp.ne.s32.totalorder %s5497_s26, 0 }
 0x127   : > { %953 = vmatprep.subr.bf16.mxu0 %v4175_v51  ;;  %3837 = vmatprep.subr.bf16.mxu1 %v4703_v26 }
 0x128   : > { %v5140_v29 = vrot.slane %v760_v28, %v5114_v6 }
 0x12a   : > { %954 = vmatpush1.bf16.msra.mxu0 %v4177_v52  ;;  %3838 = vmatpush3.bf16.msra.mxu1 %v4178_v53 }
 0x12b   : > { %3843 = vmatprep.subr.bf16.mxu1 %v4703_v26  ;;  %3867 = vmatprep.subr.bf16.mxu0 %v4703_v26 }
 0x1ad   : > { %v733_v32 = vpop.xlane.xlu0 %732 }
 0x1ae   : > { %v735_v33 = vmul.f32 0.0078125, %v733_v32 }
 0x1b0   : > { %v736_v34 = vsub.f32 %v729_v23, %v735_v33 }
 0x1b2   : > { %v737_v35 = vmul.f32 %v736_v34, %v736_v34 }
 0x1b4   : > { %738 = vadd.xlane.f32.xlu0 %v737_v35 }
 0x241   : > { %v739_v54 = vpop.xlane.xlu0 %738 }
 0x242   : > { %v740_v55 = vmul.f32 0.0078125, %v739_v54 }
 0x244   : > { %v741_v56 = vadd.f32 1e-05, %v740_v55 }
 0x246   : > { %4307 = vrsqrt.f32 %v741_v56 }
 0x250   : > { %v4308_v57 = vpop.eup %4307 }
 0x251   : > { %v743_v59 = vmul.f32 %v4308_v57, %v736_v34 }
 0x253   : > { %v750_v61 = vmul.f32 %v3539_v58, %v743_v59 }
 0x255   : > { %v5095_v62 = vadd.f32 %v3540_v60, %v750_v61 }
 0x257   : > { %v794_v63 = vpack.c.bf16 %v5095_v62, %v5095_v62 }
 0x259   : > { %972 = vmatmul.mubr.bf16.vlgmr.msra.gmra.mrb[0].mxu0 %v794_v63  ;;  %3840 = vmatmul.mubr.bf16.vlgmr.msra.gmra.mrb[0].mxu1 %v794_v63 }
 0x25a   : > { %3845 = vmatprep.mubr.msk.bf16.mxu1 %vm4705_vm7, %v4703_v26  ;;  %3869 = vmatprep.mubr.msk.bf16.mxu0 %vm4705_vm7, %v4703_v26 }
 0x32c   : > { %v973_v7 = vpop.f32.mrb[0].mxu0  ;;  %v1014_v8 = vpop.f32.mrb[0].mxu1 }
 0x32d   : > { %v975_v9 = vpop.f32.mrb[1].mxu0  ;;  %v3841_v10 = vpop.f32.mrb[1].mxu1  ;;  %v1015_v19 = vadd.f32 %v1014_v8, %v807_v11  ;;  %v974_v21 = vadd.f32 %v973_v7, %v799_v17 }
 0x32e   : > { %v976_v12 = vadd.f32 %v975_v9, %v803_v5  ;;  %v977_v13 = vpop.f32.mrb[2].mxu0  ;;  %v1017_v14 = vpop.f32.mrb[2].mxu1 }
 0x32f   : > { %v978_v15 = vpop.f32.mrb[3].mxu0  ;;  %v3842_v16 = vpop.f32.mrb[3].mxu1  ;;  %v5122_v22 = vpack.c.bf16 %v1015_v19, %v1015_v19  ;;  %v1020_v23 = vpack.c.bf16 %v974_v21, %v974_v21 }
 0x330   : > { %v1021_v18 = vpack.c.bf16 %v976_v12, %v976_v12 }
 0x331   : > { %v1095_v24 = vsel %vm720_vm3, %v5122_v22, 0 }
 0x332   : > { %1141 = vrot.lane.b32.xlu0 %v1021_v18, %s4706_s30  ;;  %v1028_v20 = vsel %vm1023_vm8, %v1021_v18, 0 }
 0x333   : > { %3844 = vmatpush3.bf16.xpose.msra.mxu1 %v1028_v20 }
 0x334   : > { %3849 = vmatprep.subr.bf16.mxu1 %v4703_v26 }
 0x336   : > { %1366 = vrot.lane.b32.xlu0 %v1021_v18, %s4707_s25 }
 0x33a   : > { %3846 = vmatmul.mubr.msk.bf16.vlgmr.msra.gmra.mrb[4].mxu1 %vm1023_vm8, %v1020_v23 }
 0x33b   : > { %3850 = vmatpush3.bf16.msra.mxu1 %v1095_v24  ;;  %3851 = vmatprep.mubr.msk.bf16.mxu1 %vm4705_vm7, %v4703_v26 }
 0x33c   : > { %3855 = vmatprep.subr.bf16.mxu1 %v4703_v26 }
 0x3a4   : > { %v1142_v44 = vpop.permute.xlu0 %1141 }
 0x3a5   : > { %v1147_v52 = vsel %vm1023_vm8, %v1142_v44, 0 }
 0x3a8   : > { %v1367_v50 = vpop.permute.xlu0 %1366 }
 0x3a9   : > { %v1372_v54 = vsel %vm1023_vm8, %v1367_v50, 0 }
 0x40d   : > { %v1064_v30 = vpop.f32.mrb[4].mxu1 }
 0x40e   : > { %v1070_v31 = vmul.f32 0.17677669, %v1064_v30  ;;  %v3847_v32 = vpop.f32.mrb[5].mxu1 }
 0x40f   : > { %v1067_v33 = vpop.f32.mrb[6].mxu1 }
 0x410   : > { %v3848_v34 = vpop.f32.mrb[7].mxu1  ;;  %v1077_v35 = vadd.f32 %v5140_v29, %v1070_v31 }
 0x412   : > { %v1079_v36 = vsel %vm1078_vm9, %v1077_v35, -inf }
 0x413   : > { %1080 = vmax.xlane.f32.xlu1 %v1079_v36 }
 0x4a0   : > { %v1081_v37 = vpop.xlane.xlu1 %1080 }
 0x4a1   : > { %v1082_v38 = vsub.f32 %v1077_v35, %v1081_v37 }
 0x4a3   : > { %v1083_v39 = vmul.f32 1.442695, %v1082_v38 }
 0x4a5   : > { %4309 = vpow2.f32 %v1083_v39 }
 0x4af   : > { %v4310_v40 = vpop.eup %4309 }
 0x4b0   : > { %v1085_v41 = vsel %vm1078_vm9, %v4310_v40, 0.0 }
 0x4b1   : > { %1086 = vadd.xlane.f32.xlu1 %v1085_v41 }
 0x4c2   : > { %1138 = vrot.lane.b32.xlu1 %v1020_v23, %s4706_s30 }
 0x4c6   : > { %1254 = vrot.lane.b32.xlu1 %v1021_v18, %s4708_s2 }
 0x4ca   : > { %1252 = vrot.lane.b32.xlu1 %v1020_v23, %s4708_s2 }
 0x4ce   : > { %1364 = vrot.lane.b32.xlu1 %v1020_v23, %s4707_s25 }
 0x53e   : > { %v1087_v42 = vpop.xlane.xlu1 %1086 }
 0x53f   : > { %4311 = vrcp.f32 %v1087_v42 }
 0x542   : > { %v1139_v43 = vpop.permute.xlu1 %1138 }
 0x546   : > { %v1255_v45 = vpop.permute.xlu1 %1254 }
 0x547   : > { %v1260_v46 = vsel %vm1023_vm8, %v1255_v45, 0 }
 0x548   : > { %3868 = vmatpush3.bf16.xpose.msra.mxu0 %v1260_v46 }
 0x549   : > { %v4312_v47 = vpop.eup %4311  ;;  %3879 = vmatprep.subr.bf16.mxu0 %v4703_v26 }
 0x54a   : > { %v1089_v49 = vmul.f32 %v4312_v47, %v4310_v40  ;;  %v1253_v53 = vpop.permute.xlu1 %1252 }
 0x54c   : > { %v1090_v51 = vpack.c.bf16 %v1089_v49, %v1089_v49 }
 0x54e   : > { %3852 = vmatmul.mubr.msk.bf16.vlgmr.msra.gmra.mrb[8].mxu1 %vm1078_vm9, %v1090_v51  ;;  %v1365_v55 = vpop.permute.xlu1 %1364 }
 0x54f   : > { %3856 = vmatpush3.bf16.xpose.msra.mxu1 %v1147_v52  ;;  %3870 = vmatmul.mubr.msk.bf16.vlgmr.msra.gmra.mrb[4].mxu0 %vm1023_vm8, %v1253_v53 }
 0x550   : > { %3880 = vmatpush3.bf16.xpose.msra.mxu0 %v1372_v54  ;;  %3857 = vmatprep.mubr.msk.bf16.mxu1 %vm4705_vm7, %v4703_v26 }
 0x551   : > { %3881 = vmatprep.mubr.msk.bf16.mxu0 %vm4705_vm7, %v4703_v26  ;;  %3861 = vmatprep.subr.bf16.mxu1 %v4703_v26 }
 0x552   : > { %3891 = vmatprep.subr.bf16.mxu0 %v4703_v26 }
 0x556   : > { %3858 = vmatmul.mubr.msk.bf16.vlgmr.msra.gmra.mrb[12].mxu1 %vm1023_vm8, %v1139_v43 }
 0x557   : > { %3882 = vmatmul.mubr.msk.bf16.vlgmr.msra.gmra.mrb[8].mxu0 %vm1023_vm8, %v1365_v55  ;;  %3863 = vmatprep.mubr.msk.bf16.mxu1 %vm4705_vm7, %v4703_v26 }
 0x558   : > { %3907 = vmatprep.mubr.msk.bf16.mxu0 %vm4705_vm7, %v4703_v26 }
 0x621   : > { %v5167_v56 = vpop.f32.mrb[8].mxu1 }
 0x622   : > { %v3853_v57 = vpop.f32.mrb[9].mxu1  ;;  %v1296_v58 = vpop.f32.mrb[4].mxu0 }
 0x623   : > { %v1302_v59 = vmul.f32 0.17677669, %v1296_v58  ;;  %v1134_v60 = vpop.f32.mrb[10].mxu1  ;;  %v3871_v61 = vpop.f32.mrb[5].mxu0 }
 0x624   : > { %v3854_v63 = vpop.f32.mrb[11].mxu1  ;;  %v1299_v0 = vpop.f32.mrb[6].mxu0  ;;  %v4180_v60 = vld [vmem:[#allocation12 + $0x8] sm:$0xff]   ;;  %v4181_v61 = vld [vmem:[#allocation12 + $0x10] sm:$0xff]  }
 0x625   : > { %v3872_v3 = vpop.f32.mrb[7].mxu0  ;;  %v1303_v5 = vadd.f32 %v1302_v59, %v5140_v29  ;;  %v4179_v59 = vld [vmem:[#allocation12] sm:$0xff]   ;;  %v4182_v63 = vld [vmem:[#allocation12 + $0x18] sm:$0xff]  }
 0x626   : > { %3892 = vmatpush3.bf16.msra.mxu0 %v4179_v59  ;;  %v4183_v0 = vld [vmem:[#allocation12 + $0x20] sm:$0xff]   ;;  %v4184_v3 = vld [vmem:[#allocation12 + $0x28] sm:$0xff]  }
 0x627   : > { %v1304_v7 = vsel %vm1078_vm9, %v1303_v5, -inf  ;;  %3893 = vmatprep.subr.bf16.mxu0 %v4703_v26 }
 0x628   : > { %1305 = vmax.xlane.f32.xlu1 %v1304_v7 }
 0x629   : > { %v1183_v8 = vpop.f32.mrb[12].mxu1 }
 0x62a   : > { %v1189_v9 = vmul.f32 0.17677669, %v1183_v8  ;;  %v3859_v10 = vpop.f32.mrb[13].mxu1  ;;  %v1408_v11 = vpop.f32.mrb[8].mxu0  ;;  %3894 = vmatpush3.bf16.msra.mxu0 %v4180_v60  ;;  %v3583_v60 = vld [vmem:[%s5435_s10] ss:$0 sm:$0xff] }
 0x62b   : > { %v1414_v12 = vmul.f32 0.17677669, %v1408_v11  ;;  %v1186_v13 = vpop.f32.mrb[14].mxu1  ;;  %v3883_v14 = vpop.f32.mrb[9].mxu0  ;;  %3895 = vmatprep.subr.bf16.mxu0 %v4703_v26  ;;  %v4186_v11 = vld [vmem:[#allocation12 + $0x38] sm:$0xff]  }
 0x62c   : > { %v3860_v15 = vpop.f32.mrb[15].mxu1  ;;  %v1411_v16 = vpop.f32.mrb[10].mxu0  ;;  %v1190_v17 = vadd.f32 %v1189_v9, %v5140_v29 }
 0x62d   : > { %v3884_v18 = vpop.f32.mrb[11].mxu0  ;;  %v1415_v20 = vadd.f32 %v1414_v12, %v5140_v29 }
 0x62e   : > { %v1191_v19 = vsel %vm1078_vm9, %v1190_v17, -inf  ;;  %3896 = vmatpush3.bf16.msra.mxu0 %v4181_v61 }
 0x62f   : > { %1192 = vmax.xlane.f32.xlu0 %v1191_v19  ;;  %v1416_v21 = vsel %vm1078_vm9, %v1415_v20, -inf  ;;  %3897 = vmatprep.subr.bf16.mxu0 %v4703_v26 }
 0x632   : > { %3898 = vmatpush3.bf16.msra.mxu0 %v4182_v63  ;;  %v3584_v63 = vld [vmem:[%s5495_s22] ss:$0 sm:$0xff] }
 0x633   : > { %1417 = vmax.xlane.f32.xlu0 %v1416_v21  ;;  %3899 = vmatprep.subr.bf16.mxu0 %v4703_v26 }
 0x636   : > { %3900 = vmatpush3.bf16.msra.mxu0 %v4183_v0 }
 0x637   : > { %3901 = vmatprep.subr.bf16.mxu0 %v4703_v26 }
 0x63a   : > { %3902 = vmatpush3.bf16.msra.mxu0 %v4184_v3 }
 0x63b   : > { %3903 = vmatprep.subr.bf16.mxu0 %v4703_v26 }
 0x6b5   : > { %v1306_v23 = vpop.xlane.xlu1 %1305 }
 0x6b6   : > { %v1307_v24 = vsub.f32 %v1303_v5, %v1306_v23  ;;  %v4185_v5 = vld [vmem:[#allocation12 + $0x30] sm:$0xff]  }
 0x6b7   : > { %3904 = vmatpush3.bf16.msra.mxu0 %v4185_v5 }
 0x6b8   : > { %v1308_v25 = vmul.f32 1.442695, %v1307_v24  ;;  %3905 = vmatprep.subr.bf16.mxu0 %v4703_v26 }
 0x6ba   : > { %4313 = vpow2.f32 %v1308_v25 }
 0x6bb   : > { %3906 = vmatpush3.bf16.msra.mxu0 %v4186_v11  ;;  %v4215_v11 = vld [vmem:[#allocation15 + $0x50] sm:$0xff]  }
 0x6bc   : > { %v1193_v27 = vpop.xlane.xlu0 %1192 }
 0x6bd   : > { %v1194_v28 = vsub.f32 %v1190_v17, %v1193_v27 }
 0x6bf   : > { %v1195_v30 = vmul.f32 1.442695, %v1194_v28 }
 0x6c0   : > { %v1418_v31 = vpop.xlane.xlu0 %1417 }
 0x6c1   : > { %4315 = vpow2.f32 %v1195_v30  ;;  %v1419_v32 = vsub.f32 %v1415_v20, %v1418_v31  ;;  %v3574_v30 = vld [vmem:[%s5434_s9] ss:$0 sm:$0xff] }
 0x6c3   : > { %v1420_v33 = vmul.f32 1.442695, %v1419_v32 }
 0x6c4   : > { %v4314_v34 = vpop.eup %4313 }
 0x6c5   : > { %4317 = vpow2.f32 %v1420_v33  ;;  %v1310_v35 = vsel %vm1078_vm9, %v4314_v34, 0.0 }
 0x6c6   : > { %1311 = vadd.xlane.f32.xlu0 %v1310_v35 }
 0x6cb   : > { %v4316_v36 = vpop.eup %4315 }
 0x6cc   : > { %v1197_v37 = vsel %vm1078_vm9, %v4316_v36, 0.0 }
 0x6cd   : > { %1198 = vadd.xlane.f32.xlu0 %v1197_v37  ;;  %v4189_v37 = vld [vmem:[#allocation13 + $0x4] ss:$8 sps:$4 sm:$0xff]  }
 0x6cf   : > { %v4318_v38 = vpop.eup %4317 }
 0x6d0   : > { %v1422_v39 = vsel %vm1078_vm9, %v4318_v38, 0.0 }
 0x6d1   : > { %1423 = vadd.xlane.f32.xlu1 %v1422_v39  ;;  %v4190_v39 = vld [vmem:[#allocation13 + $0x10] ss:$8 sps:$4 sm:$0xff]  }
 0x6e2   : > { %1316 = vrot.lane.b32.xlu1 %v5122_v22, %s4708_s2 }
 0x6e3   : > { %1204 = vrot.lane.b32.xlu0 %v5122_v22, %s4706_s30 }
 0x6e6   : > { %1428 = vrot.lane.b32.xlu1 %v5122_v22, %s4707_s25 }
 0x753   : > { %v1312_v40 = vpop.xlane.xlu0 %1311 }
 0x75a   : > { %v1199_v41 = vpop.xlane.xlu0 %1198 }
 0x75b   : > { %4319 = vrcp.f32 %v1199_v41  ;;  %v4193_v41 = vld [vmem:[#allocation13 + $0x20] ss:$8 sps:$4 sm:$0xff]  }
 0x75c   : > { %4321 = vrcp.f32 %v1312_v40  ;;  %v4195_v40 = vld [vmem:[#allocation13 + $0x24] ss:$8 sps:$4 sm:$0xff]  }
 0x75e   : > { %v1205_v42 = vpop.permute.xlu0 %1204  ;;  %v1424_v44 = vpop.xlane.xlu1 %1423 }
 0x75f   : > { %v1210_v43 = vsel %vm720_vm3, %v1205_v42, 0  ;;  %4323 = vrcp.f32 %v1424_v44 }
 0x760   : > { %3862 = vmatpush3.bf16.msra.mxu1 %v1210_v43 }
 0x761   : > { %3873 = vmatprep.subr.bf16.mxu1 %v4703_v26 }
 0x762   : > { %v1317_v47 = vpop.permute.xlu1 %1316 }
 0x763   : > { %v1322_v51 = vsel %vm720_vm3, %v1317_v47, 0  ;;  %v4201_v47 = vld [vmem:[#allocation13 + $0x44] ss:$8 sps:$4 sm:$0xff]  }
 0x765   : > { %v4320_v45 = vpop.eup %4319 }
 0x766   : > { %v1201_v46 = vmul.f32 %v4320_v45, %v4316_v36  ;;  %v4322_v50 = vpop.eup %4321  ;;  %v1429_v52 = vpop.permute.xlu1 %1428 }
 0x767   : > { %v1314_v22 = vmul.f32 %v4322_v50, %v4314_v34  ;;  %v1434_v55 = vsel %vm720_vm3, %v1429_v52, 0  ;;  %v4204_v50 = vld [vmem:[#allocation13 + $0x54] ss:$8 sps:$4 sm:$0xff]   ;;  %v4205_v52 = vld [vmem:[#allocation13 + $0x60] ss:$8 sps:$4 sm:$0xff]  }
 0x768   : > { %v1202_v49 = vpack.c.bf16 %v1201_v46, %v1201_v46  ;;  %v4198_v46 = vld [vmem:[#allocation13 + $0x34] ss:$8 sps:$4 sm:$0xff]  }
 0x769   : > { %v1315_v53 = vpack.c.bf16 %v1314_v22, %v1314_v22  ;;  %v4324_v54 = vpop.eup %4323  ;;  %v4207_v22 = vld [vmem:[#allocation13 + $0x64] ss:$8 sps:$4 sm:$0xff]  }
 0x76a   : > { %3864 = vmatmul.mubr.msk.bf16.vlgmr.msra.gmra.mrb[16].mxu1 %vm1078_vm9, %v1202_v49  ;;  %v1426_v57 = vmul.f32 %v4324_v54, %v4318_v38  ;;  %v4192_v38 = vld [vmem:[#allocation13 + $0x14] ss:$8 sps:$4 sm:$0xff]   ;;  %v4199_v49 = vld [vmem:[#allocation13 + $0x40] ss:$8 sps:$4 sm:$0xff]   ;;  %v4208_v54 = vld [vmem:[#allocation13 + $0x70] ss:$8 sps:$4 sm:$0xff]  }
 0x76b   : > { %3874 = vmatpush3.bf16.msra.mxu1 %v1322_v51  ;;  %3875 = vmatprep.mubr.msk.bf16.mxu1 %vm4705_vm7, %v4703_v26  ;;  %v4202_v51 = vld [vmem:[#allocation13 + $0x50] ss:$8 sps:$4 sm:$0xff]  }
 0x76c   : > { %3885 = vmatprep.subr.bf16.mxu1 %v4703_v26  ;;  %v1427_v58 = vpack.c.bf16 %v1426_v57, %v1426_v57 }
 0x772   : > { %3876 = vmatmul.mubr.msk.bf16.vlgmr.msra.gmra.mrb[20].mxu1 %vm1078_vm9, %v1315_v53  ;;  %v4210_v53 = vld [vmem:[#allocation13 + $0x74] ss:$8 sps:$4 sm:$0xff]  }
 0x773   : > { %3886 = vmatpush3.bf16.msra.mxu1 %v1434_v55  ;;  %3887 = vmatprep.mubr.msk.bf16.mxu1 %vm4705_vm7, %v4703_v26 }
 0x774   : > { %1742 = vmatprep.subr.bf16.mxu1 %v4189_v37 }
 0x77a   : > { %3888 = vmatmul.mubr.msk.bf16.vlgmr.msra.gmra.mrb[24].mxu1 %vm1078_vm9, %v1427_v58 }
 0x77b   : > { %1774 = vmatprep.mubr.bf16.mxu1 %v4704_v48 }
 0x83d   : > { %v1246_v7 = vpop.f32.mrb[16].mxu1 }
 0x83e   : > { %1477 = vrot.lane.b32.xlu1 %v1246_v7, %s4707_s25  ;;  %v3865_v8 = vpop.f32.mrb[17].mxu1  ;;  %v4211_v7 = vld [vmem:[#allocation15 + $0x40] sm:$0xff]  }
 0x83f   : > { %v1249_v9 = vpop.f32.mrb[18].mxu1  ;;  %v4212_v8 = vld [vmem:[#allocation15] sm:$0xff]   ;;  %3743 = vmatprep.subr.bf16.mxu0 %v4211_v7  ;;  %v4233_v7 = vld [vmem:[#allocation10 + $0xdc] ss:$12 sps:$4 sm:$0xff]  }
 0x840   : > { %v3866_v10 = vpop.f32.mrb[19].mxu1  ;;  %v4213_v9 = vld [vmem:[#allocation15 + $0x48] sm:$0xff]  }
 0x841   : > { %v4214_v10 = vld [vmem:[#allocation15 + $0x8] sm:$0xff]  }
 0x845   : > { %v1358_v12 = vpop.f32.mrb[20].mxu1 }
 0x846   : > { %1481 = vrot.lane.b32.xlu0 %v1358_v12, %s4708_s2  ;;  %v3877_v13 = vpop.f32.mrb[21].mxu1  ;;  %v4216_v12 = vld [vmem:[#allocation15 + $0x10] sm:$0xff]  }
 0x847   : > { %v1361_v14 = vpop.f32.mrb[22].mxu1  ;;  %v4217_v13 = vld [vmem:[#allocation15 + $0x58] sm:$0xff]  }
 0x848   : > { %v3878_v15 = vpop.f32.mrb[23].mxu1  ;;  %v4218_v14 = vld [vmem:[#allocation15 + $0x18] sm:$0xff]  }
 0x849   : > { %v4219_v15 = vld [vmem:[#allocation15 + $0x60] sm:$0xff]  }
 0x84d   : > { %v1470_v16 = vpop.f32.mrb[24].mxu1 }
 0x84e   : > { %1485 = vrot.lane.b32.xlu1 %v1470_v16, %s4706_s30  ;;  %v3889_v17 = vpop.f32.mrb[25].mxu1  ;;  %v4220_v16 = vld [vmem:[#allocation15 + $0x20] sm:$0xff]  }
 0x84f   : > { %v1473_v18 = vpop.f32.mrb[26].mxu1  ;;  %v4221_v17 = vld [vmem:[#allocation15 + $0x68] sm:$0xff]  }
 0x850   : > { %v3890_v19 = vpop.f32.mrb[27].mxu1  ;;  %v4222_v18 = vld [vmem:[#allocation15 + $0x28] sm:$0xff]  }
 0x851   : > { %v4223_v19 = vld [vmem:[#allocation15 + $0x70] sm:$0xff]  }
 0x8b0   : > { %v1478_v20 = vpop.permute.xlu1 %1477 }
 0x8b1   : > { %v1488_v23 = vsel %vm1023_vm8, %v5167_v56, %v1478_v20  ;;  %v4187_v56 = vld [vmem:[#allocation13] ss:$8 sps:$4 sm:$0xff]   ;;  %v4224_v20 = vld [vmem:[#allocation15 + $0x30] sm:$0xff]  }
 0x8b2   : > { %1743 = vmatpush1.bf16.msra.mxu1 %v4187_v56 }
 0x8b3   : > { %1744 = vmatprep.subr.bf16.mxu1 %v4192_v38 }
 0x8b6   : > { %1745 = vmatpush1.bf16.msra.mxu1 %v4190_v39 }
 0x8b7   : > { %1746 = vmatprep.subr.bf16.mxu1 %v4195_v40 }
 0x8b8   : > { %v1482_v21 = vpop.permute.xlu0 %1481 }
 0x8b9   : > { %v1490_v24 = vsel %vm1489_vm10, %v1488_v23, %v1482_v21  ;;  %v4225_v21 = vld [vmem:[#allocation15 + $0x78] sm:$0xff]  }
 0x8ba   : > { %1747 = vmatpush1.bf16.msra.mxu1 %v4193_v41  ;;  %v4226_v23 = vld [vmem:[#allocation15 + $0x38] sm:$0xff]  }
 0x8bb   : > { %1748 = vmatprep.subr.bf16.mxu1 %v4198_v46 }
 0x8c0   : > { %v1486_v25 = vpop.permute.xlu1 %1485 }
 0x8c1   : > { %v1492_v27 = vsel %vm1491_vm11, %v1490_v24, %v1486_v25  ;;  %v1649_v24 = vld [vmem:[%s5438_s13] sm:$0x3] }
 0x8c2   : > { %v1510_v28 = vpack.c.bf16 %v1492_v27, %v1492_v27  ;;  %v1655_v25 = vrot.slane %v1649_v24, %v5114_v6  ;;  %v1659_v27 = vrot.slane %v1649_v24, %v5106_v2  ;;  %v4247_v24 = vld [vmem:[#allocation10 + $0x138] ss:$12 sps:$4 sm:$0xff]  }
 0x8c4   : > { %3908 = vmatmul.mubr.bf16.vlgmr.msra.gmra.mrb[12].mxu0 %v1510_v28 }
 0x8c5   : > { %3744 = vmatpush3.bf16.msra.mxu0 %v4212_v8  ;;  %v4234_v8 = vld [vmem:[#allocation10 + $0xe0] ss:$12 sps:$4 sm:$0xff]  }
 0x8c6   : > { %3745 = vmatprep.subr.bf16.mxu0 %v4213_v9  ;;  %v4231_v9 = vld [vmem:[#allocation10 + $0xd8] ss:$12 sps:$4 sm:$0xff]  }
 0x8c9   : > { %3746 = vmatpush3.bf16.msra.mxu0 %v4214_v10  ;;  %v4237_v10 = vld [vmem:[#allocation10 + $0xf4] ss:$12 sps:$4 sm:$0xff]  }
 0x8ca   : > { %3747 = vmatprep.subr.bf16.mxu0 %v4215_v11  ;;  %v4235_v11 = vld [vmem:[#allocation10 + $0xf0] ss:$12 sps:$4 sm:$0xff]  }
 0x8cd   : > { %3748 = vmatpush3.bf16.msra.mxu0 %v4216_v12 }
 0x8ce   : > { %3749 = vmatprep.subr.bf16.mxu0 %v4217_v13 }
 0x8d1   : > { %3750 = vmatpush3.bf16.msra.mxu0 %v4218_v14 }
 0x8d2   : > { %3751 = vmatprep.subr.bf16.mxu0 %v4219_v15  ;;  %v4238_v15 = vld [vmem:[#allocation10 + $0xf8] ss:$12 sps:$4 sm:$0xff]  }
 0x8d5   : > { %3752 = vmatpush3.bf16.msra.mxu0 %v4220_v16  ;;  %v4241_v16 = vld [vmem:[#allocation10 + $0x10c] ss:$12 sps:$4 sm:$0xff]  }
 0x8d6   : > { %3753 = vmatprep.subr.bf16.mxu0 %v4221_v17  ;;  %v4239_v17 = vld [vmem:[#allocation10 + $0x108] ss:$12 sps:$4 sm:$0xff]  }
 0x8d9   : > { %3754 = vmatpush3.bf16.msra.mxu0 %v4222_v18  ;;  %v4242_v18 = vld [vmem:[#allocation10 + $0x110] ss:$12 sps:$4 sm:$0xff]  }
 0x8da   : > { %3755 = vmatprep.subr.bf16.mxu0 %v4223_v19  ;;  %v4245_v19 = vld [vmem:[#allocation10 + $0x124] ss:$12 sps:$4 sm:$0xff]  }
 0x8dd   : > { %3756 = vmatpush3.bf16.msra.mxu0 %v4224_v20  ;;  %v4243_v20 = vld [vmem:[#allocation10 + $0x120] ss:$12 sps:$4 sm:$0xff]  }
 0x8de   : > { %3757 = vmatprep.subr.bf16.mxu0 %v4225_v21  ;;  %v4246_v21 = vld [vmem:[#allocation10 + $0x128] ss:$12 sps:$4 sm:$0xff]  }
 0x8e1   : > { %3758 = vmatpush3.bf16.msra.mxu0 %v4226_v23  ;;  %v4249_v23 = vld [vmem:[#allocation10 + $0x13c] ss:$12 sps:$4 sm:$0xff]  }
 0x8e2   : > { %3911 = vmatprep.subr.bf16.mxu0 %v4703_v26 }
 0x997   : > { %v1599_v31 = vpop.f32.mrb[12].mxu0 }
 0x998   : > { %v1600_v32 = vadd.f32 %v3574_v30, %v1599_v31  ;;  %v3909_v33 = vpop.f32.mrb[13].mxu0 }
 0x999   : > { %v1602_v34 = vpop.f32.mrb[14].mxu0 }
 0x99a   : > { %v3910_v35 = vpop.f32.mrb[15].mxu0  ;;  %v1605_v36 = vadd.f32 %v1600_v32, %v5095_v62  ;;  %v4196_v62 = vld [vmem:[#allocation13 + $0x30] ss:$8 sps:$4 sm:$0xff]  }
 0x99b   : > { %1749 = vmatpush1.bf16.msra.mxu1 %v4196_v62 }
 0x99c   : > { %1608 = vadd.xlane.f32.xlu0 %v1605_v36  ;;  %1750 = vmatprep.subr.bf16.mxu1 %v4201_v47 }
 0x99f   : > { %1751 = vmatpush1.bf16.msra.mxu1 %v4199_v49 }
 0x9a0   : > { %1752 = vmatprep.subr.bf16.mxu1 %v4204_v50 }
 0x9a3   : > { %1753 = vmatpush1.bf16.msra.mxu1 %v4202_v51 }
 0x9a4   : > { %1754 = vmatprep.subr.bf16.mxu1 %v4207_v22 }
 0x9a7   : > { %1755 = vmatpush1.bf16.msra.mxu1 %v4205_v52 }
 0x9a8   : > { %1756 = vmatprep.subr.bf16.mxu1 %v4210_v53 }
 0x9ab   : > { %1757 = vmatpush1.bf16.msra.mxu1 %v4208_v54  ;;  %v3601_v54 = vld [vmem:[#allocation16] ss:$0 sm:$0xff] }
 0xa29   : > { %v1609_v42 = vpop.xlane.xlu0 %1608 }
 0xa2a   : > { %v1610_v43 = vmul.f32 0.0078125, %v1609_v42 }
 0xa2c   : > { %v1611_v44 = vsub.f32 %v1605_v36, %v1610_v43 }
 0xa2e   : > { %v1612_v45 = vmul.f32 %v1611_v44, %v1611_v44 }
 0xa30   : > { %1613 = vadd.xlane.f32.xlu1 %v1612_v45 }
 0xabd   : > { %v1614_v55 = vpop.xlane.xlu1 %1613 }
 0xabe   : > { %v1615_v57 = vmul.f32 0.0078125, %v1614_v55 }
 0xac0   : > { %v1616_v58 = vadd.f32 1e-05, %v1615_v57 }
 0xac2   : > { %4325 = vrsqrt.f32 %v1616_v58 }
 0xacc   : > { %v4326_v59 = vpop.eup %4325 }
 0xacd   : > { %v1618_v61 = vmul.f32 %v4326_v59, %v1611_v44 }
 0xacf   : > { %v1625_v0 = vmul.f32 %v3583_v60, %v1618_v61 }
 0xad1   : > { %v5221_v3 = vadd.f32 %v3584_v63, %v1625_v0  ;;  %v4227_v63 = vld [vmem:[#allocation10 + $0xc0] ss:$12 sps:$4 sm:$0xff]   ;;  %v4229_v0 = vld [vmem:[#allocation10 + $0xc4] ss:$12 sps:$4 sm:$0xff]  }
 0xad2   : > { %2186 = vmatprep.subr.bf16.mxu1 %v4229_v0 }
 0xad3   : > { %v1650_v5 = vpack.c.bf16 %v5221_v3, %v5221_v3 }
 0xad5   : > { %1775 = vmatmul.mubr.bf16.vlgmr.msra.gmra.mrb[28].mxu1 %v1650_v5  ;;  %v4230_v5 = vld [vmem:[#allocation10 + $0xc8] ss:$12 sps:$4 sm:$0xff]  }
 0xad6   : > { %2218 = vmatprep.mubr.bf16.mxu1 %v4704_v48  ;;  %2187 = vmatpush1.bf16.msra.mxu1 %v4227_v63 }
 0xad7   : > { %2188 = vmatprep.subr.bf16.mxu1 %v4233_v7 }
 0xada   : > { %2189 = vmatpush1.bf16.msra.mxu1 %v4231_v9 }
 0xadb   : > { %2190 = vmatprep.subr.bf16.mxu1 %v4237_v10 }
 0xade   : > { %2191 = vmatpush1.bf16.msra.mxu1 %v4235_v11 }
 0xadf   : > { %2192 = vmatprep.subr.bf16.mxu1 %v4241_v16 }
 0xae2   : > { %2193 = vmatpush1.bf16.msra.mxu1 %v4239_v17 }
 0xae3   : > { %2194 = vmatprep.subr.bf16.mxu1 %v4245_v19 }
 0xae6   : > { %2195 = vmatpush1.bf16.msra.mxu1 %v4243_v20 }
 0xae7   : > { %2196 = vmatprep.subr.bf16.mxu1 %v4249_v23 }
 0xaea   : > { %2197 = vmatpush1.bf16.msra.mxu1 %v4247_v24 }
 0xba8   : > { %v1776_v28 = vpop.f32.mrb[28].mxu1 }
 0xba9   : > { %v1777_v30 = vadd.f32 %v1776_v28, %v1655_v25  ;;  %v1778_v31 = vpop.f32.mrb[29].mxu1  ;;  %v4250_v25 = vld [vmem:[#allocation10 + $0x140] ss:$12 sps:$4 sm:$0xff]   ;;  %v4251_v28 = vld [vmem:[#allocation10 + $0x150] ss:$12 sps:$4 sm:$0xff]  }
 0xbaa   : > { %v1779_v32 = vadd.f32 %v1778_v31, %v1659_v27  ;;  %v1780_v33 = vpop.f32.mrb[30].mxu1  ;;  %v4253_v27 = vld [vmem:[#allocation10 + $0x154] ss:$12 sps:$4 sm:$0xff]   ;;  %v4257_v31 = vld [vmem:[#allocation10 + $0x16c] ss:$12 sps:$4 sm:$0xff]  }
 0xbab   : > { %v1783_v34 = vmul.f32 %v1777_v30, %v1777_v30  ;;  %v1781_v35 = vpop.f32.mrb[31].mxu1  ;;  %2198 = vmatprep.subr.bf16.mxu1 %v4253_v27  ;;  %v4258_v33 = vld [vmem:[#allocation10 + $0x170] ss:$12 sps:$4 sm:$0xff]  }
 0xbac   : > { %v1784_v36 = vmul.f32 %v1779_v32, %v1779_v32  ;;  %2199 = vmatpush1.bf16.msra.mxu1 %v4251_v28 }
 0xbad   : > { %v1785_v56 = vmul.f32 %v1783_v34, %v1777_v30  ;;  %2200 = vmatprep.subr.bf16.mxu1 %v4257_v31 }
 0xbae   : > { %v1786_v37 = vmul.f32 %v1784_v36, %v1779_v32 }
 0xbaf   : > { %v1787_v38 = vmul.f32 0.044715, %v1785_v56 }
 0xbb0   : > { %v1788_v39 = vmul.f32 0.044715, %v1786_v37  ;;  %v3618_v37 = vld [vmem:[%s5441_s16] ss:$0 sm:$0xff] }
 0xbb1   : > { %v1789_v40 = vadd.f32 %v1787_v38, %v1777_v30 }
 0xbb2   : > { %v1790_v41 = vadd.f32 %v1788_v39, %v1779_v32  ;;  %v3619_v39 = vld [vmem:[%s5442_s17] ss:$0 sm:$0xff] }
 0xbb3   : > { %v1791_v42 = vmul.f32 0.7978846, %v1789_v40 }
 0xbb4   : > { %v1792_v43 = vmul.f32 0.7978846, %v1790_v41 }
 0xbb5   : > { %4327 = vtanh.f32 %v1791_v42 }
 0xbb6   : > { %4329 = vtanh.f32 %v1792_v43  ;;  %v3620_v43 = vld [vmem:[%s5432_s7 + $0x3] sm:$0x7] }
 0xbbf   : > { %v4328_v44 = vpop.eup %4327 }
 0xbc0   : > { %v4330_v45 = vpop.eup %4329  ;;  %v1795_v46 = vadd.f32 1.0, %v4328_v44  ;;  %v2050_v44 = vrot.slane %v3620_v43, %v5106_v2 }
 0xbc1   : > { %v1796_v62 = vadd.f32 1.0, %v4330_v45 }
 0xbc2   : > { %v1797_v47 = vmul.f32 0.5, %v1795_v46 }
 0xbc3   : > { %v1798_v49 = vmul.f32 0.5, %v1796_v62 }
 0xbc4   : > { %v1799_v50 = vmul.f32 %v1797_v47, %v1777_v30  ;;  %v4254_v30 = vld [vmem:[#allocation10 + $0x158] ss:$12 sps:$4 sm:$0xff]  }
 0xbc5   : > { %v1800_v51 = vmul.f32 %v1798_v49, %v1779_v32  ;;  %v4255_v32 = vld [vmem:[#allocation10 + $0x168] ss:$12 sps:$4 sm:$0xff]   ;;  %v2054_v49 = vrot.slane %v3620_v43, %v806_v4 }
 0xbc6   : > { %v1834_v52 = vpack.c.bf16 %v1799_v50, %v1799_v50  ;;  %2201 = vmatpush1.bf16.msra.mxu1 %v4255_v32 }
 0xbc7   : > { %v1835_v22 = vpack.c.bf16 %v1800_v51, %v1800_v51  ;;  %3931 = vmatprep.subr.bf16.mxu1 %v4703_v26 }
 0xbc9   : > { %1970 = vmatprep.mubr.bf16.mxu0 %v1835_v22 }
 0xbca   : > { %1971 = vmatmul.mubr.bf16.vlgmr.msra.gmra.mrb[16].mxu0 %v1834_v52 }
 0xbcb   : > { %3927 = vmatprep.mubr.msk.bf16.mxu0 %vm4705_vm7, %v4703_v26  ;;  %3912 = vmatpush3.bf16.msra.mxu0 %v4230_v5 }
 0xbcc   : > { %3913 = vmatprep.subr.bf16.mxu0 %v4703_v26 }
 0xbcf   : > { %3914 = vmatpush3.bf16.msra.mxu0 %v4234_v8 }
 0xbd0   : > { %3915 = vmatprep.subr.bf16.mxu0 %v4703_v26 }
 0xbd3   : > { %3916 = vmatpush3.bf16.msra.mxu0 %v4238_v15 }
 0xbd4   : > { %3917 = vmatprep.subr.bf16.mxu0 %v4703_v26 }
 0xbd7   : > { %3918 = vmatpush3.bf16.msra.mxu0 %v4242_v18 }
 0xbd8   : > { %3919 = vmatprep.subr.bf16.mxu0 %v4703_v26 }
 0xbdb   : > { %3920 = vmatpush3.bf16.msra.mxu0 %v4246_v21 }
 0xbdc   : > { %3921 = vmatprep.subr.bf16.mxu0 %v4703_v26 }
 0xbdf   : > { %3922 = vmatpush3.bf16.msra.mxu0 %v4250_v25 }
 0xbe0   : > { %3923 = vmatprep.subr.bf16.mxu0 %v4703_v26 }
 0xbe3   : > { %3924 = vmatpush3.bf16.msra.mxu0 %v4254_v30 }
 0xbe4   : > { %3925 = vmatprep.subr.bf16.mxu0 %v4703_v26 }
 0xbe7   : > { %3926 = vmatpush3.bf16.msra.mxu0 %v4258_v33 }
 0xbe8   : > { %3955 = vmatprep.subr.bf16.mxu0 %v4703_v26 }
 0xc9d   : > { %v3759_v53 = vpop.f32.mrb[16].mxu0 }
 0xc9e   : > { %v3760_v55 = vpop.f32.mrb[17].mxu0 }
 0xc9f   : > { %v3761_v57 = vadd.f32 %v3760_v55, %v3759_v53  ;;  %v3762_v58 = vpop.f32.mrb[18].mxu0 }
 0xca0   : > { %v3763_v59 = vpop.f32.mrb[19].mxu0 }
 0xca1   : > { %v1973_v60 = vadd.f32 %v3761_v57, %v3601_v54  ;;  %v2046_v54 = vrot.slane %v3620_v43, %v5114_v6 }
 0xca3   : > { %v1978_v61 = vadd.f32 %v1973_v60, %v5221_v3 }
 0xca5   : > { %1981 = vadd.xlane.f32.xlu0 %v1978_v61 }
 0xd32   : > { %v1982_v3 = vpop.xlane.xlu0 %1981 }
 0xd33   : > { %v1983_v12 = vmul.f32 0.0078125, %v1982_v3 }
 0xd35   : > { %v1984_v13 = vsub.f32 %v1978_v61, %v1983_v12 }
 0xd37   : > { %v1985_v14 = vmul.f32 %v1984_v13, %v1984_v13 }
 0xd39   : > { %1986 = vadd.xlane.f32.xlu0 %v1985_v14 }
 0xdc6   : > { %v1987_v34 = vpop.xlane.xlu0 %1986 }
 0xdc7   : > { %v1988_v35 = vmul.f32 0.0078125, %v1987_v34 }
 0xdc9   : > { %v1989_v36 = vadd.f32 1e-05, %v1988_v35 }
 0xdcb   : > { %4331 = vrsqrt.f32 %v1989_v36 }
 0xdd5   : > { %v4332_v56 = vpop.eup %4331 }
 0xdd6   : > { %v1991_v38 = vmul.f32 %v4332_v56, %v1984_v13 }
 0xdd8   : > { %v1998_v40 = vmul.f32 %v3618_v37, %v1991_v38 }
 0xdda   : > { %v5250_v41 = vadd.f32 %v3619_v39, %v1998_v40 }
 0xddc   : > { %v2041_v42 = vpack.c.bf16 %v5250_v41, %v5250_v41 }
 0xdde   : > { %2219 = vmatmul.mubr.bf16.vlgmr.msra.gmra.mrb[32].mxu1 %v2041_v42  ;;  %3928 = vmatmul.mubr.bf16.vlgmr.msra.gmra.mrb[20].mxu0 %v2041_v42 }
 0xddf   : > { %3933 = vmatprep.mubr.msk.bf16.mxu1 %vm4705_vm7, %v4703_v26  ;;  %3957 = vmatprep.mubr.msk.bf16.mxu0 %vm4705_vm7, %v4703_v26 }
 0xeb1   : > { %v2220_v45 = vpop.f32.mrb[32].mxu1  ;;  %v2261_v46 = vpop.f32.mrb[20].mxu0 }
 0xeb2   : > { %v2222_v62 = vpop.f32.mrb[33].mxu1  ;;  %v3929_v47 = vpop.f32.mrb[21].mxu0  ;;  %v2262_v57 = vadd.f32 %v2261_v46, %v2054_v49  ;;  %v2221_v59 = vadd.f32 %v2220_v45, %v2046_v54 }
 0xeb3   : > { %v2223_v50 = vadd.f32 %v2222_v62, %v2050_v44  ;;  %v2224_v51 = vpop.f32.mrb[34].mxu1  ;;  %v2264_v22 = vpop.f32.mrb[22].mxu0 }
 0xeb4   : > { %v2225_v52 = vpop.f32.mrb[35].mxu1  ;;  %v3930_v53 = vpop.f32.mrb[23].mxu0  ;;  %v5267_v60 = vpack.c.bf16 %v2262_v57, %v2262_v57  ;;  %v2267_v61 = vpack.c.bf16 %v2221_v59, %v2221_v59 }
 0xeb5   : > { %v2268_v55 = vpack.c.bf16 %v2223_v50, %v2223_v50 }
 0xeb6   : > { %v2334_v1 = vsel %vm720_vm3, %v5267_v60, 0 }
 0xeb7   : > { %v2274_v58 = vsel %vm1023_vm8, %v2268_v55, 0 }
 0xeb8   : > { %3932 = vmatpush3.bf16.xpose.msra.mxu1 %v2274_v58 }
 0xeb9   : > { %3937 = vmatprep.subr.bf16.mxu1 %v4703_v26 }
 0xebf   : > { %3934 = vmatmul.mubr.msk.bf16.vlgmr.msra.gmra.mrb[36].mxu1 %vm1023_vm8, %v2267_v61 }
 0xec0   : > { %3938 = vmatpush3.bf16.msra.mxu1 %v2334_v1  ;;  %3939 = vmatprep.mubr.msk.bf16.mxu1 %vm4705_vm7, %v4703_v26 }
 0xec1   : > { %3943 = vmatprep.subr.bf16.mxu1 %v4703_v26 }
 0xf92   : > { %v2310_v4 = vpop.f32.mrb[36].mxu1 }
 0xf93   : > { %v2316_v63 = vmul.f32 0.17677669, %v2310_v4  ;;  %v3935_v0 = vpop.f32.mrb[37].mxu1 }
 0xf94   : > { %v2313_v5 = vpop.f32.mrb[38].mxu1 }
 0xf95   : > { %v3936_v7 = vpop.f32.mrb[39].mxu1  ;;  %v2317_v8 = vadd.f32 %v2316_v63, %v5140_v29 }
 0xf97   : > { %v2318_v9 = vsel %vm1078_vm9, %v2317_v8, -inf }
 0xf98   : > { %2319 = vmax.xlane.f32.xlu0 %v2318_v9 }
 0xfae   : > { %2380 = vrot.lane.b32.xlu0 %v2268_v55, %s4706_s30 }
 0xfb2   : > { %2605 = vrot.lane.b32.xlu0 %v2268_v55, %s4707_s25 }
0x1025   : > { %v2320_v10 = vpop.xlane.xlu0 %2319 }
0x1026   : > { %v2321_v11 = vsub.f32 %v2317_v8, %v2320_v10 }
0x1028   : > { %v2322_v3 = vmul.f32 1.442695, %v2321_v11 }
0x1029   : > { %v2381_v16 = vpop.permute.xlu0 %2380 }
0x102a   : > { %4333 = vpow2.f32 %v2322_v3  ;;  %v2386_v24 = vsel %vm1023_vm8, %v2381_v16, 0 }
0x102d   : > { %v2606_v21 = vpop.permute.xlu0 %2605 }
0x102e   : > { %v2611_v27 = vsel %vm1023_vm8, %v2606_v21, 0 }
0x1034   : > { %v4334_v12 = vpop.eup %4333 }
0x1035   : > { %v2324_v13 = vsel %vm1078_vm9, %v4334_v12, 0.0 }
0x1036   : > { %2325 = vadd.xlane.f32.xlu1 %v2324_v13 }
0x1047   : > { %2377 = vrot.lane.b32.xlu1 %v2267_v61, %s4706_s30 }
0x104b   : > { %2493 = vrot.lane.b32.xlu1 %v2268_v55, %s4708_s2 }
0x104f   : > { %2491 = vrot.lane.b32.xlu1 %v2267_v61, %s4708_s2 }
0x1053   : > { %2603 = vrot.lane.b32.xlu1 %v2267_v61, %s4707_s25 }
0x10c3   : > { %v2326_v14 = vpop.xlane.xlu1 %2325 }
0x10c4   : > { %4335 = vrcp.f32 %v2326_v14 }
0x10c7   : > { %v2378_v15 = vpop.permute.xlu1 %2377 }
0x10cb   : > { %v2494_v17 = vpop.permute.xlu1 %2493 }
0x10cc   : > { %v2499_v18 = vsel %vm1023_vm8, %v2494_v17, 0 }
0x10cd   : > { %3956 = vmatpush3.bf16.xpose.msra.mxu0 %v2499_v18 }
0x10ce   : > { %v4336_v19 = vpop.eup %4335  ;;  %3967 = vmatprep.subr.bf16.mxu0 %v4703_v26 }
0x10cf   : > { %v2328_v20 = vmul.f32 %v4336_v19, %v4334_v12  ;;  %v2492_v25 = vpop.permute.xlu1 %2491 }
0x10d1   : > { %v2329_v23 = vpack.c.bf16 %v2328_v20, %v2328_v20 }
0x10d3   : > { %3940 = vmatmul.mubr.msk.bf16.vlgmr.msra.gmra.mrb[40].mxu1 %vm1078_vm9, %v2329_v23  ;;  %v2604_v28 = vpop.permute.xlu1 %2603 }
0x10d4   : > { %3944 = vmatpush3.bf16.xpose.msra.mxu1 %v2386_v24  ;;  %3958 = vmatmul.mubr.msk.bf16.vlgmr.msra.gmra.mrb[24].mxu0 %vm1023_vm8, %v2492_v25 }
0x10d5   : > { %3968 = vmatpush3.bf16.xpose.msra.mxu0 %v2611_v27  ;;  %3945 = vmatprep.mubr.msk.bf16.mxu1 %vm4705_vm7, %v4703_v26 }
0x10d6   : > { %3969 = vmatprep.mubr.msk.bf16.mxu0 %vm4705_vm7, %v4703_v26  ;;  %3949 = vmatprep.subr.bf16.mxu1 %v4703_v26 }
0x10d7   : > { %3979 = vmatprep.subr.bf16.mxu0 %v4703_v26 }
0x10db   : > { %3946 = vmatmul.mubr.msk.bf16.vlgmr.msra.gmra.mrb[44].mxu1 %vm1023_vm8, %v2378_v15 }
0x10dc   : > { %3970 = vmatmul.mubr.msk.bf16.vlgmr.msra.gmra.mrb[28].mxu0 %vm1023_vm8, %v2604_v28  ;;  %3951 = vmatprep.mubr.msk.bf16.mxu1 %vm4705_vm7, %v4703_v26  ;;  %v4259_v28 = vld [vmem:[#allocation12 + $0x40] sm:$0xff]  }
0x10dd   : > { %3995 = vmatprep.mubr.msk.bf16.mxu0 %vm4705_vm7, %v4703_v26  ;;  %3980 = vmatpush3.bf16.msra.mxu0 %v4259_v28 }
0x10de   : > { %3981 = vmatprep.subr.bf16.mxu0 %v4703_v26 }
0x11a6   : > { %v5302_v30 = vpop.f32.mrb[40].mxu1 }
0x11a7   : > { %v3941_v31 = vpop.f32.mrb[41].mxu1  ;;  %v2535_v32 = vpop.f32.mrb[24].mxu0 }
0x11a8   : > { %v2541_v33 = vmul.f32 0.17677669, %v2535_v32  ;;  %v2373_v34 = vpop.f32.mrb[42].mxu1  ;;  %v3959_v35 = vpop.f32.mrb[25].mxu0  ;;  %v4260_v31 = vld [vmem:[#allocation12 + $0x48] sm:$0xff]   ;;  %v4261_v32 = vld [vmem:[#allocation12 + $0x50] sm:$0xff]  }
0x11a9   : > { %v3942_v36 = vpop.f32.mrb[43].mxu1  ;;  %v2538_v56 = vpop.f32.mrb[26].mxu0  ;;  %3982 = vmatpush3.bf16.msra.mxu0 %v4260_v31  ;;  %v4263_v34 = vld [vmem:[#allocation12 + $0x60] sm:$0xff]   ;;  %v4265_v35 = vld [vmem:[#allocation12 + $0x70] sm:$0xff]  }
0x11aa   : > { %v3960_v37 = vpop.f32.mrb[27].mxu0  ;;  %v2542_v38 = vadd.f32 %v2541_v33, %v5140_v29  ;;  %3983 = vmatprep.subr.bf16.mxu0 %v4703_v26  ;;  %v4262_v33 = vld [vmem:[#allocation12 + $0x58] sm:$0xff]  }
0x11ac   : > { %v2543_v39 = vsel %vm1078_vm9, %v2542_v38, -inf }
0x11ad   : > { %2544 = vmax.xlane.f32.xlu1 %v2543_v39  ;;  %3984 = vmatpush3.bf16.msra.mxu0 %v4261_v32  ;;  %v4266_v39 = vld [vmem:[#allocation12 + $0x78] sm:$0xff]  }
0x11ae   : > { %v2422_v40 = vpop.f32.mrb[44].mxu1  ;;  %3985 = vmatprep.subr.bf16.mxu0 %v4703_v26 }
0x11af   : > { %v2428_v42 = vmul.f32 0.17677669, %v2422_v40  ;;  %v3947_v43 = vpop.f32.mrb[45].mxu1  ;;  %v2647_v44 = vpop.f32.mrb[28].mxu0 }
0x11b0   : > { %v2653_v45 = vmul.f32 0.17677669, %v2647_v44  ;;  %v2425_v46 = vpop.f32.mrb[46].mxu1  ;;  %v3971_v62 = vpop.f32.mrb[29].mxu0 }
0x11b1   : > { %v3948_v47 = vpop.f32.mrb[47].mxu1  ;;  %v2650_v49 = vpop.f32.mrb[30].mxu0  ;;  %v2429_v50 = vadd.f32 %v2428_v42, %v5140_v29  ;;  %3986 = vmatpush3.bf16.msra.mxu0 %v4262_v33  ;;  %v4291_v33 = vld [vmem:[#allocation15 + $0xc0] sm:$0xff]  }
0x11b2   : > { %v3972_v51 = vpop.f32.mrb[31].mxu0  ;;  %v2654_v52 = vadd.f32 %v2653_v45, %v5140_v29  ;;  %3987 = vmatprep.subr.bf16.mxu0 %v4703_v26 }
0x11b3   : > { %v2430_v22 = vsel %vm1078_vm9, %v2429_v50, -inf }
0x11b4   : > { %2431 = vmax.xlane.f32.xlu0 %v2430_v22  ;;  %v2655_v53 = vsel %vm1078_vm9, %v2654_v52, -inf }
0x11b5   : > { %3988 = vmatpush3.bf16.msra.mxu0 %v4263_v34  ;;  %v4292_v34 = vld [vmem:[#allocation15 + $0x80] sm:$0xff]  }
0x11b6   : > { %3989 = vmatprep.subr.bf16.mxu0 %v4703_v26 }
0x11b8   : > { %2656 = vmax.xlane.f32.xlu0 %v2655_v53 }
0x123a   : > { %v2545_v54 = vpop.xlane.xlu1 %2544 }
0x123b   : > { %v2546_v55 = vsub.f32 %v2542_v38, %v2545_v54 }
0x123d   : > { %v2547_v57 = vmul.f32 1.442695, %v2546_v55  ;;  %v3654_v55 = vld [vmem:[%s5434_s9 + $0x1] ss:$0 sm:$0xff] }
0x123f   : > { %4337 = vpow2.f32 %v2547_v57 }
0x1241   : > { %v2432_v58 = vpop.xlane.xlu0 %2431 }
0x1242   : > { %v2433_v59 = vsub.f32 %v2429_v50, %v2432_v58 }
0x1244   : > { %v2434_v61 = vmul.f32 1.442695, %v2433_v59 }
0x1245   : > { %v2657_v1 = vpop.xlane.xlu0 %2656 }
0x1246   : > { %4339 = vpow2.f32 %v2434_v61  ;;  %v2658_v4 = vsub.f32 %v2654_v52, %v2657_v1 }
0x1248   : > { %v2659_v63 = vmul.f32 1.442695, %v2658_v4 }
0x1249   : > { %v4338_v0 = vpop.eup %4337 }
0x124a   : > { %4341 = vpow2.f32 %v2659_v63  ;;  %v2549_v5 = vsel %vm1078_vm9, %v4338_v0, 0.0  ;;  %v4269_v63 = vld [vmem:[#allocation13 + $0x84] ss:$8 sps:$4 sm:$0xff]  }
0x124b   : > { %2550 = vadd.xlane.f32.xlu0 %v2549_v5  ;;  %v4270_v5 = vld [vmem:[#allocation13 + $0x90] ss:$8 sps:$4 sm:$0xff]  }
0x1250   : > { %v4340_v29 = vpop.eup %4339 }
0x1251   : > { %v2436_v7 = vsel %vm1078_vm9, %v4340_v29, 0.0 }
0x1252   : > { %2437 = vadd.xlane.f32.xlu0 %v2436_v7  ;;  %v4273_v7 = vld [vmem:[#allocation13 + $0xa0] ss:$8 sps:$4 sm:$0xff]  }
0x1254   : > { %v4342_v8 = vpop.eup %4341 }
0x1255   : > { %v2661_v9 = vsel %vm1078_vm9, %v4342_v8, 0.0 }
0x1256   : > { %2662 = vadd.xlane.f32.xlu1 %v2661_v9 }
0x1267   : > { %2555 = vrot.lane.b32.xlu1 %v5267_v60, %s4708_s2 }
0x1268   : > { %2443 = vrot.lane.b32.xlu0 %v5267_v60, %s4706_s30 }
0x126b   : > { %2667 = vrot.lane.b32.xlu1 %v5267_v60, %s4707_s25 }
0x12d8   : > { %v2551_v10 = vpop.xlane.xlu0 %2550 }
0x12df   : > { %v2438_v11 = vpop.xlane.xlu0 %2437 }
0x12e0   : > { %4343 = vrcp.f32 %v2438_v11 }
0x12e1   : > { %4345 = vrcp.f32 %v2551_v10 }
0x12e3   : > { %v2444_v3 = vpop.permute.xlu0 %2443  ;;  %v2663_v13 = vpop.xlane.xlu1 %2662 }
0x12e4   : > { %v2449_v12 = vsel %vm720_vm3, %v2444_v3, 0  ;;  %4347 = vrcp.f32 %v2663_v13  ;;  %v4278_v3 = vld [vmem:[#allocation13 + $0xb4] ss:$8 sps:$4 sm:$0xff]   ;;  %v4279_v13 = vld [vmem:[#allocation13 + $0xc0] ss:$8 sps:$4 sm:$0xff]  }
0x12e5   : > { %3950 = vmatpush3.bf16.msra.mxu1 %v2449_v12  ;;  %v4281_v12 = vld [vmem:[#allocation13 + $0xc4] ss:$8 sps:$4 sm:$0xff]  }
0x12e6   : > { %3961 = vmatprep.subr.bf16.mxu1 %v4703_v26 }
0x12e7   : > { %v2556_v16 = vpop.permute.xlu1 %2555 }
0x12e8   : > { %v2561_v19 = vsel %vm720_vm3, %v2556_v16, 0  ;;  %v4287_v16 = vld [vmem:[#allocation13 + $0xe4] ss:$8 sps:$4 sm:$0xff]  }
0x12ea   : > { %v4344_v14 = vpop.eup %4343 }
0x12eb   : > { %v2440_v15 = vmul.f32 %v4344_v14, %v4340_v29  ;;  %v4346_v18 = vpop.eup %4345  ;;  %v2668_v20 = vpop.permute.xlu1 %2667  ;;  %v4275_v29 = vld [vmem:[#allocation13 + $0xa4] ss:$8 sps:$4 sm:$0xff]   ;;  %v4284_v14 = vld [vmem:[#allocation13 + $0xd4] ss:$8 sps:$4 sm:$0xff]  }
0x12ec   : > { %v2553_v60 = vmul.f32 %v4346_v18, %v4338_v0  ;;  %v2673_v24 = vsel %vm720_vm3, %v2668_v20, 0  ;;  %v4272_v0 = vld [vmem:[#allocation13 + $0x94] ss:$8 sps:$4 sm:$0xff]  }
0x12ed   : > { %v2441_v17 = vpack.c.bf16 %v2440_v15, %v2440_v15  ;;  %v4282_v15 = vld [vmem:[#allocation13 + $0xd0] ss:$8 sps:$4 sm:$0xff]   ;;  %v4290_v18 = vld [vmem:[#allocation13 + $0xf4] ss:$8 sps:$4 sm:$0xff]  }
0x12ee   : > { %v2554_v21 = vpack.c.bf16 %v2553_v60, %v2553_v60  ;;  %v4348_v23 = vpop.eup %4347 }
0x12ef   : > { %3952 = vmatmul.mubr.msk.bf16.vlgmr.msra.gmra.mrb[48].mxu1 %vm1078_vm9, %v2441_v17  ;;  %v2665_v25 = vmul.f32 %v4348_v23, %v4342_v8  ;;  %v4285_v17 = vld [vmem:[#allocation13 + $0xe0] ss:$8 sps:$4 sm:$0xff]  }
0x12f0   : > { %3962 = vmatpush3.bf16.msra.mxu1 %v2561_v19  ;;  %3963 = vmatprep.mubr.msk.bf16.mxu1 %vm4705_vm7, %v4703_v26  ;;  %v4288_v19 = vld [vmem:[#allocation13 + $0xf0] ss:$8 sps:$4 sm:$0xff]  }
0x12f1   : > { %3973 = vmatprep.subr.bf16.mxu1 %v4703_v26  ;;  %v2666_v27 = vpack.c.bf16 %v2665_v25, %v2665_v25 }
0x12f7   : > { %3964 = vmatmul.mubr.msk.bf16.vlgmr.msra.gmra.mrb[52].mxu1 %vm1078_vm9, %v2554_v21 }
0x12f8   : > { %3974 = vmatpush3.bf16.msra.mxu1 %v2673_v24  ;;  %3975 = vmatprep.mubr.msk.bf16.mxu1 %vm4705_vm7, %v4703_v26  ;;  %v3665_v24 = vld [vmem:[%s5435_s10 + $0x1] ss:$0 sm:$0xff] }
0x12f9   : > { %2985 = vmatprep.subr.bf16.mxu1 %v4269_v63 }
0x12ff   : > { %3976 = vmatmul.mubr.msk.bf16.vlgmr.msra.gmra.mrb[56].mxu1 %vm1078_vm9, %v2666_v27  ;;  %v3666_v27 = vld [vmem:[%s5495_s22 + $0x1] ss:$0 sm:$0xff] }
0x1300   : > { %3017 = vmatprep.mubr.bf16.mxu1 %v4704_v48  ;;  %v4264_v48 = vld [vmem:[#allocation12 + $0x68] sm:$0xff]  }
0x1301   : > { %3990 = vmatpush3.bf16.msra.mxu0 %v4264_v48  ;;  %v4293_v48 = vld [vmem:[#allocation15 + $0xc8] sm:$0xff]  }
0x1302   : > { %3991 = vmatprep.subr.bf16.mxu0 %v4703_v26 }
0x1305   : > { %3992 = vmatpush3.bf16.msra.mxu0 %v4265_v35  ;;  %v4294_v35 = vld [vmem:[#allocation15 + $0x88] sm:$0xff]  }
0x1306   : > { %3993 = vmatprep.subr.bf16.mxu0 %v4703_v26 }
0x1309   : > { %3994 = vmatpush3.bf16.msra.mxu0 %v4266_v39  ;;  %v4299_v39 = vld [vmem:[#allocation15 + $0xe0] sm:$0xff]  }
0x130a   : > { %3799 = vmatprep.subr.bf16.mxu0 %v4291_v33  ;;  %v3703_v33 = vld [vmem:[%s5441_s16 + $0x1] ss:$0 sm:$0xff] }
0x13c2   : > { %v2485_v36 = vpop.f32.mrb[48].mxu1 }
0x13c3   : > { %2716 = vrot.lane.b32.xlu1 %v2485_v36, %s4707_s25  ;;  %v3953_v56 = vpop.f32.mrb[49].mxu1  ;;  %v4295_v36 = vld [vmem:[#allocation15 + $0xd0] sm:$0xff]   ;;  %s5496_s25 = sld [smem:[#allocation27_spill]] }
0x13c4   : > { %v2488_v37 = vpop.f32.mrb[50].mxu1  ;;  %v4296_v56 = vld [vmem:[#allocation15 + $0x90] sm:$0xff]  }
0x13c5   : > { %v3954_v38 = vpop.f32.mrb[51].mxu1  ;;  %v4297_v37 = vld [vmem:[#allocation15 + $0xd8] sm:$0xff]  }
0x13c6   : > { %v4298_v38 = vld [vmem:[#allocation15 + $0x98] sm:$0xff]  }
0x13c9   : > { %s655_s23 = sand.u32 1, %s5496_s25  }
0x13ca   : > { %v2597_v40 = vpop.f32.mrb[52].mxu1  ;;  %s656_s20 = scalar_lea.vmem [#allocation18], %s655_s23 }
0x13cb   : > { %2720 = vrot.lane.b32.xlu0 %v2597_v40, %s4708_s2  ;;  %v3965_v42 = vpop.f32.mrb[53].mxu1  ;;  %v4300_v40 = vld [vmem:[#allocation15 + $0xa0] sm:$0xff]   ;;  %s3379_s19 = sshll.u32 %s656_s20, 4  ;;  %s5385_s19 = int_to_ptr.vmem [resolvable:$true] %s3379_s19 }
0x13cc   : > { %v2600_v43 = vpop.f32.mrb[54].mxu1  ;;  %v4302_v42 = vld [vmem:[#allocation15 + $0xa8] sm:$0xff]  }
0x13cd   : > { %v3966_v44 = vpop.f32.mrb[55].mxu1  ;;  %v4303_v43 = vld [vmem:[#allocation15 + $0xf0] sm:$0xff]  }
0x13ce   : > { %v4304_v44 = vld [vmem:[#allocation15 + $0xb0] sm:$0xff]  }
0x13d2   : > { %v2709_v45 = vpop.f32.mrb[56].mxu1 }
0x13d3   : > { %2724 = vrot.lane.b32.xlu1 %v2709_v45, %s4706_s30  ;;  %v3977_v46 = vpop.f32.mrb[57].mxu1  ;;  %v4305_v45 = vld [vmem:[#allocation15 + $0xf8] sm:$0xff]   ;;  %s4710_s30 = smov 1e-12  }
0x13d4   : > { %v2712_v62 = vpop.f32.mrb[58].mxu1  ;;  %v4306_v46 = vld [vmem:[#allocation15 + $0xb8] sm:$0xff]  }
0x13d5   : > { %v3978_v47 = vpop.f32.mrb[59].mxu1  ;;  %v3667_v62 = vld [vmem:[%s5438_s13 + $0x2] sm:$0x3] }
0x13d6   : > { %v2898_v47 = vrot.slane %v3667_v62, %v5114_v6 }
0x1435   : > { %v2717_v49 = vpop.permute.xlu1 %2716 }
0x1436   : > { %v2727_v51 = vsel %vm1023_vm8, %v5302_v30, %v2717_v49  ;;  %v4267_v30 = vld [vmem:[#allocation13 + $0x80] ss:$8 sps:$4 sm:$0xff]   ;;  %v2902_v49 = vrot.slane %v3667_v62, %v5106_v2 }
0x1437   : > { %2986 = vmatpush1.bf16.msra.mxu1 %v4267_v30 }
0x1438   : > { %2987 = vmatprep.subr.bf16.mxu1 %v4272_v0 }
0x143b   : > { %2988 = vmatpush1.bf16.msra.mxu1 %v4270_v5 }
0x143c   : > { %2989 = vmatprep.subr.bf16.mxu1 %v4275_v29 }
0x143d   : > { %v2721_v50 = vpop.permute.xlu0 %2720 }
0x143e   : > { %v2728_v22 = vsel %vm1489_vm10, %v2727_v51, %v2721_v50 }
0x143f   : > { %2990 = vmatpush1.bf16.msra.mxu1 %v4273_v7 }
0x1440   : > { %2991 = vmatprep.subr.bf16.mxu1 %v4278_v3 }
0x1445   : > { %v2725_v52 = vpop.permute.xlu1 %2724 }
0x1446   : > { %v2729_v53 = vsel %vm1491_vm11, %v2728_v22, %v2725_v52 }
0x1447   : > { %v2749_v54 = vpack.c.bf16 %v2729_v53, %v2729_v53 }
0x1449   : > { %3996 = vmatmul.mubr.bf16.vlgmr.msra.gmra.mrb[32].mxu0 %v2749_v54 }
0x144a   : > { %3800 = vmatpush3.bf16.msra.mxu0 %v4292_v34  ;;  %v3704_v34 = vld [vmem:[%s5442_s17 + $0x1] ss:$0 sm:$0xff] }
0x144b   : > { %3801 = vmatprep.subr.bf16.mxu0 %v4293_v48 }
0x144e   : > { %3802 = vmatpush3.bf16.msra.mxu0 %v4294_v35 }
0x144f   : > { %3803 = vmatprep.subr.bf16.mxu0 %v4295_v36 }
0x1452   : > { %3804 = vmatpush3.bf16.msra.mxu0 %v4296_v56 }
0x1453   : > { %3805 = vmatprep.subr.bf16.mxu0 %v4297_v37 }
0x1456   : > { %3806 = vmatpush3.bf16.msra.mxu0 %v4298_v38 }
0x1457   : > { %3807 = vmatprep.subr.bf16.mxu0 %v4299_v39 }
0x145a   : > { %3808 = vmatpush3.bf16.msra.mxu0 %v4300_v40 }
0x151c   : > { %v2838_v57 = vpop.f32.mrb[32].mxu0 }
0x151d   : > { %v2839_v58 = vadd.f32 %v3654_v55, %v2838_v57  ;;  %v3997_v59 = vpop.f32.mrb[33].mxu0 }
0x151e   : > { %v2841_v61 = vpop.f32.mrb[34].mxu0 }
0x151f   : > { %v3998_v1 = vpop.f32.mrb[35].mxu0  ;;  %v2844_v4 = vadd.f32 %v2839_v58, %v5250_v41  ;;  %v4276_v41 = vld [vmem:[#allocation13 + $0xb0] ss:$8 sps:$4 sm:$0xff]  }
0x1520   : > { %2992 = vmatpush1.bf16.msra.mxu1 %v4276_v41 }
0x1521   : > { %2849 = vadd.xlane.f32.xlu0 %v2844_v4  ;;  %2993 = vmatprep.subr.bf16.mxu1 %v4281_v12  ;;  %v3684_v12 = vld [vmem:[#allocation16 + $0x1] ss:$0 sm:$0xff] }
0x1524   : > { %2994 = vmatpush1.bf16.msra.mxu1 %v4279_v13 }
0x1525   : > { %2995 = vmatprep.subr.bf16.mxu1 %v4284_v14 }
0x1528   : > { %2996 = vmatpush1.bf16.msra.mxu1 %v4282_v15 }
0x1529   : > { %2997 = vmatprep.subr.bf16.mxu1 %v4287_v16 }
0x152c   : > { %2998 = vmatpush1.bf16.msra.mxu1 %v4285_v17 }
0x152d   : > { %2999 = vmatprep.subr.bf16.mxu1 %v4290_v18 }
0x1530   : > { %3000 = vmatpush1.bf16.msra.mxu1 %v4288_v19 }
0x1531   : > { %3999 = vmatprep.subr.mxu1 %v4703_v26 }
0x15ae   : > { %v2850_v8 = vpop.xlane.xlu0 %2849 }
0x15af   : > { %v2851_v9 = vmul.f32 0.0078125, %v2850_v8 }
0x15b1   : > { %v2852_v10 = vsub.f32 %v2844_v4, %v2851_v9 }
0x15b3   : > { %v2853_v11 = vmul.f32 %v2852_v10, %v2852_v10 }
0x15b5   : > { %2854 = vadd.xlane.f32.xlu1 %v2853_v11 }
0x1642   : > { %v2855_v60 = vpop.xlane.xlu1 %2854 }
0x1643   : > { %v2856_v20 = vmul.f32 0.0078125, %v2855_v60 }
0x1645   : > { %v2857_v21 = vadd.f32 1e-05, %v2856_v20 }
0x1647   : > { %4349 = vrsqrt.f32 %v2857_v21 }
0x1651   : > { %v4350_v23 = vpop.eup %4349 }
0x1652   : > { %v2859_v25 = vmul.f32 %v4350_v23, %v2852_v10  ;;  %v4363_v23 = vld [vmem:[%s5136_s29] sm:$0x1] }
0x1654   : > { %v2866_v28 = vmul.f32 %v3665_v24, %v2859_v25  ;;  %v3327_v24 = vsel %vm3326_vm12, %v4363_v23, 0.0 }
0x1656   : > { %v5357_v31 = vadd.f32 %v3666_v27, %v2866_v28 }
0x1658   : > { %v2893_v32 = vpack.c.bf16 %v5357_v31, %v5357_v31 }
0x165a   : > { %3018 = vmatmul.mubr.bf16.vlgmr.msra.gmra.mrb[60].mxu1 %v2893_v32 }
0x165b   : > { %4001 = vmatprep.mubr.msk.f32.mxu1 %vm4705_vm7, %v4703_v26  ;;  %v4301_v26 = vld [vmem:[#allocation15 + $0xe8] sm:$0xff]  }
0x165c   : > { %3809 = vmatprep.subr.bf16.mxu0 %v4301_v26 }
0x165d   : > { %3810 = vmatpush3.bf16.msra.mxu0 %v4302_v42 }
0x165e   : > { %3811 = vmatprep.subr.bf16.mxu0 %v4303_v43 }
0x1661   : > { %3812 = vmatpush3.bf16.msra.mxu0 %v4304_v44 }
0x1662   : > { %3813 = vmatprep.subr.bf16.mxu0 %v4305_v45 }
0x1665   : > { %3814 = vmatpush3.bf16.msra.mxu0 %v4306_v46 }
0x172d   : > { %v3019_v50 = vpop.f32.mrb[60].mxu1 }
0x172e   : > { %v3020_v51 = vadd.f32 %v3019_v50, %v2898_v47  ;;  %v3021_v22 = vpop.f32.mrb[61].mxu1 }
0x172f   : > { %v3022_v52 = vadd.f32 %v3021_v22, %v2902_v49  ;;  %v3023_v53 = vpop.f32.mrb[62].mxu1 }
0x1730   : > { %v3026_v54 = vmul.f32 %v3020_v51, %v3020_v51  ;;  %v3024_v55 = vpop.f32.mrb[63].mxu1 }
0x1731   : > { %v3027_v57 = vmul.f32 %v3022_v52, %v3022_v52 }
0x1732   : > { %v3028_v58 = vmul.f32 %v3026_v54, %v3020_v51 }
0x1733   : > { %v3029_v59 = vmul.f32 %v3027_v57, %v3022_v52 }
0x1734   : > { %v3030_v61 = vmul.f32 0.044715, %v3028_v58 }
0x1735   : > { %v3031_v1 = vmul.f32 0.044715, %v3029_v59 }
0x1736   : > { %v3032_v4 = vadd.f32 %v3030_v61, %v3020_v51 }
0x1737   : > { %v3033_v30 = vadd.f32 %v3031_v1, %v3022_v52 }
0x1738   : > { %v3034_v63 = vmul.f32 0.7978846, %v3032_v4 }
0x1739   : > { %v3035_v0 = vmul.f32 0.7978846, %v3033_v30 }
0x173a   : > { %4351 = vtanh.f32 %v3034_v63 }
0x173b   : > { %4353 = vtanh.f32 %v3035_v0 }
0x1744   : > { %v4352_v6 = vpop.eup %4351 }
0x1745   : > { %v4354_v2 = vpop.eup %4353  ;;  %v3038_v5 = vadd.f32 1.0, %v4352_v6 }
0x1746   : > { %v3039_v29 = vadd.f32 1.0, %v4354_v2 }
0x1747   : > { %v3040_v7 = vmul.f32 0.5, %v3038_v5 }
0x1748   : > { %v3041_v8 = vmul.f32 0.5, %v3039_v29 }
0x1749   : > { %v3042_v9 = vmul.f32 %v3040_v7, %v3020_v51 }
0x174a   : > { %v3043_v10 = vmul.f32 %v3041_v8, %v3022_v52 }
0x174b   : > { %v3079_v3 = vpack.c.bf16 %v3042_v9, %v3042_v9 }
0x174c   : > { %v3080_v11 = vpack.c.bf16 %v3043_v10, %v3043_v10 }
0x174e   : > { %3215 = vmatprep.mubr.bf16.mxu0 %v3080_v11 }
0x174f   : > { %3216 = vmatmul.mubr.bf16.vlgmr.msra.gmra.mrb[36].mxu0 %v3079_v3 }
0x1822   : > { %v3815_v41 = vpop.f32.mrb[36].mxu0 }
0x1823   : > { %v3816_v13 = vpop.f32.mrb[37].mxu0 }
0x1824   : > { %v3817_v14 = vadd.f32 %v3816_v13, %v3815_v41  ;;  %v3818_v15 = vpop.f32.mrb[38].mxu0 }
0x1825   : > { %v3819_v16 = vpop.f32.mrb[39].mxu0 }
0x1826   : > { %v3218_v17 = vadd.f32 %v3817_v14, %v3684_v12 }
0x1828   : > { %v3223_v18 = vadd.f32 %v3218_v17, %v5357_v31 }
0x182a   : > { %3228 = vadd.xlane.f32.xlu0 %v3223_v18 }
0x18b7   : > { %v3229_v19 = vpop.xlane.xlu0 %3228 }
0x18b8   : > { %v3230_v60 = vmul.f32 0.0078125, %v3229_v19 }
0x18ba   : > { %v3231_v20 = vsub.f32 %v3223_v18, %v3230_v60 }
0x18bc   : > { %v3232_v21 = vmul.f32 %v3231_v20, %v3231_v20 }
0x18be   : > { %3233 = vadd.xlane.f32.xlu0 %v3232_v21 }
0x18c2   : > { %3328 = vadd.xlane.f32.xlu0 %v3327_v24 }
0x194b   : > { %v3234_v25 = vpop.xlane.xlu0 %3233 }
0x194c   : > { %v3235_v27 = vmul.f32 0.0078125, %v3234_v25 }
0x194e   : > { %v3236_v28 = vadd.f32 1e-05, %v3235_v27 }
0x194f   : > { %v3329_v36 = vpop.xlane.xlu0 %3328 }
0x1950   : > { %4355 = vrsqrt.f32 %v3236_v28  ;;  %v3330_v56 = vrot.slane %v3329_v36, 4 }
0x1952   : > { %v3331_v37 = vadd.f32 %v3330_v56, %v3329_v36 }
0x1954   : > { %v3332_v38 = vrot.slane %v3331_v37, 2 }
0x1956   : > { %v3333_v39 = vadd.f32 %v3332_v38, %v3331_v37 }
0x1958   : > { %v3334_v40 = vrot.slane %v3333_v39, 1 }
0x195a   : > { %v4356_v32 = vpop.eup %4355  ;;  %v3335_v26 = vadd.f32 %v3334_v40, %v3333_v39 }
0x195b   : > { %v3238_v31 = vmul.f32 %v4356_v32, %v3231_v20 }
0x195c   : > { %4004 = vpush %v3335_v26 }
0x195d   : > { %v3245_v48 = vmul.f32 %v3703_v33, %v3238_v31 }
0x195f   : > { %v3252_v35 = vadd.f32 %v3704_v34, %v3245_v48 }
0x1961   : > { %4000 = vmatpush3.msra.mxu1 %v3252_v35 }
0x1962   : > { %4002 = vmatmul.mubr.msk.f32.vlgmr.msra.gmra.mrb[64].mxu1 %vm1078_vm9, %v4363_v23 }
0x198d   : > { %s4005_s29 = spop %4004 }
0x198e   : > { %s3337_s18 = smax.f32 %s4709_s4, %s4005_s29  ;;  %s5383_s29 = scalar_lea.hbm %s5498_s6, %s3706_s27 }
0x198f   : > { %v3338_v42 = vstv %s3337_s18  ;;  %s3367_s4 = scalar_lea.sflag [#allocation6], %s655_s23  ;;  %s4600_s18 = scalar_lea.vmem %s5385_s19, 16 }
0x1990   : > { %4357 = vrcp.f32 %v3338_v42  ;;  %p4601_p13 = scmp.ne.s32.totalorder %s5385_s19, %s4600_s18 }
0x1992   : > { %p4602_p4 = pnand %p4601_p13, %p5499_p2 }
0x1994   : > { %p4603_p5 = pneg %p4602_p4 }
0x199a   : > { %v4358_v43 = vpop.eup %4357 }
0x1a35   : > { %v3322_v44 = vpop.f32.mrb[64].mxu1 }
0x1a36   : > { %v3340_v45 = vmul.f32 %v4358_v43, %v3322_v44  ;;  %v4003_v46 = vpop.f32.mrb[65].mxu1 }
0x1a38   : > { %v3341_v62 = vmul.f32 %v3340_v45, %v3340_v45 }
0x1a3a   : > { %v3342_v47 = vsel %vm714_vm0, %v3341_v62, 0.0 }
0x1a3b   : > { %3343 = vadd.xlane.f32.xlu1 %v3342_v47 }
0x1ac8   : > { %v3344_v49 = vpop.xlane.xlu1 %3343 }
0x1ac9   : > { %v3345_v50 = vrot.slane %v3344_v49, 4 }
0x1acb   : > { %v3346_v51 = vadd.f32 %v3345_v50, %v3344_v49 }
0x1acd   : > { %v3347_v22 = vrot.slane %v3346_v51, 2 }
0x1acf   : > { %v3348_v52 = vadd.f32 %v3347_v22, %v3346_v51 }
0x1ad1   : > { %v3349_v53 = vrot.slane %v3348_v52, 1 }
0x1ad3   : > { %v3350_v54 = vadd.f32 %v3349_v53, %v3348_v52 }
0x1ad5   : > { %4006 = vpush %v3350_v54 }
0x1b06   : > { %s4007_s21 = spop %4006 }
0x1b07   : > { %v3352_v55 = vstv %s4007_s21  ;;  %s4604_s21 = sshll.u32 %s4711_s11, 4  ;;  %s4605_s21 = int_to_ptr.vmem [resolvable:$false] %s4604_s21 }
0x1b08   : > { %4359 = vrsqrt.f32 %v3352_v55  ;;  %vm3355_vm13 = vcmp.eq.f32.partialorder %v3352_v55, inf  ;;  %v3358_v59 = vand.u32 2147483648, %v3352_v55  ;;  %vm3357_vm14 = vcmp.eq.f32.partialorder %v3352_v55, 0.0  ;;  %s4606_s25 = scalar_lea.vmem %s4605_s21, 32  ;;  %p4607_p6 = scmp.lt.s32.totalorder %s5385_s19, %s4605_s21 }
0x1b09   : > { %p4608_p11 = scmp.lt.s32.totalorder %s4606_s25, %s4600_s18 }
0x1b0b   : > { %p4609_p10 = por %p4608_p11, %p4607_p6 }
0x1b0d   : > { %p4610_p0 = pnand %p4609_p10, %p4603_p5 }
0x1b12   : > { %v4360_v57 = vpop.eup %4359 }
0x1b13   : > { %v3354_v58 = vmul.f32 %v4360_v57, %v3352_v55 }
0x1b15   : > { %v3356_v61 = vsel %vm3355_vm13, %v3352_v55, %v3354_v58 }
0x1b16   : > { %v3359_v1 = vsel %vm3357_vm14, %v3358_v59, %v3356_v61 }
0x1b17   : > { %4008 = vpush %v3359_v1 }
0x1b48   : > { %s4009_s2 = spop %4008 }
0x1b49   : > { %s3361_s28 = smax.f32 %s4710_s30, %s4009_s2 }
0x1b4a   : > { %v3362_v4 = vstv %s3361_s28 }
0x1b4b   : > { %4361 = vrcp.f32 %v3362_v4 }
0x1b55   : > { %v4362_v30 = vpop.eup %4361 }
0x1b56   : > { %v3364_v63 = vmul.f32 %v4362_v30, %v3340_v45 }
0x1b58   : > { %3365 = vst [vmem:[%s656_s20] sm:$0x1] %v3364_v63 }
0x1b59   : > { %4613 = shalt.err (!%p4610_p0)
}
0x1b5a   : > { %s4614_s2 = scalar_lea.hbm %s5383_s29, 16  ;;  %s4618_s23 = scalar_lea.hbm %s5498_s6, 32 }
0x1b5b   : > { %p4615_p3 = scmp.ne.s32.totalorder %s5383_s29, %s4614_s2  ;;  %p4619_p8 = scmp.lt.u32.totalorder %s5383_s29, %s5498_s6 }
0x1b5c   : > { %p4620_p9 = scmp.lt.u32.totalorder %s4618_s23, %s4614_s2  ;;  %p4622_p13 = scmp.lt.u32.totalorder %s4614_s2, %s5383_s29 }
0x1b5d   : > { %p4616_p1 = pnand %p4615_p3, %p5499_p2 }
0x1b5e   : > { %p4621_p12 = por %p4620_p9, %p4619_p8 }
0x1b5f   : > { %p4617_p7 = pneg %p4616_p1 }
0x1b60   : > { %p4623_p4 = por %p4622_p13, %p4621_p12 }
0x1b62   : > { %p4624_p5 = pnand %p4623_p4, %p4617_p7 }
0x1b64   : > { %4627 = shalt.err (!%p4624_p5)
}
0x1b65   : > { %4042 = dma.vmem_to_hbm [thread:$0]  (%p5499_p2), %s5385_s19, 16, %s5383_s29, %s3367_s4  }
0x1b66 PF: > { %s5500_s1 = sld [smem:[#allocation29_spill]]  ;;  %s5501_s24 = sld [smem:[#allocation26_spill]] }
0x1b67   : > { %s5502_s18 = sld [smem:[#allocation33_spill]] }
0x1b6c   : > { %p4089_p6 = scmp.ge.s32.totalorder %s5500_s1, 2  ;;  %s3391_s11 = sand.u32 1, %s5501_s24  }
0x1b6d   : > { %p5503_p11 = scmp.ne.s32.totalorder %s5502_s18, 0  ;;  %s3392_s21 = scalar_lea.sflag [#allocation6], %s3391_s11 }
0x1b6f   : > { %p4070_p10 = pnand %p4089_p6, %p5503_p11 }
0x1b71   : > { %4667 = dma.done.wait (!%p4070_p10), %s3392_s21, 16  }
0x1b72   : > { %4669 = vsyncadd (!%p4070_p10), %s3392_s21, 4294967280  ;;  %s5504_s21 = sld [smem:[#allocation30_spill]]  ;;  %s5505_s19 = sld [smem:[#allocation27_spill]] }
0x1b73   : > { %s5506_s1 = sld [smem:[#allocation28_spill]]  ;;  %s5507_s20 = sld [smem:[#allocation31_spill]] }
0x1b78   : > { %p39_p0 = scmp.ge.s32.totalorder %s5504_s21, 4  }
0x1b7a   :  { %41 = sbr.rel (!%p39_p0) target bundleno = 30 (0x1e), region = 176 }
0x1b81   :  { %3396 = vsyncpa [#allocation5], 1 }
0x1b82   :  { %3398 = vsyncpa [#allocation5 + $0x1], 1 }
0x1b83   :  { %3399 = vsyncpa [#allocation8], 1 }
0x1b84   :  { %3400 = vsyncpa [#allocation11], 1 }
0x1b85   :  { %3401 = vsyncpa [#allocation14], 1 }
0x1b86   :  { %3402 = vsyncpa [#allocation17], 1 }
0x1b87   :  { %3403 = vsyncpa [#allocation6], 1 }
0x1b88   :  { %3405 = vsyncpa [#allocation6 + $0x1], 1 }

</bundles_post_ra>
